<compile_context>
chip_gen: v6e
topology: v6e:2x2x1
jax: 0.10.0
libtpu: 0.0.40
codegen_flags: <defaults>
</compile_context>

<pallas_src>
import functools

import jax
import jax.numpy as jnp
from jax.experimental import pallas as pl
from jax.experimental.pallas import tpu as pltpu


def _pick_row_tile(H, W):
    """Pick an input-row tile TH dividing H whose flattened output block
    (2*TH*2W lanes) is a multiple of 128 (lane-dense stores), while keeping
    the block-diagonal column-duplication matrix small."""
    W2 = 2 * W
    W2p = W2 + 2
    for th in range(H, 0, -1):
        if H % th:
            continue
        if (2 * th * W2) % 128:
            continue
        if th * W > 1024:                         # K of the column-dup matmul
            continue
        if th * W * th * W2p * 4 > (4 << 20):     # dup matrix VMEM footprint
            continue
        return th
    for th in range(H, 0, -1):                    # lane-density-only fallback
        if H % th == 0 and (2 * th * W2) % 128 == 0:
            return th
    return H


def upsampling_module(x, weight, bias):
    """Forward pass of UpsamplingModule.

    x:      (N, C, H, W)  float32
    weight: (C, C, 3, 3)  float32  (Conv2d weight, OIHW)
    bias:   (C,)          float32
    returns (N, C, 2H, 2W) float32
    """
    N, C, H, W = x.shape
    H2, W2 = 2 * H, 2 * W
    W2p = W2 + 2                      # one zero conv-padding column on each side
    TH = _pick_row_tile(H, W)         # input rows per grid step
    NT = H // TH                      # number of row tiles
    L = TH * W2p                      # flattened (padded) lanes per row phase

    dot = functools.partial(jnp.dot, preferred_element_type=jnp.float32,
                            precision=jax.lax.Precision.HIGHEST)

    # ---- fold vertical taps for the two output-row phases (wrapper-side, tiny) ----
    #   even output rows: x-row (ii-1) gets w[...,0,:],  x-row ii gets w[...,1,:]+w[...,2,:]
    #   odd  output rows: x-row  ii    gets w[...,0,:]+w[...,1,:],  x-row (ii+1) gets w[...,2,:]
    w = weight.astype(jnp.float32)
    w0, w1, w2 = w[:, :, 0, :], w[:, :, 1, :], w[:, :, 2, :]     # (C, C, 3[kw]) each
    fold = [[w0, w1 + w2],            # phase 0 (even rows): (row-shift 0, row-shift 1)
            [w0 + w1, w2]]            # phase 1 (odd rows):  (row-shift 1, row-shift 2)
    # One (C, 6C) matrix per phase: column blocks ordered (t=0,kw=0..2),(t=1,kw=0..2),
    # matching the row blocks of the stacked shifted slab built in the kernel.
    wcat = jnp.stack(
        [jnp.concatenate([fold[di][t][:, :, kw]
                          for t in range(2) for kw in range(3)], axis=1)
         for di in range(2)], axis=0)                            # (2, C, 6C)

    # 0/1 matrix duplicating each of the W input columns into 2 output columns and
    # adding one zero conv-padding column on each side: (W, W2p).  Block-diagonal
    # version handles all TH tile rows in a single matmul: (TH*W, TH*W2p).
    cols = jnp.arange(W)
    dup = jnp.zeros((W, W2p), jnp.float32)
    dup = dup.at[cols, 2 * cols + 1].set(1.0)
    dup = dup.at[cols, 2 * cols + 2].set(1.0)
    dupT = jnp.kron(jnp.eye(TH, dtype=jnp.float32), dup)        # (TH*W, L)

    bias2 = bias.astype(jnp.float32).reshape(C, 1)
    x_flat = x.reshape(N, C, H * W)                              # free reshape

    def kernel(x_ref, wcat_ref, dup_ref, dupt_ref, b_ref, o_ref):
        # x_ref:   (1, C, H*W)   whole image (resident across the row-tile axis)
        # wcat_ref:(2, C, 6C)    folded per-phase weights
        # dup_ref: (W, W2p)      single-row column duplicate+pad matrix (halo rows)
        # dupt_ref:(TH*W, L)     block-diagonal duplicate+pad matrix (tile rows)
        # b_ref:   (C, 1)        bias
        # o_ref:   (1, C, 2*TH*W2) lane-dense flattened output slab for this row tile
        rb = pl.program_id(1)
        base = rb * TH

        # Interior rows: one lane-contiguous slice + one MXU matmul performs column
        # duplication and per-row zero padding for all TH rows at once.
        start = pl.multiple_of(base * W, TH * W)
        x_mid = x_ref[0, :, pl.ds(start, TH * W)]                # (C, TH*W)
        mid = dot(x_mid, dupt_ref[...])                          # (C, L)

        if NT == 1:                                              # static: no halos
            top = jnp.zeros((C, W2p), jnp.float32)
            bot = jnp.zeros((C, W2p), jnp.float32)
        else:
            def halo_row(row, valid):
                row_c = jnp.clip(row, 0, H - 1)
                xr = x_ref[0, :, pl.ds(row_c * W, W)]            # (C, W)
                xr = xr * valid.astype(xr.dtype)                 # zero out-of-image rows
                return dot(xr, dup_ref[...])                     # (C, W2p)
            top = halo_row(base - 1, base >= 1)
            bot = halo_row(base + TH, base + TH <= H - 1)

        # Flattened working slab: [zero lane] + (top halo | TH rows | bottom halo)
        # column-duplicated+padded pieces + [zero lane].
        zl = jnp.zeros((C, 1), jnp.float32)
        xp = jnp.concatenate([zl, top, mid, bot, zl], axis=1)    # (C, (TH+2)*W2p + 2)

        # Stack the 9 shifted views (3 row shifts x 3 column taps) along channels so the
        # full channel contraction is two MXU matmuls (one per output-row phase).
        xcat = jnp.concatenate(
            [xp[:, s * W2p + kw: s * W2p + kw + L]
             for s in range(3) for kw in range(3)], axis=0)      # (9C, L)

        b = b_ref[...]
        acc0 = dot(wcat_ref[0], xcat[:6 * C, :]) + b             # even output rows
        acc1 = dot(wcat_ref[1], xcat[3 * C:, :]) + b             # odd output rows

        # Interleave the two row phases, crop the conv-padding columns, and emit one
        # lane-dense slab with a single dense store.
        chunks = []
        for ii in range(TH):
            lo = ii * W2p + 1
            chunks.append(acc0[:, lo:lo + W2])                   # output row 2*ii
            chunks.append(acc1[:, lo:lo + W2])                   # output row 2*ii + 1
        o_ref[0, :, :] = jnp.concatenate(chunks, axis=1).astype(o_ref.dtype)

    out_flat = pl.pallas_call(
        kernel,
        out_shape=jax.ShapeDtypeStruct((N, C, H2 * W2), x.dtype),
        grid_spec=pltpu.PrefetchScalarGridSpec(
            num_scalar_prefetch=0,
            grid=(N, NT),
            in_specs=[
                # whole image per batch element; index_map ignores the row-tile axis so
                # the block stays resident across row tiles
                pl.BlockSpec((1, C, H * W), lambda n, r: (n, 0, 0)),
                pl.BlockSpec((2, C, 6 * C), lambda n, r: (0, 0, 0)),
                pl.BlockSpec((W, W2p), lambda n, r: (0, 0)),
                pl.BlockSpec((TH * W, L), lambda n, r: (0, 0)),
                pl.BlockSpec((C, 1), lambda n, r: (0, 0)),
            ],
            out_specs=pl.BlockSpec((1, C, 2 * TH * W2), lambda n, r: (n, 0, r)),
        ),
        compiler_params=pltpu.CompilerParams(
            dimension_semantics=("parallel", "parallel")),
    )(x_flat, wcat, dup, dupT, bias2)

    return out_flat.reshape(N, C, H2, W2)   # free reshape (row-major contiguous)


def _reference(x, weight, bias):
    """Pure-JAX reference: upsample nearest 2x then SAME 3x3 conv (NCHW / OIHW)."""
    x_up = jnp.repeat(jnp.repeat(x, 2, axis=2), 2, axis=3)
    y = jax.lax.conv_general_dilated(
        x_up, weight,
        window_strides=(1, 1),
        padding="SAME",
        dimension_numbers=("NCHW", "OIHW", "NCHW"),
        precision=jax.lax.Precision.HIGHEST)
    return y + bias[None, :, None, None]


if __name__ == "__main__":
    key = jax.random.PRNGKey(0)
    kx, kw_, kb = jax.random.split(key, 3)

    N, C, H, W = 2, 4, 16, 16
    x = jax.random.normal(kx, (N, C, H, W), dtype=jnp.float32)

    # Deterministic parameter init (shapes from Conv2d(C, C, 3)); PyTorch-like uniform scale.
    fan_in = C * 3 * 3
    bound = 1.0 / (fan_in ** 0.5)
    weight = jax.random.uniform(kw_, (C, C, 3, 3), minval=-bound, maxval=bound,
                                dtype=jnp.float32)
    bias = jax.random.uniform(kb, (C,), minval=-bound, maxval=bound,
                              dtype=jnp.float32)

    out = jax.block_until_ready(upsampling_module(x, weight, bias))
    ref = jax.block_until_ready(_reference(x, weight, bias))

    assert out.shape == (N, C, 2 * H, 2 * W), out.shape
    err = float(jnp.max(jnp.abs(out - ref)))
    # With HIGHEST-precision MXU matmuls agreement is ~1e-6; the looser bound only
    # guards against platform-default bf16 matmul passes.
    assert err < 2e-2, err

    print("KERNEL_OK")
</pallas_src>

<mosaic_0001>
module attributes {stable_mosaic.version = 11 : i64} {
  func.func @kernel(%arg0: i32, %arg1: i32, %arg2: memref<1x4x256xf32, #tpu.memory_space<vmem>>, %arg3: memref<2x4x24xf32, #tpu.memory_space<vmem>>, %arg4: memref<16x34xf32, #tpu.memory_space<vmem>>, %arg5: memref<256x544xf32, #tpu.memory_space<vmem>>, %arg6: memref<4x1xf32, #tpu.memory_space<vmem>>, %arg7: memref<1x4x1024xf32, #tpu.memory_space<vmem>>) attributes {dimension_semantics = [#tpu.dimension_semantics<parallel>, #tpu.dimension_semantics<parallel>], iteration_bounds = array<i64: 2, 1>, scalar_prefetch = 0 : i64, scratch_operands = 0 : i64, tpu.core_type = #tpu.core_type<tc>, window_params = [{transform_indices = @transform_0, window_bounds = array<i64: 1, 4, 256>}, {pipeline_mode = #tpu.pipeline_mode<synchronous>, transform_indices = @transform_1, window_bounds = array<i64: 2, 4, 24>}, {pipeline_mode = #tpu.pipeline_mode<synchronous>, transform_indices = @transform_2, window_bounds = array<i64: 16, 34>}, {pipeline_mode = #tpu.pipeline_mode<synchronous>, transform_indices = @transform_3, window_bounds = array<i64: 256, 544>}, {pipeline_mode = #tpu.pipeline_mode<synchronous>, transform_indices = @transform_4, window_bounds = array<i64: 4, 1>}, {transform_indices = @transform_5, window_bounds = array<i64: 1, 4, 1024>}]} {
    %c16_i32 = arith.constant 16 : i32
    %0 = arith.muli %arg1, %c16_i32 : i32
    %c16_i32_0 = arith.constant 16 : i32
    %1 = arith.muli %0, %c16_i32_0 : i32
    %2 = tpu.assume_multiple %1, 256 : i32
    %c0 = arith.constant 0 : index
    %c0_1 = arith.constant 0 : index
    %3 = arith.index_cast %2 : i32 to index
    %4 = vector.load %arg2[%c0, %c0_1, %3] : memref<1x4x256xf32, #tpu.memory_space<vmem>>, vector<1x4x256xf32>
    %5 = vector.shape_cast %4 : vector<1x4x256xf32> to vector<4x256xf32>
    %c0_2 = arith.constant 0 : index
    %c0_3 = arith.constant 0 : index
    %6 = vector.load %arg5[%c0_2, %c0_3] : memref<256x544xf32, #tpu.memory_space<vmem>>, vector<256x544xf32>
    %cst = arith.constant dense<0.000000e+00> : vector<4x544xf32>
    %7 = tpu.matmul %5, %6, %cst {dimension_numbers = #tpu.dot_dimension_numbers<[1], [0], [0], [1], [0, 0, 1, 1], [], []>, precision = #tpu.contract_precision<fp32>} : vector<4x256xf32>, vector<256x544xf32>, vector<4x544xf32> -> vector<4x544xf32>
    %cst_4 = arith.constant 0.000000e+00 : f32
    %8 = vector.broadcast %cst_4 : f32 to vector<4x34xf32>
    %cst_5 = arith.constant 0.000000e+00 : f32
    %9 = vector.broadcast %cst_5 : f32 to vector<4x34xf32>
    %cst_6 = arith.constant 0.000000e+00 : f32
    %10 = vector.broadcast %cst_6 : f32 to vector<4x1xf32>
    %11 = tpu.concatenate %10, %8, %7, %9, %10 in 1 : vector<4x1xf32>, vector<4x34xf32>, vector<4x544xf32>, vector<4x34xf32>, vector<4x1xf32> -> vector<4x614xf32>
    %12 = vector.extract_strided_slice %11 {offsets = [0, 0], sizes = [4, 544], strides = [1, 1]} : vector<4x614xf32> to vector<4x544xf32>
    %13 = vector.extract_strided_slice %11 {offsets = [0, 1], sizes = [4, 544], strides = [1, 1]} : vector<4x614xf32> to vector<4x544xf32>
    %14 = vector.extract_strided_slice %11 {offsets = [0, 2], sizes = [4, 544], strides = [1, 1]} : vector<4x614xf32> to vector<4x544xf32>
    %15 = vector.extract_strided_slice %11 {offsets = [0, 34], sizes = [4, 544], strides = [1, 1]} : vector<4x614xf32> to vector<4x544xf32>
    %16 = vector.extract_strided_slice %11 {offsets = [0, 35], sizes = [4, 544], strides = [1, 1]} : vector<4x614xf32> to vector<4x544xf32>
    %17 = vector.extract_strided_slice %11 {offsets = [0, 36], sizes = [4, 544], strides = [1, 1]} : vector<4x614xf32> to vector<4x544xf32>
    %18 = vector.extract_strided_slice %11 {offsets = [0, 68], sizes = [4, 544], strides = [1, 1]} : vector<4x614xf32> to vector<4x544xf32>
    %19 = vector.extract_strided_slice %11 {offsets = [0, 69], sizes = [4, 544], strides = [1, 1]} : vector<4x614xf32> to vector<4x544xf32>
    %20 = vector.extract_strided_slice %11 {offsets = [0, 70], sizes = [4, 544], strides = [1, 1]} : vector<4x614xf32> to vector<4x544xf32>
    %21 = tpu.concatenate %12, %13, %14, %15, %16, %17, %18, %19, %20 in 0 : vector<4x544xf32>, vector<4x544xf32>, vector<4x544xf32>, vector<4x544xf32>, vector<4x544xf32>, vector<4x544xf32>, vector<4x544xf32>, vector<4x544xf32>, vector<4x544xf32> -> vector<36x544xf32>
    %c0_7 = arith.constant 0 : index
    %c0_8 = arith.constant 0 : index
    %22 = vector.load %arg6[%c0_7, %c0_8] : memref<4x1xf32, #tpu.memory_space<vmem>>, vector<4x1xf32>
    %c0_9 = arith.constant 0 : index
    %c0_10 = arith.constant 0 : index
    %c0_11 = arith.constant 0 : index
    %23 = vector.load %arg3[%c0_9, %c0_10, %c0_11] : memref<2x4x24xf32, #tpu.memory_space<vmem>>, vector<1x4x24xf32>
    %24 = vector.shape_cast %23 : vector<1x4x24xf32> to vector<4x24xf32>
    %25 = vector.extract_strided_slice %21 {offsets = [0, 0], sizes = [24, 544], strides = [1, 1]} : vector<36x544xf32> to vector<24x544xf32>
    %cst_12 = arith.constant dense<0.000000e+00> : vector<4x544xf32>
    %26 = tpu.matmul %24, %25, %cst_12 {dimension_numbers = #tpu.dot_dimension_numbers<[1], [0], [0], [1], [0, 0, 1, 1], [], []>, precision = #tpu.contract_precision<fp32>} : vector<4x24xf32>, vector<24x544xf32>, vector<4x544xf32> -> vector<4x544xf32>
    %27 = vector.broadcast %22 : vector<4x1xf32> to vector<4x544xf32>
    %28 = arith.addf %26, %27 : vector<4x544xf32>
    %c1 = arith.constant 1 : index
    %c0_13 = arith.constant 0 : index
    %c0_14 = arith.constant 0 : index
    %29 = vector.load %arg3[%c1, %c0_13, %c0_14] : memref<2x4x24xf32, #tpu.memory_space<vmem>>, vector<1x4x24xf32>
    %30 = vector.shape_cast %29 : vector<1x4x24xf32> to vector<4x24xf32>
    %31 = vector.extract_strided_slice %21 {offsets = [12, 0], sizes = [24, 544], strides = [1, 1]} : vector<36x544xf32> to vector<24x544xf32>
    %cst_15 = arith.constant dense<0.000000e+00> : vector<4x544xf32>
    %32 = tpu.matmul %30, %31, %cst_15 {dimension_numbers = #tpu.dot_dimension_numbers<[1], [0], [0], [1], [0, 0, 1, 1], [], []>, precision = #tpu.contract_precision<fp32>} : vector<4x24xf32>, vector<24x544xf32>, vector<4x544xf32> -> vector<4x544xf32>
    %33 = vector.broadcast %22 : vector<4x1xf32> to vector<4x544xf32>
    %34 = arith.addf %32, %33 : vector<4x544xf32>
    %35 = vector.extract_strided_slice %28 {offsets = [0, 1], sizes = [4, 32], strides = [1, 1]} : vector<4x544xf32> to vector<4x32xf32>
    %36 = vector.extract_strided_slice %34 {offsets = [0, 1], sizes = [4, 32], strides = [1, 1]} : vector<4x544xf32> to vector<4x32xf32>
    %37 = vector.extract_strided_slice %28 {offsets = [0, 35], sizes = [4, 32], strides = [1, 1]} : vector<4x544xf32> to vector<4x32xf32>
    %38 = vector.extract_strided_slice %34 {offsets = [0, 35], sizes = [4, 32], strides = [1, 1]} : vector<4x544xf32> to vector<4x32xf32>
    %39 = vector.extract_strided_slice %28 {offsets = [0, 69], sizes = [4, 32], strides = [1, 1]} : vector<4x544xf32> to vector<4x32xf32>
    %40 = vector.extract_strided_slice %34 {offsets = [0, 69], sizes = [4, 32], strides = [1, 1]} : vector<4x544xf32> to vector<4x32xf32>
    %41 = vector.extract_strided_slice %28 {offsets = [0, 103], sizes = [4, 32], strides = [1, 1]} : vector<4x544xf32> to vector<4x32xf32>
    %42 = vector.extract_strided_slice %34 {offsets = [0, 103], sizes = [4, 32], strides = [1, 1]} : vector<4x544xf32> to vector<4x32xf32>
    %43 = vector.extract_strided_slice %28 {offsets = [0, 137], sizes = [4, 32], strides = [1, 1]} : vector<4x544xf32> to vector<4x32xf32>
    %44 = vector.extract_strided_slice %34 {offsets = [0, 137], sizes = [4, 32], strides = [1, 1]} : vector<4x544xf32> to vector<4x32xf32>
    %45 = vector.extract_strided_slice %28 {offsets = [0, 171], sizes = [4, 32], strides = [1, 1]} : vector<4x544xf32> to vector<4x32xf32>
    %46 = vector.extract_strided_slice %34 {offsets = [0, 171], sizes = [4, 32], strides = [1, 1]} : vector<4x544xf32> to vector<4x32xf32>
    %47 = vector.extract_strided_slice %28 {offsets = [0, 205], sizes = [4, 32], strides = [1, 1]} : vector<4x544xf32> to vector<4x32xf32>
    %48 = vector.extract_strided_slice %34 {offsets = [0, 205], sizes = [4, 32], strides = [1, 1]} : vector<4x544xf32> to vector<4x32xf32>
    %49 = vector.extract_strided_slice %28 {offsets = [0, 239], sizes = [4, 32], strides = [1, 1]} : vector<4x544xf32> to vector<4x32xf32>
    %50 = vector.extract_strided_slice %34 {offsets = [0, 239], sizes = [4, 32], strides = [1, 1]} : vector<4x544xf32> to vector<4x32xf32>
    %51 = vector.extract_strided_slice %28 {offsets = [0, 273], sizes = [4, 32], strides = [1, 1]} : vector<4x544xf32> to vector<4x32xf32>
    %52 = vector.extract_strided_slice %34 {offsets = [0, 273], sizes = [4, 32], strides = [1, 1]} : vector<4x544xf32> to vector<4x32xf32>
    %53 = vector.extract_strided_slice %28 {offsets = [0, 307], sizes = [4, 32], strides = [1, 1]} : vector<4x544xf32> to vector<4x32xf32>
    %54 = vector.extract_strided_slice %34 {offsets = [0, 307], sizes = [4, 32], strides = [1, 1]} : vector<4x544xf32> to vector<4x32xf32>
    %55 = vector.extract_strided_slice %28 {offsets = [0, 341], sizes = [4, 32], strides = [1, 1]} : vector<4x544xf32> to vector<4x32xf32>
    %56 = vector.extract_strided_slice %34 {offsets = [0, 341], sizes = [4, 32], strides = [1, 1]} : vector<4x544xf32> to vector<4x32xf32>
    %57 = vector.extract_strided_slice %28 {offsets = [0, 375], sizes = [4, 32], strides = [1, 1]} : vector<4x544xf32> to vector<4x32xf32>
    %58 = vector.extract_strided_slice %34 {offsets = [0, 375], sizes = [4, 32], strides = [1, 1]} : vector<4x544xf32> to vector<4x32xf32>
    %59 = vector.extract_strided_slice %28 {offsets = [0, 409], sizes = [4, 32], strides = [1, 1]} : vector<4x544xf32> to vector<4x32xf32>
    %60 = vector.extract_strided_slice %34 {offsets = [0, 409], sizes = [4, 32], strides = [1, 1]} : vector<4x544xf32> to vector<4x32xf32>
    %61 = vector.extract_strided_slice %28 {offsets = [0, 443], sizes = [4, 32], strides = [1, 1]} : vector<4x544xf32> to vector<4x32xf32>
    %62 = vector.extract_strided_slice %34 {offsets = [0, 443], sizes = [4, 32], strides = [1, 1]} : vector<4x544xf32> to vector<4x32xf32>
    %63 = vector.extract_strided_slice %28 {offsets = [0, 477], sizes = [4, 32], strides = [1, 1]} : vector<4x544xf32> to vector<4x32xf32>
    %64 = vector.extract_strided_slice %34 {offsets = [0, 477], sizes = [4, 32], strides = [1, 1]} : vector<4x544xf32> to vector<4x32xf32>
    %65 = vector.extract_strided_slice %28 {offsets = [0, 511], sizes = [4, 32], strides = [1, 1]} : vector<4x544xf32> to vector<4x32xf32>
    %66 = vector.extract_strided_slice %34 {offsets = [0, 511], sizes = [4, 32], strides = [1, 1]} : vector<4x544xf32> to vector<4x32xf32>
    %67 = tpu.concatenate %35, %36, %37, %38, %39, %40, %41, %42, %43, %44, %45, %46, %47, %48, %49, %50 in 1 : vector<4x32xf32>, vector<4x32xf32>, vector<4x32xf32>, vector<4x32xf32>, vector<4x32xf32>, vector<4x32xf32>, vector<4x32xf32>, vector<4x32xf32>, vector<4x32xf32>, vector<4x32xf32>, vector<4x32xf32>, vector<4x32xf32>, vector<4x32xf32>, vector<4x32xf32>, vector<4x32xf32>, vector<4x32xf32> -> vector<4x512xf32>
    %68 = tpu.concatenate %51, %52, %53, %54, %55, %56, %57, %58, %59, %60, %61, %62, %63, %64, %65, %66 in 1 : vector<4x32xf32>, vector<4x32xf32>, vector<4x32xf32>, vector<4x32xf32>, vector<4x32xf32>, vector<4x32xf32>, vector<4x32xf32>, vector<4x32xf32>, vector<4x32xf32>, vector<4x32xf32>, vector<4x32xf32>, vector<4x32xf32>, vector<4x32xf32>, vector<4x32xf32>, vector<4x32xf32>, vector<4x32xf32> -> vector<4x512xf32>
    %69 = tpu.concatenate %67, %68 in 1 : vector<4x512xf32>, vector<4x512xf32> -> vector<4x1024xf32>
    %c0_16 = arith.constant 0 : index
    %c0_17 = arith.constant 0 : index
    %c0_18 = arith.constant 0 : index
    %70 = vector.load %arg7[%c0_16, %c0_17, %c0_18] : memref<1x4x1024xf32, #tpu.memory_space<vmem>>, vector<1x4x1024xf32>
    %71 = vector.shape_cast %70 : vector<1x4x1024xf32> to vector<4x1024xf32>
    %72 = vector.shape_cast %69 : vector<4x1024xf32> to vector<1x4x1024xf32>
    tpu.vector_store %arg7[%c0_16, %c0_17, %c0_18], %72 {strides = array<i32>} : memref<1x4x1024xf32, #tpu.memory_space<vmem>>, vector<1x4x1024xf32>,
    return
  }
  func.func @transform_0(%arg0: i32, %arg1: i32) -> (i32, i32, i32) {
    %c0_i32 = arith.constant 0 : i32
    %c0_i32_0 = arith.constant 0 : i32
    %c0_i32_1 = arith.constant 0 : i32
    return %arg0, %c0_i32, %c0_i32_0 : i32, i32, i32
  }
  func.func @transform_1(%arg0: i32, %arg1: i32) -> (i32, i32, i32) {
    %c0_i32 = arith.constant 0 : i32
    %c0_i32_0 = arith.constant 0 : i32
    %c0_i32_1 = arith.constant 0 : i32
    %c0_i32_2 = arith.constant 0 : i32
    return %c0_i32, %c0_i32_0, %c0_i32_1 : i32, i32, i32
  }
  func.func @transform_2(%arg0: i32, %arg1: i32) -> (i32, i32) {
    %c0_i32 = arith.constant 0 : i32
    %c0_i32_0 = arith.constant 0 : i32
    %c0_i32_1 = arith.constant 0 : i32
    return %c0_i32, %c0_i32_0 : i32, i32
  }
  func.func @transform_3(%arg0: i32, %arg1: i32) -> (i32, i32) {
    %c0_i32 = arith.constant 0 : i32
    %c0_i32_0 = arith.constant 0 : i32
    %c0_i32_1 = arith.constant 0 : i32
    return %c0_i32, %c0_i32_0 : i32, i32
  }
  func.func @transform_4(%arg0: i32, %arg1: i32) -> (i32, i32) {
    %c0_i32 = arith.constant 0 : i32
    %c0_i32_0 = arith.constant 0 : i32
    %c0_i32_1 = arith.constant 0 : i32
    return %c0_i32, %c0_i32_0 : i32, i32
  }
  func.func @transform_5(%arg0: i32, %arg1: i32) -> (i32, i32, i32) {
    %c0_i32 = arith.constant 0 : i32
    %c0_i32_0 = arith.constant 0 : i32
    return %arg0, %c0_i32, %arg1 : i32, i32, i32
  }
}

</mosaic_0001>

<bundles_post_ra>
// kernel: tpu_custom_call.1
= control target key start
LH: loop header
LB: loop body
LE: loop exit
PB: predicated region body
PF: predicated region fallthrough
CT: control target
= control target key end

     0   :  { %10 = vsyncpa [#allocation3], 0  ;;  %s12459_s0 = inlined_call_operand.vmem [shape: f32[2,4,256], index: 0, kind: input, shape index: {}]   ;;  %s12460_s1 = inlined_call_operand.vmem [shape: f32[2,4,24], index: 1, kind: input, shape index: {}]   ;;  %s12461_s2 = inlined_call_operand.vmem [shape: f32[16,34], index: 2, kind: input, shape index: {}]   ;;  %s12462_s3 = inlined_call_operand.vmem [shape: f32[256,544], index: 3, kind: input, shape index: {}]   ;;  %s12463_s4 = inlined_call_operand.vmem [shape: f32[4,1], index: 4, kind: input, shape index: {}]   ;;  %s12464_s5 = inlined_call_operand.hbm [shape: f32[2,4,1024], index: 5, kind: output, shape index: {}]  }
   0x1   :  { %12 = vsyncpa [#allocation3 + $0x1], 0  ;;  %s8048_s18 = smov 0   ;;  %s8050_s19 = smov 0  }
   0x2   :  { %s8052_s20 = smov 0   ;;  %s8054_s21 = smov 0  }
   0x3   :  { %s8056_s2 = smov 0   ;;  %s8058_s22 = smov 0  }
   0x4 LB: > { %s7417_s23 = sadd.s32 4294967295, %s7974_s22   ;;  %s7418_s24 = sadd.s32 4294967294, %s7974_s22   ;;  %s7974_s22 = sphi %s8058_s22, %s18_s22   ;;  %s7970_s2 = sphi %s8056_s2, %s13813_s2   ;;  %s7966_s21 = sphi %s8054_s21, %s13812_s21   ;;  %s7962_s20 = sphi %s8052_s20, %s13811_s20   ;;  %s7958_s19 = sphi %s8050_s19, %s13810_s19   ;;  %s7954_s18 = sphi %s8048_s18, %s13809_s18  }
   0x5   : > { %s30_s25 = sadd.s32 1, %s7970_s2  ;;  %s149_s26 = sadd.s32 1, %s7962_s20 }
   0x6   : > { %p32_p0 = scmp.ge.s32.totalorder %s30_s25, 2  ;;  %p159_p1 = scmp.ne.s32.totalorder %s7962_s20, %s7958_s19 }
   0x7   : > { %p160_p2 = scmp.eq.s32.totalorder %s7417_s23, 1  ;;  %p165_p3 = scmp.ne.s32.totalorder %s7958_s19, %s7954_s18 }
   0x8   : > { %s13815_s25 = smov (%p32_p0, %s30_s25), 0  ;;  %p166_p5 = scmp.eq.s32.totalorder %s7418_s24, 1 }
   0x9   : > { %p8088_p4 = por %p160_p2, %p159_p1  ;;  %s144_s28 = ssub.s32 %s7970_s2, %s13815_s25 }
   0xa   : > { %p7421_p6 = scmp.ge.s32.totalorder %s7974_s22, 1  ;;  %p147_p7 = scmp.eq.s32.totalorder %s144_s28, 0 }
   0xb   : > { %p8095_p8 = por %p166_p5, %p165_p3  ;;  %p204_p9 = scmp.lt.s32.totalorder %s7974_s22, 3 }
   0xc   : > { %s8101_s30 = scalar_select %p147_p7, %s7962_s20, %s149_s26  }
   0xd   : > { %p205_p10 = pnand %p7421_p6, %p204_p9 }
   0xf   : > { %208 = sbr.rel (%p205_p10) target bundleno = 1464 (0x5b8), region = 40 }
  0x14   : > { %v320_v0 = vld [vmem:[%s12462_s3 + $0x260] sm:$0xff]  ;;  %v319_v1 = vld [vmem:[%s12462_s3 + $0x258] sm:$0xff]  ;;  %v314_v6 = vld [vmem:[%s12462_s3 + $0x230] sm:$0xff]  ;;  %p232_p11 = scmp.lt.s32.totalorder %s7966_s21, 1  ;;  %s7976_s15 = smov 35   ;;  %vm3852_vm0 = vcmask 285696  }
  0x15   : > { %v315_v2 = vld [vmem:[%s12462_s3 + $0x238] sm:$0xff]  ;;  %v8112_v3 = vand.u32 4294901760, %v320_v0  ;;  %v8114_v4 = vand.u32 4294901760, %v319_v1  ;;  %v310_v7 = vld [vmem:[%s12462_s3 + $0x210] sm:$0xff]  ;;  %v309_v8 = vld [vmem:[%s12462_s3 + $0x208] sm:$0xff]  ;;  %v8127_v9 = vand.u32 4294901760, %v314_v6 }
  0x16   : > { %v8116_v5 = vand.u32 4294901760, %v315_v2  ;;  %v8129_v10 = vand.u32 4294901760, %v310_v7  ;;  %v8131_v11 = vand.u32 4294901760, %v309_v8  ;;  %v305_v12 = vld [vmem:[%s12462_s3 + $0x1e8] sm:$0xff]  ;;  %v304_v13 = vld [vmem:[%s12462_s3 + $0x1e0] sm:$0xff]  ;;  %v8155_v19 = vld [vmem:[%s12462_s3 + $0x1b8] sm:$0xff] }
  0x17   : > { %v300_v14 = vld [vmem:[%s12462_s3 + $0x1c0] sm:$0xff]  ;;  %408 = vmatprep.subr.mxu0 %v8112_v3  ;;  %v8143_v15 = vand.u32 4294901760, %v305_v12  ;;  %v8145_v16 = vand.u32 4294901760, %v304_v13  ;;  %v8150_v18 = vsub.f32 %v320_v0, %v8112_v3  ;;  %v8160_v20 = vld [vmem:[%s12462_s3 + $0x198] sm:$0xff]  ;;  %v8165_v21 = vld [vmem:[%s12462_s3 + $0x190] sm:$0xff]  ;;  %v8169_v22 = vand.u32 4294901760, %v8155_v19 }
  0x18   : > { %v8147_v17 = vand.u32 4294901760, %v300_v14  ;;  %410 = vmatpush1.msra.mxu0 %v8114_v4  ;;  %v8172_v23 = vsub.f32 %v319_v1, %v8114_v4  ;;  %v8175_v24 = vand.u32 4294901760, %v8160_v20  ;;  %v8178_v25 = vsub.f32 %v315_v2, %v8116_v5  ;;  %v8183_v26 = vld [vmem:[%s12462_s3 + $0x170] sm:$0xff]  ;;  %v8188_v27 = vld [vmem:[%s12462_s3 + $0x168] sm:$0xff]  ;;  %v8218_v37 = vld [vmem:[%s12462_s3 + $0x140] sm:$0xff]  ;;  %s8932_s8 = scalar_select %p232_p11, %s7966_s21, 1 }
  0x19   : > { %12935 = vst [vmem:[#allocation5_spill] sm:$0xff] %v8150_v18  ;;  %v8193_v28 = vld [vmem:[%s12462_s3 + $0x148] sm:$0xff]  ;;  %412 = vmatprep.subr.mxu0 %v8116_v5  ;;  %v12478_v29 = vand.u32 4294901760, %v8150_v18  ;;  %v8198_v30 = vand.u32 4294901760, %v8165_v21  ;;  %v8201_v31 = vsub.f32 %v314_v6, %v8127_v9  ;;  %v8204_v32 = vand.u32 4294901760, %v8183_v26  ;;  %v8245_v46 = vld [vmem:[%s12462_s3 + $0x120] sm:$0xff] }
  0x1a   : > { %414 = vmatpush1.msra.mxu0 %v8127_v9  ;;  %v12477_v33 = vand.u32 4294901760, %v8172_v23  ;;  %v12475_v34 = vand.u32 4294901760, %v8178_v25  ;;  %v8210_v35 = vsub.f32 %v310_v7, %v8129_v10  ;;  %v8213_v36 = vand.u32 4294901760, %v8188_v27  ;;  %v8258_v51 = vld [vmem:[%s12462_s3 + $0x118] sm:$0xff]  ;;  %v8283_v61 = vld [vmem:[%s12462_s3 + $0xf0] sm:$0xff]  ;;  %s7431_s17 = sshll.u32 %s8932_s8, 3 }
  0x1b   : > { %12936 = vst [vmem:[#allocation6_spill] sm:$0xff] %v8198_v30  ;;  %12937 = vst [vmem:[#allocation7_spill] sm:$0xff] %v8204_v32  ;;  %416 = vmatprep.subr.mxu0 %v8129_v10  ;;  %v555_v38 = vsub.f32 %v8150_v18, %v12478_v29  ;;  %v12474_v39 = vand.u32 4294901760, %v8201_v31  ;;  %v8226_v40 = vsub.f32 %v309_v8, %v8131_v11  ;;  %v8229_v41 = vand.u32 4294901760, %v8193_v28  ;;  %v8268_v56 = vld [vmem:[%s12462_s3 + $0xf8] sm:$0xff]  ;;  %v8298_v2 = vld [vmem:[%s12462_s3 + $0xd0] sm:$0xff]  ;;  %s236_s8 = scalar_lea.vmem %s12459_s0, %s7431_s17 }
  0x1c   : > { %12938 = vst [vmem:[#allocation8_spill] sm:$0xff] %v8213_v36  ;;  %418 = vmatpush1.msra.mxu0 %v8131_v11  ;;  %v561_v42 = vsub.f32 %v8172_v23, %v12477_v33  ;;  %v567_v43 = vsub.f32 %v8178_v25, %v12475_v34  ;;  %v12472_v44 = vand.u32 4294901760, %v8210_v35  ;;  %v8240_v45 = vsub.f32 %v305_v12, %v8143_v15  ;;  %v8434_v33 = vld [vmem:[%s12462_s3 + $0x30] sm:$0xff]  ;;  %s7977_s12 = smov 93   ;;  %s7978_s13 = smov 92  }
  0x1d   : > { %12939 = vst [vmem:[#allocation9_spill] sm:$0xff] %v8229_v41  ;;  %420 = vmatprep.subr.mxu0 %v8143_v15  ;;  %v556_v47 = vand.u32 4294901760, %v555_v38  ;;  %v573_v48 = vsub.f32 %v8201_v31, %v12474_v39  ;;  %v12470_v49 = vand.u32 4294901760, %v8226_v40  ;;  %v8253_v50 = vand.u32 4294901760, %v8218_v37  ;;  %s7979_s14 = smov 126   ;;  %s7980_s16 = smov 94  }
  0x1e   : > { %422 = vmatpush1.msra.mxu0 %v8145_v16  ;;  %v562_v52 = vand.u32 4294901760, %v561_v42  ;;  %v568_v53 = vand.u32 4294901760, %v567_v43  ;;  %v579_v54 = vsub.f32 %v8210_v35, %v12472_v44  ;;  %v12469_v55 = vand.u32 4294901760, %v8240_v45  ;;  %v8407_v44 = vld [vmem:[%s12462_s3 + $0x58] sm:$0xff]  ;;  %s7981_s17 = smov 127   ;;  %s7983_s23 = smov 60  }
  0x1f   : > { %12940 = vst [vmem:[#allocation10_spill] sm:$0xff] %v8253_v50  ;;  %424 = vmatprep.subr.mxu0 %v8147_v17  ;;  %557 = vmatprep.subr.mxu1 %v556_v47  ;;  %v574_v57 = vand.u32 4294901760, %v573_v48  ;;  %v585_v58 = vsub.f32 %v8226_v40, %v12470_v49  ;;  %v8275_v59 = vsub.f32 %v304_v13, %v8145_v16  ;;  %v8278_v60 = vand.u32 4294901760, %v8245_v46  ;;  %v8312_v13 = vld [vmem:[%s12462_s3 + $0xc8] sm:$0xff]  ;;  %v8391_v49 = vld [vmem:[%s12462_s3 + $0x78] sm:$0xff]  ;;  %s7984_s24 = smov 59  }
  0x20   : > { %426 = vmatpush1.msra.mxu0 %v8169_v22  ;;  %563 = vmatpush1.msra.mxu1 %v562_v52  ;;  %v580_v62 = vand.u32 4294901760, %v579_v54  ;;  %v591_v63 = vsub.f32 %v8240_v45, %v12469_v55  ;;  %v8290_v0 = vsub.f32 %v300_v14, %v8147_v17  ;;  %v8293_v1 = vand.u32 4294901760, %v8258_v51  ;;  %s7985_s26 = smov 58   ;;  %s7988_s11 = smov 89  }
  0x21   : > { %12941 = vst [vmem:[#allocation11_spill] sm:$0xff] %v8278_v60  ;;  %428 = vmatprep.subr.mxu0 %v8175_v24  ;;  %569 = vmatprep.subr.mxu1 %v568_v53  ;;  %v586_v6 = vand.u32 4294901760, %v585_v58  ;;  %v12467_v7 = vand.u32 4294901760, %v8275_v59  ;;  %v8304_v8 = vsub.f32 %v8155_v19, %v8169_v22  ;;  %v8307_v12 = vand.u32 4294901760, %v8268_v56  ;;  %s7997_s28 = smov 73   ;;  %s7998_s6 = smov 103  }
  0x22   : > { %12942 = vst [vmem:[#allocation12_spill] sm:$0xff] %v8293_v1  ;;  %430 = vmatpush1.msra.mxu0 %v8198_v30  ;;  %575 = vmatpush1.msra.mxu1 %v574_v57  ;;  %v592_v14 = vand.u32 4294901760, %v591_v63  ;;  %v12465_v38 = vand.u32 4294901760, %v8290_v0  ;;  %v8318_v42 = vsub.f32 %v8160_v20, %v8175_v24  ;;  %v8321_v19 = vand.u32 4294901760, %v8283_v61  ;;  %v8338_v20 = vld [vmem:[%s12462_s3 + $0xa8] sm:$0xff]  ;;  %s7999_s7 = smov 65  }
  0x23   : > { %12943 = vst [vmem:[#allocation13_spill] sm:$0xff] %v8307_v12  ;;  %432 = vmatprep.subr.mxu0 %v8204_v32  ;;  %581 = vmatprep.subr.mxu1 %v580_v62  ;;  %v597_v43 = vsub.f32 %v8275_v59, %v12467_v7  ;;  %v12466_v47 = vand.u32 4294901760, %v8304_v8  ;;  %v8330_v48 = vsub.f32 %v8165_v21, %v8198_v30  ;;  %v8333_v52 = vand.u32 4294901760, %v8298_v2  ;;  %s8002_s9 = smov 31   ;;  %s8003_s10 = smov 61  }
  0x24   : > { %12944 = vst [vmem:[#allocation14_spill] sm:$0xff] %v8321_v19  ;;  %434 = vmatpush1.msra.mxu0 %v8213_v36  ;;  %587 = vmatpush1.msra.mxu1 %v586_v6  ;;  %v603_v53 = vsub.f32 %v8290_v0, %v12465_v38  ;;  %v12468_v54 = vand.u32 4294901760, %v8318_v42  ;;  %v8347_v21 = vsub.f32 %v8183_v26, %v8204_v32  ;;  %v8350_v57 = vand.u32 4294901760, %v8312_v13  ;;  %v8364_v26 = vld [vmem:[%s12462_s3 + $0xa0] sm:$0xff] }
  0x25   : > { %12945 = vst [vmem:[#allocation15_spill] sm:$0xff] %v8333_v52  ;;  %436 = vmatprep.subr.mxu0 %v8229_v41  ;;  %593 = vmatprep.subr.mxu1 %v592_v14  ;;  %v598_v58 = vand.u32 4294901760, %v597_v43  ;;  %v609_v62 = vsub.f32 %v8304_v8, %v12466_v47  ;;  %v12471_v63 = vand.u32 4294901760, %v8330_v48  ;;  %v8359_v6 = vsub.f32 %v8188_v27, %v8213_v36  ;;  %v8377_v27 = vld [vmem:[%s12462_s3 + $0x80] sm:$0xff]  ;;  %v8545_v36 = vld [vmem:[%s12462_s3 + $0x4b8] sm:$0xff] }
  0x26   : > { %12946 = vst [vmem:[#allocation16_spill] sm:$0xff] %v8350_v57  ;;  %438 = vmatpush1.msra.mxu0 %v8253_v50  ;;  %v604_v38 = vand.u32 4294901760, %v603_v53  ;;  %v615_v14 = vsub.f32 %v8318_v42, %v12468_v54  ;;  %v12473_v43 = vand.u32 4294901760, %v8347_v21  ;;  %v8372_v47 = vand.u32 4294901760, %v8338_v20 }
  0x27   : > { %599 = vmatpush1.msra.mxu1 %v598_v58  ;;  %440 = vmatprep.subr.mxu0 %v8278_v60  ;;  %v610_v7 = vand.u32 4294901760, %v609_v62  ;;  %v621_v53 = vsub.f32 %v8330_v48, %v12471_v63  ;;  %v12476_v54 = vand.u32 4294901760, %v8359_v6  ;;  %v8386_v55 = vsub.f32 %v8193_v28, %v8229_v41  ;;  %v8529_v41 = vld [vmem:[%s12462_s3 + $0x4d8] sm:$0xff] }
  0x28   : > { %12947 = vst [vmem:[#allocation17_spill] sm:$0xff] %v8372_v47  ;;  %605 = vmatprep.subr.mxu1 %v604_v38  ;;  %442 = vmatpush1.msra.mxu0 %v8293_v1  ;;  %v616_v58 = vand.u32 4294901760, %v615_v14  ;;  %v627_v62 = vsub.f32 %v8347_v21, %v12473_v43  ;;  %v8398_v63 = vand.u32 4294901760, %v8364_v26  ;;  %v8402_v28 = vsub.f32 %v8218_v37, %v8253_v50  ;;  %v8420_v37 = vld [vmem:[%s12462_s3 + $0x50] sm:$0xff] }
  0x29   : > { %611 = vmatpush1.msra.mxu1 %v610_v7  ;;  %444 = vmatprep.subr.mxu0 %v8307_v12  ;;  %v622_v38 = vand.u32 4294901760, %v621_v53  ;;  %v633_v14 = vsub.f32 %v8359_v6, %v12476_v54  ;;  %v12481_v43 = vand.u32 4294901760, %v8386_v55  ;;  %v8415_v39 = vand.u32 4294901760, %v8377_v27 }
  0x2a   : > { %12948 = vst [vmem:[#allocation18_spill] sm:$0xff] %v8398_v63  ;;  %617 = vmatprep.subr.mxu1 %v616_v58  ;;  %446 = vmatpush1.msra.mxu0 %v8321_v19  ;;  %v628_v7 = vand.u32 4294901760, %v627_v62  ;;  %v12482_v53 = vand.u32 4294901760, %v8402_v28  ;;  %v8426_v34 = vsub.f32 %v8245_v46, %v8278_v60  ;;  %v8429_v54 = vand.u32 4294901760, %v8391_v49 }
  0x2b   : > { %12949 = vst [vmem:[#allocation19_spill] sm:$0xff] %v8415_v39  ;;  %623 = vmatpush1.msra.mxu1 %v622_v38  ;;  %448 = vmatprep.subr.mxu0 %v8333_v52  ;;  %v634_v58 = vand.u32 4294901760, %v633_v14  ;;  %v639_v62 = vsub.f32 %v8386_v55, %v12481_v43  ;;  %v8442_v46 = vsub.f32 %v8258_v51, %v8293_v1  ;;  %v8445_v29 = vand.u32 4294901760, %v8407_v44  ;;  %v8462_v51 = vld [vmem:[%s12462_s3 + $0x28] sm:$0xff] }
  0x2c   : > { %12950 = vst [vmem:[#allocation20_spill] sm:$0xff] %v8429_v54  ;;  %629 = vmatprep.subr.mxu1 %v628_v7  ;;  %450 = vmatpush1.msra.mxu0 %v8350_v57  ;;  %v645_v38 = vsub.f32 %v8402_v28, %v12482_v53  ;;  %v8454_v60 = vsub.f32 %v8268_v56, %v8307_v12  ;;  %v8457_v43 = vand.u32 4294901760, %v8420_v37  ;;  %v8471_v56 = vand.u32 4294901760, %v8434_v33  ;;  %v8476_v12 = vld [vmem:[%s12462_s3 + $0x8] sm:$0xff] }
  0x2d   : > { %12951 = vst [vmem:[#allocation21_spill] sm:$0xff] %v8445_v29  ;;  %635 = vmatpush1.msra.mxu1 %v634_v58  ;;  %452 = vmatprep.subr.mxu0 %v8372_v47  ;;  %v640_v7 = vand.u32 4294901760, %v639_v62  ;;  %v8468_v14 = vsub.f32 %v8283_v61, %v8321_v19  ;;  %v12955_v1 = vand.u32 4294901760, %v8426_v34  ;;  %v8485_v61 = vsub.f32 %v8298_v2, %v8333_v52  ;;  %v8502_v2 = vld [vmem:[%s12462_s3] sm:$0xff] }
  0x2e   : > { %12952 = vst [vmem:[#allocation22_spill] sm:$0xff] %v8457_v43  ;;  %12954 = vst [vmem:[#allocation24_spill] sm:$0xff] %v8471_v56  ;;  %454 = vmatpush1.msra.mxu0 %v8398_v63  ;;  %v646_v58 = vand.u32 4294901760, %v645_v38  ;;  %v12499_v53 = vand.u32 4294901760, %v8454_v60  ;;  %v12957_v19 = vand.u32 4294901760, %v8442_v46  ;;  %v8493_v38 = vand.u32 4294901760, %v8462_v51 }
  0x2f   : > { %12953 = vst [vmem:[#allocation23_spill] sm:$0xff] %v8468_v14  ;;  %v651_v62 = vsub.f32 %v8426_v34, %v12955_v1  ;;  %12956 = vst [vmem:[#allocation25_spill] sm:$0xff] %v8485_v61  ;;  %641 = vmatprep.subr.mxu1 %v640_v7  ;;  %456 = vmatprep.subr.mxu0 %v8415_v39  ;;  %v8497_v1 = vsub.f32 %v8312_v13, %v8350_v57  ;;  %v8510_v52 = vand.u32 4294901760, %v8476_v12  ;;  %v8515_v13 = vld [vmem:[%s12462_s3 + $0x4e0] sm:$0xff]  ;;  %vm3863_vm1 = vcmask 547840  }
  0x30   : > { %v657_v50 = vsub.f32 %v8442_v46, %v12957_v19  ;;  %12958 = vst [vmem:[#allocation26_spill] sm:$0xff] %v8493_v38  ;;  %647 = vmatpush1.msra.mxu1 %v646_v58  ;;  %458 = vmatpush1.msra.mxu0 %v8429_v54  ;;  %v663_v19 = vsub.f32 %v8454_v60, %v12499_v53  ;;  %v12961_v58 = vand.u32 4294901760, %v8468_v14  ;;  %vm3865_vm2 = vcmask 826368  }
  0x31   : > { %12959 = vst [vmem:[#allocation27_spill] sm:$0xff] %v8497_v1  ;;  %v652_v7 = vand.u32 4294901760, %v651_v62  ;;  %12960 = vst [vmem:[#allocation28_spill] sm:$0xff] %v8510_v52  ;;  %460 = vmatprep.subr.mxu0 %v8445_v29  ;;  %v8524_v53 = vsub.f32 %v8338_v20, %v8372_v47  ;;  %v8540_v20 = vsub.f32 %v8364_v26, %v8398_v63  ;;  %v8558_v26 = vld [vmem:[%s12462_s3 + $0x4b0] sm:$0xff]  ;;  %vm3964_vm3 = vcmask 752640  }
  0x32   : > { %v658_v57 = vand.u32 4294901760, %v657_v50  ;;  %v669_v62 = vsub.f32 %v8468_v14, %v12961_v58  ;;  %v664_v32 = vand.u32 4294901760, %v663_v19  ;;  %462 = vmatpush1.msra.mxu0 %v8457_v43  ;;  %v12963_v50 = vand.u32 4294901760, %v8485_v61  ;;  %v8572_v47 = vld [vmem:[%s12462_s3 + $0x490] sm:$0xff] }
  0x33   : > { %12962 = vst [vmem:[#allocation29_spill] sm:$0xff] %v8524_v53  ;;  %653 = vmatprep.subr.mxu1 %v652_v7  ;;  %v8536_v58 = vand.u32 4294901760, %v8502_v2  ;;  %12965 = vst [vmem:[#allocation31_spill] sm:$0xff] %v8540_v20  ;;  %464 = vmatprep.subr.mxu0 %v8471_v56  ;;  %v12966_v19 = vand.u32 4294901760, %v8497_v1  ;;  %v8592_v14 = vsub.f32 %v8407_v44, %v8445_v29  ;;  %v8609_v44 = vand.u32 4294901760, %v8572_v47  ;;  %v8614_v29 = vld [vmem:[%s12462_s3 + $0x468] sm:$0xff] }
  0x34   : > { %v675_v30 = vsub.f32 %v8485_v61, %v12963_v50  ;;  %659 = vmatpush1.msra.mxu1 %v658_v57  ;;  %v670_v7 = vand.u32 4294901760, %v669_v62  ;;  %v8553_v61 = vand.u32 4294901760, %v8515_v13  ;;  %466 = vmatpush1.msra.mxu0 %v8493_v38  ;;  %v8564_v62 = vsub.f32 %v8377_v27, %v8415_v39 }
  0x35   : > { %12964 = vst [vmem:[#allocation30_spill] sm:$0xff] %v8536_v58  ;;  %v681_v50 = vsub.f32 %v8497_v1, %v12966_v19  ;;  %665 = vmatprep.subr.mxu1 %v664_v32  ;;  %v8567_v19 = vand.u32 4294901760, %v8529_v41  ;;  %468 = vmatprep.subr.mxu0 %v8510_v52  ;;  %v8580_v27 = vsub.f32 %v8391_v49, %v8429_v54  ;;  %v8583_v57 = vand.u32 4294901760, %v8545_v36  ;;  %v8600_v49 = vld [vmem:[%s12462_s3 + $0x488] sm:$0xff] }
  0x36   : > { %12967 = vst [vmem:[#allocation32_spill] sm:$0xff] %v8553_v61  ;;  %v676_v63 = vand.u32 4294901760, %v675_v30  ;;  %12968 = vst [vmem:[#allocation33_spill] sm:$0xff] %v8564_v62  ;;  %671 = vmatpush1.msra.mxu1 %v670_v7  ;;  %v12970_v30 = vand.u32 4294901760, %v8524_v53  ;;  %470 = vmatpush1.msra.mxu0 %v8536_v58  ;;  %v12973_v39 = vand.u32 4294901760, %v8540_v20  ;;  %vm3944_vm4 = vcmask 760832  }
  0x37   : > { %12969 = vst [vmem:[#allocation34_spill] sm:$0xff] %v8567_v19  ;;  %v682_v1 = vand.u32 4294901760, %v681_v50  ;;  %12971 = vst [vmem:[#allocation35_spill] sm:$0xff] %v8580_v27  ;;  %472 = vmatprep.subr.mxu0 %v8553_v61  ;;  %v8606_v50 = vsub.f32 %v8420_v37, %v8457_v43  ;;  %v8623_v37 = vsub.f32 %v8434_v33, %v8471_v56  ;;  %v12980_v43 = vand.u32 4294901760, %v8580_v27  ;;  %v8640_v33 = vld [vmem:[%s12462_s3 + $0x460] sm:$0xff] }
  0x38   : > { %v687_v32 = vsub.f32 %v8524_v53, %v12970_v30  ;;  %12972 = vst [vmem:[#allocation36_spill] sm:$0xff] %v8583_v57  ;;  %677 = vmatprep.subr.mxu1 %v676_v63  ;;  %v693_v7 = vsub.f32 %v8540_v20, %v12973_v39  ;;  %12974 = vst [vmem:[#allocation37_spill] sm:$0xff] %v8592_v14  ;;  %v8595_v30 = vand.u32 4294901760, %v8558_v26  ;;  %474 = vmatpush2.msra.mxu0 %v8567_v19  ;;  %vm3904_vm5 = vcmask 1031168  }
  0x39   : > { %683 = vmatpush1.msra.mxu1 %v682_v1  ;;  %12976 = vst [vmem:[#allocation39_spill] sm:$0xff] %v8606_v50  ;;  %12977 = vst [vmem:[#allocation40_spill] sm:$0xff] %v8609_v44  ;;  %v12978_v1 = vand.u32 4294901760, %v8564_v62  ;;  %v12530_v39 = vand.u32 4294901760, %v8592_v14  ;;  %v705_v20 = vsub.f32 %v8580_v27, %v12980_v43  ;;  %476 = vmatprep.subr.mxu0 %v8583_v57  ;;  %v8631_v53 = vand.u32 4294901760, %v8600_v49 }
  0x3a   : > { %12975 = vst [vmem:[#allocation38_spill] sm:$0xff] %v8595_v30  ;;  %v688_v63 = vand.u32 4294901760, %v687_v32  ;;  %v694_v54 = vand.u32 4294901760, %v693_v7  ;;  %12979 = vst [vmem:[#allocation41_spill] sm:$0xff] %v8623_v37  ;;  %478 = vmatpush2.msra.mxu0 %v8595_v30  ;;  %v8648_v56 = vand.u32 4294901760, %v8614_v29  ;;  %v8662_v7 = vsub.f32 %v8476_v12, %v8510_v52  ;;  %v8710_v52 = vld [vmem:[%s12462_s3 + $0x3f0] sm:$0xff] }
  0x3b   : > { %v699_v32 = vsub.f32 %v8564_v62, %v12978_v1  ;;  %12981 = vst [vmem:[#allocation42_spill] sm:$0xff] %v8631_v53  ;;  %v8635_v1 = vsub.f32 %v8462_v51, %v8493_v38  ;;  %v711_v43 = vsub.f32 %v8592_v14, %v12530_v39  ;;  %v8653_v51 = vld [vmem:[%s12462_s3 + $0x440] sm:$0xff]  ;;  %v706_v38 = vand.u32 4294901760, %v705_v20  ;;  %480 = vmatprep.subr.mxu0 %v8609_v44  ;;  %v8667_v14 = vld [vmem:[%s12462_s3 + $0x438] sm:$0xff] }
  0x3c   : > { %689 = vmatprep.subr.mxu1 %v688_v63  ;;  %12983 = vst [vmem:[#allocation44_spill] sm:$0xff] %v8648_v56  ;;  %12985 = vst [vmem:[#allocation45_spill] sm:$0xff] %v8662_v7  ;;  %v12986_v20 = vand.u32 4294901760, %v8623_v37  ;;  %482 = vmatpush2.msra.mxu0 %v8631_v53  ;;  %v8678_v12 = vsub.f32 %v8502_v2, %v8536_v58  ;;  %v8683_v39 = vld [vmem:[%s12462_s3 + $0x418] sm:$0xff]  ;;  %v8696_v2 = vld [vmem:[%s12462_s3 + $0x410] sm:$0xff]  ;;  %vm3924_vm6 = vcmask 769024  }
  0x3d   : > { %12982 = vst [vmem:[#allocation43_spill] sm:$0xff] %v8635_v1  ;;  %695 = vmatpush1.msra.mxu1 %v694_v54  ;;  %v700_v63 = vand.u32 4294901760, %v699_v32  ;;  %v12984_v54 = vand.u32 4294901760, %v8606_v50  ;;  %v712_v27 = vand.u32 4294901760, %v711_v43  ;;  %v12989_v43 = vand.u32 4294901760, %v8635_v1  ;;  %484 = vmatprep.subr.mxu0 %v8648_v56 }
  0x3e   : > { %v723_v62 = vsub.f32 %v8623_v37, %v12986_v20  ;;  %12988 = vst [vmem:[#allocation47_spill] sm:$0xff] %v8678_v12  ;;  %v8691_v37 = vand.u32 4294901760, %v8653_v51  ;;  %vm4029_vm7 = vcmask 1043456   ;;  %vm4057_vm8 = vcmask 195584  }
  0x3f   : > { %v717_v32 = vsub.f32 %v8606_v50, %v12984_v54  ;;  %701 = vmatprep.subr.mxu1 %v700_v63  ;;  %v8674_v54 = vand.u32 4294901760, %v8640_v33  ;;  %v729_v20 = vsub.f32 %v8635_v1, %v12989_v43  ;;  %v8705_v43 = vand.u32 4294901760, %v8667_v14 }
  0x40   : > { %707 = vmatpush1.msra.mxu1 %v706_v38  ;;  %12990 = vst [vmem:[#allocation48_spill] sm:$0xff] %v8691_v37  ;;  %v724_v58 = vand.u32 4294901760, %v723_v62  ;;  %v12993_v62 = vand.u32 4294901760, %v8662_v7  ;;  %v8721_v38 = vand.u32 4294901760, %v8683_v39  ;;  %vm3884_vm9 = vcmask 1039360  }
  0x41   : > { %12987 = vst [vmem:[#allocation46_spill] sm:$0xff] %v8674_v54  ;;  %v718_v63 = vand.u32 4294901760, %v717_v32  ;;  %713 = vmatprep.subr.mxu1 %v712_v27  ;;  %486 = vmatpush2.msra.mxu0 %v8674_v54  ;;  %v8702_v32 = vsub.f32 %v8515_v13, %v8553_v61  ;;  %12992 = vst [vmem:[#allocation50_spill] sm:$0xff] %v8705_v43  ;;  %v730_v1 = vand.u32 4294901760, %v729_v20  ;;  %v12996_v61 = vand.u32 4294901760, %v8678_v12 }
  0x42   : > { %v735_v27 = vsub.f32 %v8662_v7, %v12993_v62  ;;  %488 = vmatprep.subr.mxu0 %v8691_v37  ;;  %v8718_v13 = vsub.f32 %v8529_v41, %v8567_v19  ;;  %12995 = vst [vmem:[#allocation52_spill] sm:$0xff] %v8721_v38  ;;  %v8730_v20 = vsub.f32 %v8545_v36, %v8583_v57  ;;  %v8733_v62 = vand.u32 4294901760, %v8696_v2  ;;  %v8738_v41 = vld [vmem:[%s12462_s3 + $0x3e8] sm:$0xff]  ;;  %v8804_v7 = vld [vmem:[%s12462_s3 + $0x398] sm:$0xff] }
  0x43   : > { %12991 = vst [vmem:[#allocation49_spill] sm:$0xff] %v8702_v32  ;;  %719 = vmatpush1.msra.mxu1 %v718_v63  ;;  %v741_v50 = vsub.f32 %v8678_v12, %v12996_v61  ;;  %490 = vmatpush2.msra.mxu0 %v8705_v43  ;;  %v8744_v63 = vsub.f32 %v8558_v26, %v8595_v30  ;;  %v8747_v36 = vand.u32 4294901760, %v8710_v52  ;;  %v8752_v57 = vld [vmem:[%s12462_s3 + $0x3c8] sm:$0xff]  ;;  %vm4004_vm10 = vcmask 482304  }
  0x44   : > { %12994 = vst [vmem:[#allocation51_spill] sm:$0xff] %v8718_v13  ;;  %725 = vmatprep.subr.mxu1 %v724_v58  ;;  %12997 = vst [vmem:[#allocation53_spill] sm:$0xff] %v8730_v20  ;;  %v736_v58 = vand.u32 4294901760, %v735_v27  ;;  %492 = vmatprep.subr.mxu0 %v8721_v38  ;;  %v12565_v61 = vand.u32 4294901760, %v8730_v20  ;;  %v8761_v26 = vsub.f32 %v8572_v47, %v8609_v44  ;;  %v13003_v30 = vand.u32 4294901760, %v8718_v13  ;;  %v8778_v47 = vld [vmem:[%s12462_s3 + $0x3c0] sm:$0xff] }
  0x45   : > { %12998 = vst [vmem:[#allocation54_spill] sm:$0xff] %v8733_v62  ;;  %731 = vmatpush1.msra.mxu1 %v730_v1  ;;  %12999 = vst [vmem:[#allocation55_spill] sm:$0xff] %v8744_v63  ;;  %v742_v19 = vand.u32 4294901760, %v741_v50  ;;  %v13001_v1 = vand.u32 4294901760, %v8702_v32  ;;  %494 = vmatpush2.msra.mxu0 %v8733_v62  ;;  %v8769_v50 = vand.u32 4294901760, %v8738_v41  ;;  %v8785_v44 = vand.u32 4294901760, %v8752_v57 }
  0x46   : > { %13000 = vst [vmem:[#allocation56_spill] sm:$0xff] %v8747_v36  ;;  %13002 = vst [vmem:[#allocation57_spill] sm:$0xff] %v8761_v26  ;;  %737 = vmatprep.subr.mxu1 %v736_v58  ;;  %v753_v12 = vsub.f32 %v8718_v13, %v13003_v30  ;;  %496 = vmatprep.subr.mxu0 %v8747_v36  ;;  %v759_v30 = vsub.f32 %v8730_v20, %v12565_v61  ;;  %v13007_v13 = vand.u32 4294901760, %v8744_v63  ;;  %vm3984_vm11 = vcmask 490496  }
  0x47   : > { %v747_v27 = vsub.f32 %v8702_v32, %v13001_v1  ;;  %13004 = vst [vmem:[#allocation58_spill] sm:$0xff] %v8769_v50  ;;  %v8773_v1 = vsub.f32 %v8600_v49, %v8631_v53  ;;  %743 = vmatpush1.msra.mxu1 %v742_v19  ;;  %13006 = vst [vmem:[#allocation60_spill] sm:$0xff] %v8785_v44  ;;  %v8790_v49 = vld [vmem:[%s12462_s3 + $0x3a0] sm:$0xff]  ;;  %498 = vmatpush2.msra.mxu0 %v8769_v50  ;;  %vm4024_vm12 = vcmask 474112   ;;  %vm7987_vm13 = vmmov 0  }
  0x48   : > { %v754_v53 = vand.u32 4294901760, %v753_v12  ;;  %v765_v19 = vsub.f32 %v8744_v63, %v13007_v13  ;;  %v8799_v61 = vsub.f32 %v8614_v29, %v8648_v56  ;;  %v760_v20 = vand.u32 4294901760, %v759_v30  ;;  %500 = vmatprep.subr.mxu0 %v8785_v44  ;;  %v8846_v56 = vld [vmem:[%s12462_s3 + $0x350] sm:$0xff] }
  0x49   : > { %13005 = vst [vmem:[#allocation59_spill] sm:$0xff] %v8773_v1  ;;  %v748_v58 = vand.u32 4294901760, %v747_v27  ;;  %v13009_v12 = vand.u32 4294901760, %v8761_v26  ;;  %v8811_v13 = vand.u32 4294901760, %v8778_v47  ;;  %v8815_v29 = vsub.f32 %v8640_v33, %v8674_v54  ;;  %v8820_v27 = vld [vmem:[%s12462_s3 + $0x378] sm:$0xff]  ;;  %v8832_v33 = vld [vmem:[%s12462_s3 + $0x370] sm:$0xff] }
  0x4a   : > { %13008 = vst [vmem:[#allocation61_spill] sm:$0xff] %v8799_v61  ;;  %v13012_v30 = vand.u32 4294901760, %v8773_v1  ;;  %vm7213_vm14 = vcmask 261120   ;;  %vm7168_vm15 = vcmask 728064  }
  0x4b   : > { %749 = vmatprep.subr.mxu1 %v748_v58  ;;  %v771_v32 = vsub.f32 %v8761_v26, %v13009_v12  ;;  %13010 = vst [vmem:[#allocation62_spill] sm:$0xff] %v8811_v13  ;;  %13011 = vst [vmem:[#allocation63_spill] sm:$0xff] %v8815_v29  ;;  %v766_v58 = vand.u32 4294901760, %v765_v19  ;;  %v8827_v26 = vand.u32 4294901760, %v8790_v49  ;;  %502 = vmatpush2.msra.mxu0 %v8811_v13 }
  0x4c   : > { %755 = vmatpush2.msra.mxu1 %v754_v53  ;;  %v777_v12 = vsub.f32 %v8773_v1, %v13012_v30  ;;  %v8838_v19 = vsub.f32 %v8653_v51, %v8691_v37  ;;  %v8841_v30 = vand.u32 4294901760, %v8804_v7  ;;  %v8854_v51 = vsub.f32 %v8667_v14, %v8705_v43  ;;  %v8874_v14 = vld [vmem:[%s12462_s3 + $0x348] sm:$0xff] }
  0x4d   : > { %13013 = vst [vmem:[#allocation64_spill] sm:$0xff] %v8827_v26  ;;  %761 = vmatprep.subr.mxu1 %v760_v20  ;;  %v772_v54 = vand.u32 4294901760, %v771_v32  ;;  %v13016_v32 = vand.u32 4294901760, %v8799_v61  ;;  %504 = vmatprep.subr.mxu0 %v8827_v26  ;;  %v8857_v53 = vand.u32 4294901760, %v8820_v27  ;;  %v13019_v37 = vand.u32 4294901760, %v8815_v29 }
  0x4e   : > { %13014 = vst [vmem:[#allocation65_spill] sm:$0xff] %v8838_v19  ;;  %13015 = vst [vmem:[#allocation66_spill] sm:$0xff] %v8841_v30  ;;  %767 = vmatpush2.msra.mxu1 %v766_v58  ;;  %v778_v20 = vand.u32 4294901760, %v777_v12  ;;  %506 = vmatpush2.msra.mxu0 %v8841_v30  ;;  %v8866_v12 = vsub.f32 %v8683_v39, %v8721_v38  ;;  %v8881_v58 = vsub.f32 %v8696_v2, %v8733_v62  ;;  %v8889_v38 = vld [vmem:[%s12462_s3 + $0x328] sm:$0xff] }
  0x4f   : > { %v783_v1 = vsub.f32 %v8799_v61, %v13016_v32  ;;  %13017 = vst [vmem:[#allocation67_spill] sm:$0xff] %v8854_v51  ;;  %13018 = vst [vmem:[#allocation68_spill] sm:$0xff] %v8857_v53  ;;  %773 = vmatprep.subr.mxu1 %v772_v54  ;;  %v789_v63 = vsub.f32 %v8815_v29, %v13019_v37  ;;  %v8869_v32 = vand.u32 4294901760, %v8832_v33  ;;  %508 = vmatprep.subr.mxu0 %v8857_v53 }
  0x50   : > { %13020 = vst [vmem:[#allocation69_spill] sm:$0xff] %v8866_v12  ;;  %779 = vmatpush2.msra.mxu1 %v778_v20  ;;  %13022 = vst [vmem:[#allocation71_spill] sm:$0xff] %v8881_v58  ;;  %v8884_v39 = vand.u32 4294901760, %v8846_v56  ;;  %v13024_v20 = vand.u32 4294901760, %v8838_v19  ;;  %v8898_v2 = vsub.f32 %v8710_v52, %v8747_v36  ;;  %v13026_v62 = vand.u32 4294901760, %v8854_v51  ;;  %v8915_v52 = vld [vmem:[%s12462_s3 + $0x320] sm:$0xff] }
  0x51   : > { %13021 = vst [vmem:[#allocation70_spill] sm:$0xff] %v8869_v32  ;;  %v784_v54 = vand.u32 4294901760, %v783_v1  ;;  %v790_v43 = vand.u32 4294901760, %v789_v63  ;;  %510 = vmatpush2.msra.mxu0 %v8869_v32  ;;  %v8910_v37 = vsub.f32 %v8738_v41, %v8769_v50  ;;  %v8927_v41 = vld [vmem:[%s12462_s3 + $0x300] sm:$0xff]  ;;  %v8941_v36 = vsub.f32 %v8752_v57, %v8785_v44  ;;  %v8988_v44 = vld [vmem:[%s12462_s3 + $0x2b0] sm:$0xff] }
  0x52   : > { %13023 = vst [vmem:[#allocation72_spill] sm:$0xff] %v8884_v39  ;;  %v795_v1 = vsub.f32 %v8838_v19, %v13024_v20  ;;  %13025 = vst [vmem:[#allocation73_spill] sm:$0xff] %v8898_v2  ;;  %v801_v29 = vsub.f32 %v8854_v51, %v13026_v62  ;;  %512 = vmatprep.subr.mxu0 %v8884_v39  ;;  %v8906_v20 = vand.u32 4294901760, %v8874_v14  ;;  %v13029_v62 = vand.u32 4294901760, %v8866_v12 }
  0x53   : > { %785 = vmatprep.subr.mxu1 %v784_v54  ;;  %13028 = vst [vmem:[#allocation75_spill] sm:$0xff] %v8910_v37  ;;  %v8922_v51 = vand.u32 4294901760, %v8889_v38  ;;  %13032 = vst [vmem:[#allocation77_spill] sm:$0xff] %v8941_v36  ;;  %v8957_v57 = vsub.f32 %v8778_v47, %v8811_v13  ;;  %v8974_v47 = vld [vmem:[%s12462_s3 + $0x2d0] sm:$0xff] }
  0x54   : > { %13027 = vst [vmem:[#allocation74_spill] sm:$0xff] %v8906_v20  ;;  %791 = vmatpush2.msra.mxu1 %v790_v43  ;;  %v796_v54 = vand.u32 4294901760, %v795_v1  ;;  %v807_v63 = vsub.f32 %v8866_v12, %v13029_v62  ;;  %v802_v50 = vand.u32 4294901760, %v801_v29  ;;  %v13031_v43 = vand.u32 4294901760, %v8881_v58  ;;  %514 = vmatpush2.msra.mxu0 %v8906_v20  ;;  %v8946_v12 = vld [vmem:[%s12462_s3 + $0x2f8] sm:$0xff] }
  0x55   : > { %13030 = vst [vmem:[#allocation76_spill] sm:$0xff] %v8922_v51  ;;  %v13033_v29 = vand.u32 4294901760, %v8898_v2  ;;  %516 = vmatprep.subr.mxu0 %v8922_v51  ;;  %13035 = vst [vmem:[#allocation79_spill] sm:$0xff] %v8957_v57  ;;  %v8962_v62 = vld [vmem:[%s12462_s3 + $0x2d8] sm:$0xff] }
  0x56   : > { %v813_v1 = vsub.f32 %v8881_v58, %v13031_v43  ;;  %797 = vmatprep.subr.mxu1 %v796_v54  ;;  %v808_v19 = vand.u32 4294901760, %v807_v63  ;;  %v8953_v43 = vand.u32 4294901760, %v8915_v52  ;;  %v13036_v54 = vand.u32 4294901760, %v8910_v37 }
  0x57   : > { %v819_v61 = vsub.f32 %v8898_v2, %v13033_v29  ;;  %803 = vmatpush2.msra.mxu1 %v802_v50  ;;  %v8969_v2 = vand.u32 4294901760, %v8927_v41  ;;  %v9000_v50 = vand.u32 4294901760, %v8962_v62 }
  0x58   : > { %13034 = vst [vmem:[#allocation78_spill] sm:$0xff] %v8953_v43  ;;  %v814_v63 = vand.u32 4294901760, %v813_v1  ;;  %v825_v29 = vsub.f32 %v8910_v37, %v13036_v54  ;;  %809 = vmatprep.subr.mxu1 %v808_v19  ;;  %518 = vmatpush2.msra.mxu0 %v8953_v43  ;;  %v8980_v1 = vsub.f32 %v8790_v49, %v8827_v26  ;;  %v8983_v54 = vand.u32 4294901760, %v8946_v12 }
  0x59   : > { %13037 = vst [vmem:[#allocation80_spill] sm:$0xff] %v8969_v2  ;;  %v820_v13 = vand.u32 4294901760, %v819_v61  ;;  %v13039_v61 = vand.u32 4294901760, %v8941_v36  ;;  %520 = vmatprep.subr.mxu0 %v8969_v2  ;;  %v8997_v49 = vsub.f32 %v8804_v7, %v8841_v30  ;;  %v13041_v26 = vand.u32 4294901760, %v8957_v57  ;;  %v9017_v7 = vld [vmem:[%s12462_s3 + $0x2a8] sm:$0xff] }
  0x5a   : > { %13038 = vst [vmem:[#allocation81_spill] sm:$0xff] %v8980_v1  ;;  %815 = vmatpush2.msra.mxu1 %v814_v63  ;;  %v826_v19 = vand.u32 4294901760, %v825_v29  ;;  %522 = vmatpush2.msra.mxu0 %v8983_v54  ;;  %v9009_v29 = vsub.f32 %v8820_v27, %v8857_v53  ;;  %v9023_v63 = vsub.f32 %v8832_v33, %v8869_v32  ;;  %v9026_v27 = vand.u32 4294901760, %v8988_v44  ;;  %v9031_v53 = vld [vmem:[%s12462_s3 + $0x288] sm:$0xff] }
  0x5b   : > { %v831_v37 = vsub.f32 %v8941_v36, %v13039_v61  ;;  %13040 = vst [vmem:[#allocation82_spill] sm:$0xff] %v8997_v49  ;;  %821 = vmatprep.subr.mxu1 %v820_v13  ;;  %v837_v58 = vsub.f32 %v8957_v57, %v13041_v26  ;;  %v9012_v61 = vand.u32 4294901760, %v8974_v47  ;;  %524 = vmatprep.subr.mxu0 %v9000_v50  ;;  %v13048_v30 = vand.u32 4294901760, %v8997_v49 }
  0x5c   : > { %13042 = vst [vmem:[#allocation83_spill] sm:$0xff] %v9009_v29  ;;  %827 = vmatpush2.msra.mxu1 %v826_v19  ;;  %13044 = vst [vmem:[#allocation85_spill] sm:$0xff] %v9023_v63  ;;  %v13046_v19 = vand.u32 4294901760, %v8980_v1  ;;  %v12632_v33 = vand.u32 4294901760, %v9009_v29  ;;  %v9043_v32 = vsub.f32 %v8846_v56, %v8884_v39  ;;  %v9060_v56 = vld [vmem:[%s12462_s3 + $0x280] sm:$0xff]  ;;  %v9067_v39 = vand.u32 4294901760, %v9031_v53 }
  0x5d   : > { %13043 = vst [vmem:[#allocation84_spill] sm:$0xff] %v9012_v61  ;;  %v832_v13 = vand.u32 4294901760, %v831_v37  ;;  %13045 = vst [vmem:[#allocation86_spill] sm:$0xff] %v9026_v27  ;;  %v838_v37 = vand.u32 4294901760, %v837_v58  ;;  %526 = vmatpush2.msra.mxu0 %v9012_v61  ;;  %v849_v57 = vsub.f32 %v8997_v49, %v13048_v30  ;;  %v9051_v58 = vand.u32 4294901760, %v9017_v7  ;;  %v243_v49 = vld [vmem:[%s236_s8] sm:$0xff] }
  0x5e   : > { %v843_v26 = vsub.f32 %v8980_v1, %v13046_v19  ;;  %13047 = vst [vmem:[#allocation87_spill] sm:$0xff] %v9043_v32  ;;  %528 = vmatprep.subr.mxu0 %v9026_v27  ;;  %v9055_v19 = vsub.f32 %v8874_v14, %v8906_v20  ;;  %v855_v30 = vsub.f32 %v9009_v29, %v12632_v33  ;;  %v12637_v36 = vand.u32 4294901760, %v9043_v32  ;;  %s8000_s8 = smov 5  }
  0x5f   : > { %833 = vmatprep.subr.mxu1 %v832_v13  ;;  %13049 = vst [vmem:[#allocation88_spill] sm:$0xff] %v9051_v58  ;;  %v850_v1 = vand.u32 4294901760, %v849_v57  ;;  %v13050_v14 = vand.u32 4294901760, %v9023_v63  ;;  %530 = vmatpush2.msra.mxu0 %v9051_v58  ;;  %v9083_v57 = vand.u32 4294901760, %v9060_v56 }
  0x60   : > { %839 = vmatpush2.msra.mxu1 %v838_v37  ;;  %v844_v13 = vand.u32 4294901760, %v843_v26  ;;  %v9076_v26 = vsub.f32 %v8889_v38, %v8922_v51  ;;  %v856_v33 = vand.u32 4294901760, %v855_v30  ;;  %v867_v29 = vsub.f32 %v9043_v32, %v12637_v36  ;;  %532 = vmatprep.subr.mxu0 %v9067_v39 }
  0x61   : > { %v861_v20 = vsub.f32 %v9023_v63, %v13050_v14  ;;  %v9087_v14 = vsub.f32 %v8915_v52, %v8953_v43  ;;  %v13051_v38 = vand.u32 4294901760, %v9055_v19  ;;  %v405_v51 = vcombine.high %v243_v49, %v243_v49  ;;  %534 = vmatpush2.msra.mxu0 %v9083_v57 }
  0x62   : > { %845 = vmatprep.subr.mxu1 %v844_v13  ;;  %v12642_v30 = vand.u32 4294901760, %v9076_v26  ;;  %v868_v36 = vand.u32 4294901760, %v867_v29  ;;  %v9095_v63 = vand.u32 4294901760, %v243_v49  ;;  %v9099_v52 = vsub.f32 %v8927_v41, %v8969_v2  ;;  %947 = vmatprep.subr.mxu0 %v8150_v18 }
  0x63   : > { %851 = vmatpush2.msra.mxu1 %v850_v1  ;;  %v862_v37 = vand.u32 4294901760, %v861_v20  ;;  %v873_v13 = vsub.f32 %v9055_v19, %v13051_v38  ;;  %v12644_v32 = vand.u32 4294901760, %v9087_v14  ;;  %v9104_v38 = vand.u32 4294901760, %v405_v51 }
  0x64   : > { %857 = vmatprep.subr.mxu1 %v856_v33  ;;  %13052 = vst [vmem:[#allocation89_spill] sm:$0xff] %v9095_v63  ;;  %v879_v1 = vsub.f32 %v9076_v26, %v12642_v30  ;;  %v9109_v29 = vsub.f32 %v8946_v12, %v8983_v54  ;;  %v12645_v33 = vand.u32 4294901760, %v9099_v52  ;;  %v9128_v12 = vsub.f32 %v8974_v47, %v9012_v61 }
  0x65   : > { %863 = vmatpush2.msra.mxu1 %v862_v37  ;;  %v874_v20 = vand.u32 4294901760, %v873_v13  ;;  %13053 = vst [vmem:[#allocation90_spill] sm:$0xff] %v9104_v38  ;;  %v885_v41 = vsub.f32 %v9087_v14, %v12644_v32  ;;  %v9116_v37 = vsub.f32 %v243_v49, %v9095_v63  ;;  %v9120_v13 = vsub.f32 %v8962_v62, %v9000_v50 }
  0x66   : > { %869 = vmatprep.subr.mxu1 %v868_v36  ;;  %v880_v30 = vand.u32 4294901760, %v879_v1  ;;  %v9123_v18 = vsub.f32 %v405_v51, %v9104_v38  ;;  %v12650_v36 = vand.u32 4294901760, %v9109_v29  ;;  %937 = vmatprep.mubr.f32.mxu1 %v9104_v38  ;;  %v891_v49 = vsub.f32 %v9099_v52, %v12645_v33 }
  0x67   : > { %13054 = vst [vmem:[#allocation91_spill] sm:$0xff] %v9116_v37  ;;  %875 = vmatpush2.msra.mxu1 %v874_v20  ;;  %v886_v32 = vand.u32 4294901760, %v885_v41  ;;  %v9135_v62 = vand.u32 4294901760, %v9116_v37  ;;  %v12655_v20 = vand.u32 4294901760, %v9120_v13  ;;  %v9147_v41 = vsub.f32 %v8988_v44, %v9026_v27 }
  0x68   : > { %13055 = vst [vmem:[#allocation92_spill] sm:$0xff] %v9123_v18  ;;  %881 = vmatprep.subr.mxu1 %v880_v30  ;;  %v9139_v51 = vand.u32 4294901760, %v9123_v18  ;;  %v897_v47 = vsub.f32 %v9109_v29, %v12650_v36  ;;  %v892_v33 = vand.u32 4294901760, %v891_v49  ;;  %v9156_v61 = vsub.f32 %v9017_v7, %v9051_v58 }
  0x69   : > { %13056 = vst [vmem:[#allocation93_spill] sm:$0xff] %v9135_v62  ;;  %887 = vmatpush2.msra.mxu1 %v886_v32  ;;  %v544_v38 = vsub.f32 %v9116_v37, %v9135_v62  ;;  %v903_v30 = vsub.f32 %v9120_v13, %v12655_v20  ;;  %v13058_v44 = vand.u32 4294901760, %v9128_v12  ;;  %v12661_v49 = vand.u32 4294901760, %v9147_v41 }
  0x6a   : > { %13057 = vst [vmem:[#allocation94_spill] sm:$0xff] %v9139_v51  ;;  %v538_v36 = vsub.f32 %v9123_v18, %v9139_v51  ;;  %v898_v1 = vand.u32 4294901760, %v897_v47  ;;  %893 = vmatprep.subr.mxu1 %v892_v33  ;;  %v12660_v20 = vand.u32 4294901760, %v9156_v61  ;;  %v9169_v7 = vsub.f32 %v9031_v53, %v9067_v39 }
  0x6b   : > { %v909_v32 = vsub.f32 %v9128_v12, %v13058_v44  ;;  %v9164_v62 = vand.u32 4294901760, %v544_v38  ;;  %v904_v27 = vand.u32 4294901760, %v903_v30  ;;  %v915_v44 = vsub.f32 %v9147_v41, %v12661_v49  ;;  %v13073_v49 = vld [vmem:[#allocation33_spill] sm:$0xff] }
  0x6c   : > { %v9171_v58 = vand.u32 4294901760, %v538_v36  ;;  %899 = vmatpush2.msra.mxu1 %v898_v1  ;;  %v9178_v33 = vsub.f32 %v9060_v56, %v9083_v57  ;;  %v921_v38 = vsub.f32 %v9156_v61, %v12660_v20  ;;  %v12659_v53 = vand.u32 4294901760, %v9169_v7  ;;  %v13072_v20 = vld [vmem:[#allocation11_spill] sm:$0xff] }
  0x6d   : > { %13059 = vst [vmem:[#allocation95_spill] sm:$0xff] %v9164_v62  ;;  %v910_v47 = vand.u32 4294901760, %v909_v32  ;;  %905 = vmatprep.subr.mxu1 %v904_v27  ;;  %v916_v36 = vand.u32 4294901760, %v915_v44  ;;  %v13062_v44 = vld [vmem:[#allocation6_spill] sm:$0xff] }
  0x6e   : > { %13060 = vst [vmem:[#allocation96_spill] sm:$0xff] %v9171_v58  ;;  %13061 = vst [vmem:[#allocation97_spill] sm:$0xff] %v9178_v33  ;;  %540 = vmatprep.mubr.f32.mxu0 %v9171_v58  ;;  %v12658_v1 = vand.u32 4294901760, %v9178_v33  ;;  %v922_v30 = vand.u32 4294901760, %v921_v38  ;;  %v927_v56 = vsub.f32 %v9169_v7, %v12659_v53  ;;  %v13063_v38 = vld [vmem:[#allocation23_spill] sm:$0xff]  ;;  %v13076_v58 = vld [vmem:[#allocation13_spill] sm:$0xff] }
  0x6f   : > { %911 = vmatpush2.msra.mxu1 %v910_v47  ;;  %546 = vmatmul.mubr.f32.vlgmr.msra.gmra.mxu0 %v9164_v62  ;;  %v13071_v53 = vld [vmem:[#allocation31_spill] sm:$0xff] }
  0x70   : > { %950 = vmatpush1.msra.mxu0 %v8172_v23  ;;  %917 = vmatprep.subr.mxu1 %v916_v36  ;;  %v933_v27 = vsub.f32 %v9178_v33, %v12658_v1  ;;  %v928_v32 = vand.u32 4294901760, %v927_v56  ;;  %v13064_v36 = vld [vmem:[#allocation7_spill] sm:$0xff]  ;;  %v13066_v56 = vld [vmem:[#allocation8_spill] sm:$0xff]  ;;  %v13070_v1 = vld [vmem:[#allocation10_spill] sm:$0xff] }
  0x71   : > { %953 = vmatprep.subr.mxu0 %v8178_v25  ;;  %923 = vmatpush2.msra.mxu1 %v922_v30  ;;  %v13065_v30 = vld [vmem:[#allocation25_spill] sm:$0xff]  ;;  %v13075_v62 = vld [vmem:[#allocation35_spill] sm:$0xff] }
  0x72   : > { %956 = vmatpush1.msra.mxu0 %v8201_v31  ;;  %v934_v47 = vand.u32 4294901760, %v933_v27  ;;  %1139 = vmatprep.mubr.f32.mxu0 %v9123_v18  ;;  %v13067_v27 = vld [vmem:[#allocation27_spill] sm:$0xff]  ;;  %v13074_v18 = vld [vmem:[#allocation12_spill] sm:$0xff] }
  0x73   : > { %959 = vmatprep.subr.mxu0 %v8210_v35  ;;  %929 = vmatprep.subr.mxu1 %v928_v32  ;;  %v13068_v32 = vld [vmem:[#allocation9_spill] sm:$0xff] }
  0x74   : > { %962 = vmatpush1.msra.mxu0 %v8226_v40  ;;  %935 = vmatpush2.msra.mxu1 %v934_v47  ;;  %v13069_v47 = vld [vmem:[#allocation29_spill] sm:$0xff] }
  0x75   : > { %965 = vmatprep.subr.mxu0 %v8240_v45  ;;  %939 = vmatmul.mubr.f32.vlgmr.msra.gmra.mxu1 %v9095_v63  ;;  %v13077_v63 = vld [vmem:[#allocation37_spill] sm:$0xff] }
  0x76   : > { %968 = vmatpush1.msra.mxu0 %v8275_v59  ;;  %1149 = vmatprep.subr.mxu1 %v8112_v3 }
  0x77   : > { %971 = vmatprep.subr.mxu0 %v8290_v0  ;;  %1151 = vmatpush1.msra.mxu1 %v8114_v4 }
  0x78   : > { %974 = vmatpush1.msra.mxu0 %v8304_v8  ;;  %1153 = vmatprep.subr.mxu1 %v8116_v5 }
  0x79   : > { %977 = vmatprep.subr.mxu0 %v8318_v42  ;;  %1155 = vmatpush1.msra.mxu1 %v8127_v9 }
  0x7a   : > { %980 = vmatpush1.msra.mxu0 %v8330_v48  ;;  %1157 = vmatprep.subr.mxu1 %v8129_v10 }
  0x7b   : > { %983 = vmatprep.subr.mxu0 %v8347_v21  ;;  %1159 = vmatpush1.msra.mxu1 %v8131_v11 }
  0x7c   : > { %986 = vmatpush1.msra.mxu0 %v8359_v6  ;;  %1161 = vmatprep.subr.mxu1 %v8143_v15 }
  0x7d   : > { %989 = vmatprep.subr.mxu0 %v8386_v55  ;;  %1163 = vmatpush1.msra.mxu1 %v8145_v16 }
  0x7e   : > { %992 = vmatpush1.msra.mxu0 %v8402_v28  ;;  %1165 = vmatprep.subr.mxu1 %v8147_v17 }
  0x7f   : > { %995 = vmatprep.subr.mxu0 %v8426_v34  ;;  %1167 = vmatpush1.msra.mxu1 %v8169_v22 }
  0x80   : > { %998 = vmatpush1.msra.mxu0 %v8442_v46  ;;  %1169 = vmatprep.subr.mxu1 %v8175_v24 }
  0x81   : > { %1001 = vmatprep.subr.mxu0 %v8454_v60  ;;  %1171 = vmatpush1.msra.mxu1 %v13062_v44 }
  0x82   : > { %1004 = vmatpush1.msra.mxu0 %v13063_v38  ;;  %1173 = vmatprep.subr.mxu1 %v13064_v36 }
  0x83   : > { %1007 = vmatprep.subr.mxu0 %v13065_v30  ;;  %1175 = vmatpush1.msra.mxu1 %v13066_v56  ;;  %v13078_v56 = vld [vmem:[#allocation14_spill] sm:$0xff] }
  0x84   : > { %1010 = vmatpush1.msra.mxu0 %v13067_v27  ;;  %1177 = vmatprep.subr.mxu1 %v13068_v32  ;;  %v13079_v32 = vld [vmem:[#allocation39_spill] sm:$0xff] }
  0x85   : > { %1013 = vmatprep.subr.mxu0 %v13069_v47  ;;  %1179 = vmatpush1.msra.mxu1 %v13070_v1  ;;  %v13080_v47 = vld [vmem:[#allocation15_spill] sm:$0xff]  ;;  %v13081_v1 = vld [vmem:[#allocation41_spill] sm:$0xff] }
  0x86   : > { %1016 = vmatpush1.msra.mxu0 %v13071_v53  ;;  %1181 = vmatprep.subr.mxu1 %v13072_v20  ;;  %v13082_v53 = vld [vmem:[#allocation16_spill] sm:$0xff]  ;;  %v13083_v20 = vld [vmem:[#allocation43_spill] sm:$0xff] }
  0x87   : > { %1019 = vmatprep.subr.mxu0 %v13073_v49  ;;  %1183 = vmatpush1.msra.mxu1 %v13074_v18  ;;  %v13084_v49 = vld [vmem:[#allocation17_spill] sm:$0xff] }
  0x88   : > { %1022 = vmatpush1.msra.mxu0 %v13075_v62  ;;  %1185 = vmatprep.subr.mxu1 %v13076_v58  ;;  %v13085_v18 = vld [vmem:[#allocation45_spill] sm:$0xff]  ;;  %v13086_v62 = vld [vmem:[#allocation18_spill] sm:$0xff]  ;;  %v13087_v58 = vld [vmem:[#allocation47_spill] sm:$0xff] }
  0x89   : > { %1025 = vmatprep.subr.mxu0 %v13077_v63  ;;  %1187 = vmatpush1.msra.mxu1 %v13078_v56  ;;  %v13088_v63 = vld [vmem:[#allocation19_spill] sm:$0xff]  ;;  %v13089_v56 = vld [vmem:[#allocation49_spill] sm:$0xff] }
  0x8a   : > { %1028 = vmatpush1.msra.mxu0 %v13079_v32  ;;  %1189 = vmatprep.subr.mxu1 %v13080_v47  ;;  %v13090_v32 = vld [vmem:[#allocation20_spill] sm:$0xff]  ;;  %v13091_v47 = vld [vmem:[#allocation51_spill] sm:$0xff] }
  0x8b   : > { %1031 = vmatprep.subr.mxu0 %v13081_v1  ;;  %1191 = vmatpush1.msra.mxu1 %v13082_v53  ;;  %v13092_v1 = vld [vmem:[#allocation21_spill] sm:$0xff] }
  0x8c   : > { %1034 = vmatpush1.msra.mxu0 %v13083_v20  ;;  %1193 = vmatprep.subr.mxu1 %v13084_v49  ;;  %v13093_v53 = vld [vmem:[#allocation53_spill] sm:$0xff]  ;;  %v13094_v20 = vld [vmem:[#allocation22_spill] sm:$0xff]  ;;  %v13095_v49 = vld [vmem:[#allocation55_spill] sm:$0xff] }
  0x8d   : > { %1037 = vmatprep.subr.mxu0 %v13085_v18  ;;  %1195 = vmatpush1.msra.mxu1 %v13086_v62  ;;  %v13096_v18 = vld [vmem:[#allocation24_spill] sm:$0xff]  ;;  %v13097_v62 = vld [vmem:[#allocation57_spill] sm:$0xff] }
  0x8e   : > { %1040 = vmatpush1.msra.mxu0 %v13087_v58  ;;  %1197 = vmatprep.subr.mxu1 %v13088_v63  ;;  %v13098_v58 = vld [vmem:[#allocation26_spill] sm:$0xff]  ;;  %v13099_v63 = vld [vmem:[#allocation59_spill] sm:$0xff] }
  0x8f   : > { %1043 = vmatprep.subr.mxu0 %v13089_v56  ;;  %1199 = vmatpush1.msra.mxu1 %v13090_v32  ;;  %v13100_v56 = vld [vmem:[#allocation28_spill] sm:$0xff]  ;;  %v13101_v32 = vld [vmem:[#allocation61_spill] sm:$0xff] }
  0x90   : > { %1046 = vmatpush2.msra.mxu0 %v13091_v47  ;;  %1201 = vmatprep.subr.mxu1 %v13092_v1  ;;  %v13102_v47 = vld [vmem:[#allocation30_spill] sm:$0xff]  ;;  %v13103_v1 = vld [vmem:[#allocation63_spill] sm:$0xff] }
  0x91   : > { %1049 = vmatprep.subr.mxu0 %v13093_v53  ;;  %1203 = vmatpush1.msra.mxu1 %v13094_v20  ;;  %v13104_v53 = vld [vmem:[#allocation32_spill] sm:$0xff]  ;;  %v13105_v20 = vld [vmem:[#allocation65_spill] sm:$0xff] }
  0x92   : > { %1052 = vmatpush2.msra.mxu0 %v13095_v49  ;;  %1205 = vmatprep.subr.mxu1 %v13096_v18  ;;  %v13106_v49 = vld [vmem:[#allocation34_spill] sm:$0xff]  ;;  %v13107_v18 = vld [vmem:[#allocation67_spill] sm:$0xff] }
  0x93   : > { %1055 = vmatprep.subr.mxu0 %v13097_v62  ;;  %1207 = vmatpush1.msra.mxu1 %v13098_v58  ;;  %v13108_v62 = vld [vmem:[#allocation36_spill] sm:$0xff]  ;;  %v13109_v58 = vld [vmem:[#allocation69_spill] sm:$0xff] }
  0x94   : > { %1058 = vmatpush2.msra.mxu0 %v13099_v63  ;;  %1209 = vmatprep.subr.mxu1 %v13100_v56  ;;  %v13110_v63 = vld [vmem:[#allocation38_spill] sm:$0xff]  ;;  %v13111_v56 = vld [vmem:[#allocation71_spill] sm:$0xff] }
  0x95   : > { %1061 = vmatprep.subr.mxu0 %v13101_v32  ;;  %1211 = vmatpush1.msra.mxu1 %v13102_v47  ;;  %v13112_v32 = vld [vmem:[#allocation40_spill] sm:$0xff]  ;;  %v13113_v47 = vld [vmem:[#allocation73_spill] sm:$0xff] }
  0x96   : > { %1064 = vmatpush2.msra.mxu0 %v13103_v1  ;;  %1213 = vmatprep.subr.mxu1 %v13104_v53  ;;  %v13114_v1 = vld [vmem:[#allocation42_spill] sm:$0xff]  ;;  %v13115_v53 = vld [vmem:[#allocation75_spill] sm:$0xff] }
  0x97   : > { %1067 = vmatprep.subr.mxu0 %v13105_v20  ;;  %1215 = vmatpush2.msra.mxu1 %v13106_v49  ;;  %v13116_v20 = vld [vmem:[#allocation44_spill] sm:$0xff]  ;;  %v13117_v49 = vld [vmem:[#allocation77_spill] sm:$0xff] }
  0x98   : > { %1070 = vmatpush2.msra.mxu0 %v13107_v18  ;;  %1217 = vmatprep.subr.mxu1 %v13108_v62  ;;  %v13118_v18 = vld [vmem:[#allocation46_spill] sm:$0xff]  ;;  %v13119_v62 = vld [vmem:[#allocation79_spill] sm:$0xff] }
  0x99   : > { %1073 = vmatprep.subr.mxu0 %v13109_v58  ;;  %1219 = vmatpush2.msra.mxu1 %v13110_v63  ;;  %v13120_v58 = vld [vmem:[#allocation48_spill] sm:$0xff]  ;;  %v13121_v63 = vld [vmem:[#allocation81_spill] sm:$0xff] }
  0x9a   : > { %1076 = vmatpush2.msra.mxu0 %v13111_v56  ;;  %1221 = vmatprep.subr.mxu1 %v13112_v32  ;;  %v13122_v56 = vld [vmem:[#allocation50_spill] sm:$0xff] }
  0x9b   : > { %1079 = vmatprep.subr.mxu0 %v13113_v47  ;;  %1223 = vmatpush2.msra.mxu1 %v13114_v1  ;;  %v13123_v32 = vld [vmem:[#allocation82_spill] sm:$0xff]  ;;  %v13124_v47 = vld [vmem:[#allocation52_spill] sm:$0xff]  ;;  %v13125_v1 = vld [vmem:[#allocation83_spill] sm:$0xff] }
  0x9c   : > { %1082 = vmatpush2.msra.mxu0 %v13115_v53  ;;  %1225 = vmatprep.subr.mxu1 %v13116_v20  ;;  %v13126_v53 = vld [vmem:[#allocation54_spill] sm:$0xff]  ;;  %v13127_v20 = vld [vmem:[#allocation85_spill] sm:$0xff] }
  0x9d   : > { %1085 = vmatprep.subr.mxu0 %v13117_v49  ;;  %1227 = vmatpush2.msra.mxu1 %v13118_v18  ;;  %v13128_v49 = vld [vmem:[#allocation56_spill] sm:$0xff]  ;;  %v13129_v18 = vld [vmem:[#allocation87_spill] sm:$0xff] }
  0x9e   : > { %1088 = vmatpush2.msra.mxu0 %v13119_v62  ;;  %1229 = vmatprep.subr.mxu1 %v13120_v58  ;;  %v13130_v62 = vld [vmem:[#allocation58_spill] sm:$0xff]  ;;  %v13131_v58 = vld [vmem:[#allocation60_spill] sm:$0xff] }
  0x9f   : > { %1091 = vmatprep.subr.mxu0 %v13121_v63  ;;  %1231 = vmatpush2.msra.mxu1 %v13122_v56  ;;  %v13132_v56 = vld [vmem:[#allocation62_spill] sm:$0xff] }
  0xa0   : > { %1094 = vmatpush2.msra.mxu0 %v13123_v32  ;;  %1233 = vmatprep.subr.mxu1 %v13124_v47  ;;  %v13133_v47 = vld [vmem:[#allocation64_spill] sm:$0xff] }
  0xa1   : > { %1097 = vmatprep.subr.mxu0 %v13125_v1  ;;  %1235 = vmatpush2.msra.mxu1 %v13126_v53  ;;  %v13134_v53 = vld [vmem:[#allocation66_spill] sm:$0xff] }
  0xa2   : > { %1100 = vmatpush2.msra.mxu0 %v13127_v20  ;;  %1237 = vmatprep.subr.mxu1 %v13128_v49  ;;  %v13135_v49 = vld [vmem:[#allocation68_spill] sm:$0xff] }
  0xa3   : > { %1103 = vmatprep.subr.mxu0 %v13129_v18  ;;  %1239 = vmatpush2.msra.mxu1 %v13130_v62  ;;  %v13136_v62 = vld [vmem:[#allocation70_spill] sm:$0xff] }
  0xa4   : > { %1106 = vmatpush2.msra.mxu0 %v9055_v19  ;;  %1241 = vmatprep.subr.mxu1 %v13131_v58  ;;  %v13137_v58 = vld [vmem:[#allocation72_spill] sm:$0xff] }
  0xa5   : > { %1109 = vmatprep.subr.mxu0 %v9076_v26  ;;  %1243 = vmatpush2.msra.mxu1 %v13132_v56  ;;  %v13138_v56 = vld [vmem:[#allocation74_spill] sm:$0xff] }
  0xa6   : > { %1112 = vmatpush2.msra.mxu0 %v9087_v14  ;;  %1245 = vmatprep.subr.mxu1 %v13133_v47  ;;  %v13139_v47 = vld [vmem:[#allocation76_spill] sm:$0xff] }
  0xa7   : > { %1115 = vmatprep.subr.mxu0 %v9099_v52  ;;  %1247 = vmatpush2.msra.mxu1 %v13134_v53 }
  0xa8   : > { %1118 = vmatpush2.msra.mxu0 %v9109_v29  ;;  %1249 = vmatprep.subr.mxu1 %v13135_v49 }
  0xa9   : > { %1121 = vmatprep.subr.mxu0 %v9120_v13  ;;  %1251 = vmatpush2.msra.mxu1 %v13136_v62  ;;  %v13140_v62 = vld [vmem:[#allocation5_spill] sm:$0xff] }
  0xaa   : > { %1124 = vmatpush2.msra.mxu0 %v9128_v12  ;;  %1253 = vmatprep.subr.mxu1 %v13137_v58  ;;  %v13141_v58 = vand.u32 4294901760, %v13140_v62  ;;  %v13147_v62 = vand.u32 4294901760, %v8210_v35  ;;  %v13153_v35 = vand.u32 4294901760, %v8290_v0  ;;  %v13157_v0 = vand.u32 4294901760, %v8347_v21 }
  0xab   : > { %1127 = vmatprep.subr.mxu0 %v9147_v41  ;;  %1255 = vmatpush2.msra.mxu1 %v13138_v56  ;;  %v13142_v56 = vand.u32 4294901760, %v8172_v23  ;;  %v13149_v23 = vand.u32 4294901760, %v8226_v40  ;;  %v13154_v40 = vand.u32 4294901760, %v8304_v8 }
  0xac   : > { %1130 = vmatpush2.msra.mxu0 %v9156_v61  ;;  %1257 = vmatprep.subr.mxu1 %v13139_v47  ;;  %v13143_v47 = vand.u32 4294901760, %v8178_v25  ;;  %v13150_v25 = vand.u32 4294901760, %v8240_v45  ;;  %v13155_v45 = vand.u32 4294901760, %v8318_v42  ;;  %v13173_v42 = vld [vmem:[#allocation10_spill] sm:$0xff] }
  0xad   : > { %1133 = vmatprep.subr.mxu0 %v9169_v7  ;;  %1259 = vmatpush2.msra.mxu1 %v8953_v43  ;;  %v13144_v43 = vld [vmem:[#allocation84_spill] sm:$0xff] }
  0xae   : > { %1136 = vmatpush2.msra.mxu0 %v9178_v33  ;;  %1261 = vmatprep.subr.mxu1 %v8969_v2  ;;  %v13145_v33 = vand.u32 4294901760, %v8201_v31  ;;  %v13146_v2 = vld [vmem:[#allocation86_spill] sm:$0xff]  ;;  %v13151_v31 = vand.u32 4294901760, %v8275_v59  ;;  %v13156_v59 = vand.u32 4294901760, %v8330_v48  ;;  %v13174_v48 = vld [vmem:[#allocation33_spill] sm:$0xff] }
  0xaf   : > { %1142 = vmatmul.mubr.f32.vlgmr.msra.gmra.mxu0 %v9116_v37  ;;  %1292 = vmatprep.subr.mxu0 %v13141_v58  ;;  %v13148_v58 = vld [vmem:[#allocation88_spill] sm:$0xff]  ;;  %v13175_v21 = vand.u32 4294901760, %v13174_v48  ;;  %v13303_v37 = vld [vmem:[#allocation90_spill] sm:$0xff] }
  0xb0   : > { %1263 = vmatpush2.msra.mxu1 %v8983_v54  ;;  %1296 = vmatpush1.msra.mxu0 %v13142_v56  ;;  %v13183_v56 = vld [vmem:[#allocation39_spill] sm:$0xff] }
  0xb1   : > { %1265 = vmatprep.subr.mxu1 %v9000_v50  ;;  %1300 = vmatprep.subr.mxu0 %v13143_v47  ;;  %v13185_v47 = vld [vmem:[#allocation14_spill] sm:$0xff] }
  0xb2   : > { %1267 = vmatpush2.msra.mxu1 %v13144_v43  ;;  %1304 = vmatpush1.msra.mxu0 %v13145_v33  ;;  %v13152_v33 = vld [vmem:[#allocation93_spill] sm:$0xff] }
  0xb3   : > { %1269 = vmatprep.subr.mxu1 %v13146_v2  ;;  %1308 = vmatprep.subr.mxu0 %v13147_v62  ;;  %v13186_v62 = vld [vmem:[#allocation41_spill] sm:$0xff] }
  0xb4   : > { %1271 = vmatpush2.msra.mxu1 %v13148_v58  ;;  %1312 = vmatpush1.msra.mxu0 %v13149_v23  ;;  %v13187_v23 = vand.u32 4294901760, %v13186_v62  ;;  %v13221_v62 = vld [vmem:[#allocation30_spill] sm:$0xff] }
  0xb5   : > { %1273 = vmatprep.subr.mxu1 %v9067_v39  ;;  %1316 = vmatprep.subr.mxu0 %v13150_v25  ;;  %v13188_v25 = vld [vmem:[#allocation15_spill] sm:$0xff] }
  0xb6   : > { %1275 = vmatpush2.msra.mxu1 %v9083_v57  ;;  %1279 = vmatprep.mubr.f32.mxu1 %v9139_v51 }
  0xb7   : > { %1320 = vmatpush1.msra.mxu0 %v13151_v31  ;;  %1283 = vmatmul.mubr.f32.vlgmr.msra.gmra.mxu1 %v13152_v33  ;;  %v13189_v31 = vld [vmem:[#allocation43_spill] sm:$0xff]  ;;  %v13301_v33 = vld [vmem:[#allocation97_spill] sm:$0xff] }
  0xb8   : > { %1324 = vmatprep.subr.mxu0 %v13153_v35  ;;  %1555 = vmatprep.subr.mxu1 %v8112_v3  ;;  %v13158_v3 = vand.u32 4294901760, %v8359_v6  ;;  %v13176_v6 = vld [vmem:[#allocation11_spill] sm:$0xff]  ;;  %v13190_v35 = vand.u32 4294901760, %v13189_v31  ;;  %v13224_v31 = vld [vmem:[#allocation32_spill] sm:$0xff]  ;;  %v13302_v51 = vand.u32 4294901760, %v13301_v33 }
  0xb9   : > { %1328 = vmatpush1.msra.mxu0 %v13154_v40  ;;  %1557 = vmatpush1.msra.mxu1 %v8114_v4  ;;  %v13159_v4 = vand.u32 4294901760, %v8386_v55  ;;  %v13191_v40 = vld [vmem:[#allocation16_spill] sm:$0xff] }
  0xba   : > { %1332 = vmatprep.subr.mxu0 %v13155_v45  ;;  %1559 = vmatprep.subr.mxu1 %v8116_v5  ;;  %v13160_v5 = vand.u32 4294901760, %v8402_v28  ;;  %v13177_v28 = vld [vmem:[#allocation35_spill] sm:$0xff]  ;;  %v13192_v45 = vld [vmem:[#allocation45_spill] sm:$0xff] }
  0xbb   : > { %1336 = vmatpush1.msra.mxu0 %v13156_v59  ;;  %1561 = vmatpush1.msra.mxu1 %v8127_v9  ;;  %v13161_v9 = vand.u32 4294901760, %v8426_v34  ;;  %v13167_v34 = vld [vmem:[#allocation8_spill] sm:$0xff]  ;;  %v13193_v59 = vand.u32 4294901760, %v13192_v45 }
  0xbc   : > { %1340 = vmatprep.subr.mxu0 %v13157_v0  ;;  %1563 = vmatprep.subr.mxu1 %v8129_v10  ;;  %v13162_v10 = vand.u32 4294901760, %v8442_v46  ;;  %v13178_v46 = vand.u32 4294901760, %v13177_v28  ;;  %v13194_v0 = vld [vmem:[#allocation17_spill] sm:$0xff] }
  0xbd   : > { %1344 = vmatpush1.msra.mxu0 %v13158_v3  ;;  %1565 = vmatpush1.msra.mxu1 %v8131_v11  ;;  %v13163_v11 = vand.u32 4294901760, %v8454_v60  ;;  %v13170_v60 = vld [vmem:[#allocation9_spill] sm:$0xff]  ;;  %v13195_v3 = vld [vmem:[#allocation47_spill] sm:$0xff] }
  0xbe   : > { %1348 = vmatprep.subr.mxu0 %v13159_v4  ;;  %1567 = vmatprep.subr.mxu1 %v8143_v15  ;;  %v13164_v15 = vand.u32 4294901760, %v13063_v38  ;;  %v13180_v38 = vld [vmem:[#allocation37_spill] sm:$0xff]  ;;  %v13196_v4 = vand.u32 4294901760, %v13195_v3 }
  0xbf   : > { %1352 = vmatpush1.msra.mxu0 %v13160_v5  ;;  %1569 = vmatpush1.msra.mxu1 %v8145_v16  ;;  %v13165_v16 = vand.u32 4294901760, %v13065_v30  ;;  %v13182_v30 = vld [vmem:[#allocation13_spill] sm:$0xff]  ;;  %v13197_v5 = vld [vmem:[#allocation18_spill] sm:$0xff] }
  0xc0   : > { %1356 = vmatprep.subr.mxu0 %v13161_v9  ;;  %1571 = vmatprep.subr.mxu1 %v8147_v17  ;;  %v13166_v17 = vand.u32 4294901760, %v13067_v27  ;;  %v13184_v27 = vand.u32 4294901760, %v13183_v56  ;;  %v13198_v9 = vld [vmem:[#allocation49_spill] sm:$0xff]  ;;  %v321_v56 = vld [vmem:[%s12462_s3 + $0x268] sm:$0xff] }
  0xc1   : > { %1360 = vmatpush1.msra.mxu0 %v13162_v10  ;;  %1573 = vmatpush1.msra.mxu1 %v8169_v22  ;;  %v13168_v22 = vld [vmem:[#allocation29_spill] sm:$0xff]  ;;  %v13199_v10 = vand.u32 4294901760, %v13198_v9  ;;  %v9454_v3 = vand.u32 4294901760, %v321_v56 }
  0xc2   : > { %1364 = vmatprep.subr.mxu0 %v13163_v11  ;;  %1575 = vmatprep.subr.mxu1 %v8175_v24  ;;  %v13169_v55 = vand.u32 4294901760, %v13168_v22  ;;  %v13171_v24 = vld [vmem:[#allocation31_spill] sm:$0xff] }
  0xc3   : > { %1368 = vmatpush1.msra.mxu0 %v13164_v15  ;;  %1577 = vmatpush1.msra.mxu1 %v13062_v44  ;;  %v13172_v8 = vand.u32 4294901760, %v13171_v24  ;;  %v13179_v44 = vld [vmem:[#allocation12_spill] sm:$0xff]  ;;  %v13200_v11 = vld [vmem:[#allocation19_spill] sm:$0xff]  ;;  %13228 = vst [vmem:[#allocation6_spill] sm:$0xff] %v9454_v3 }
  0xc4   : > { %1372 = vmatprep.subr.mxu0 %v13165_v16  ;;  %1579 = vmatprep.subr.mxu1 %v13064_v36  ;;  %v13181_v36 = vand.u32 4294901760, %v13180_v38  ;;  %v13201_v15 = vld [vmem:[#allocation51_spill] sm:$0xff] }
  0xc5   : > { %1376 = vmatpush1.msra.mxu0 %v13166_v17  ;;  %1581 = vmatpush1.msra.mxu1 %v13167_v34  ;;  %v13202_v16 = vand.u32 4294901760, %v13201_v15  ;;  %v13203_v17 = vld [vmem:[#allocation20_spill] sm:$0xff]  ;;  %v13204_v34 = vld [vmem:[#allocation53_spill] sm:$0xff] }
  0xc6   : > { %1380 = vmatprep.subr.mxu0 %v13169_v55  ;;  %1583 = vmatprep.subr.mxu1 %v13170_v60  ;;  %v13205_v22 = vand.u32 4294901760, %v13204_v34  ;;  %v13206_v55 = vld [vmem:[#allocation21_spill] sm:$0xff]  ;;  %v13207_v60 = vld [vmem:[#allocation55_spill] sm:$0xff] }
  0xc7   : > { %1384 = vmatpush1.msra.mxu0 %v13172_v8  ;;  %1585 = vmatpush1.msra.mxu1 %v13173_v42  ;;  %v13208_v24 = vand.u32 4294901760, %v13207_v60  ;;  %v13209_v8 = vld [vmem:[#allocation22_spill] sm:$0xff]  ;;  %v13210_v42 = vld [vmem:[#allocation57_spill] sm:$0xff] }
  0xc8   : > { %1388 = vmatprep.subr.mxu0 %v13175_v21  ;;  %1587 = vmatprep.subr.mxu1 %v13176_v6  ;;  %v13211_v48 = vand.u32 4294901760, %v13210_v42  ;;  %v13212_v21 = vld [vmem:[#allocation24_spill] sm:$0xff]  ;;  %v13213_v6 = vld [vmem:[#allocation59_spill] sm:$0xff]  ;;  %v312_v34 = vld [vmem:[%s12462_s3 + $0x220] sm:$0xff] }
  0xc9   : > { %1392 = vmatpush1.msra.mxu0 %v13178_v46  ;;  %1589 = vmatpush1.msra.mxu1 %v13179_v44  ;;  %v13214_v28 = vand.u32 4294901760, %v13213_v6  ;;  %v13215_v46 = vld [vmem:[#allocation26_spill] sm:$0xff]  ;;  %v13216_v44 = vld [vmem:[#allocation61_spill] sm:$0xff]  ;;  %v13240_v42 = vld [vmem:[#allocation75_spill] sm:$0xff]  ;;  %v9482_v6 = vsub.f32 %v321_v56, %v9454_v3 }
  0xca   : > { %1396 = vmatprep.subr.mxu0 %v13181_v36  ;;  %1591 = vmatprep.subr.mxu1 %v13182_v30  ;;  %v13217_v38 = vand.u32 4294901760, %v13216_v44  ;;  %v13218_v36 = vld [vmem:[#allocation28_spill] sm:$0xff]  ;;  %v322_v30 = vld [vmem:[%s12462_s3 + $0x270] sm:$0xff]  ;;  %v13243_v44 = vld [vmem:[#allocation77_spill] sm:$0xff] }
  0xcb   : > { %1400 = vmatpush1.msra.mxu0 %v13184_v27  ;;  %1593 = vmatpush1.msra.mxu1 %v13185_v47  ;;  %v13219_v27 = vld [vmem:[#allocation63_spill] sm:$0xff] }
  0xcc   : > { %1404 = vmatprep.subr.mxu0 %v13187_v23  ;;  %1595 = vmatprep.subr.mxu1 %v13188_v25  ;;  %v13220_v47 = vand.u32 4294901760, %v13219_v27  ;;  %v13222_v23 = vld [vmem:[#allocation65_spill] sm:$0xff]  ;;  %v9493_v27 = vand.u32 4294901760, %v312_v34  ;;  %v306_v56 = vld [vmem:[%s12462_s3 + $0x1f0] sm:$0xff] }
  0xcd   : > { %1408 = vmatpush1.msra.mxu0 %v13190_v35  ;;  %1597 = vmatpush1.msra.mxu1 %v13191_v40  ;;  %v13223_v25 = vand.u32 4294901760, %v13222_v23  ;;  %v317_v35 = vld [vmem:[%s12462_s3 + $0x248] sm:$0xff]  ;;  %v13225_v40 = vld [vmem:[#allocation67_spill] sm:$0xff] }
  0xce   : > { %1412 = vmatprep.subr.mxu0 %v13193_v59  ;;  %1599 = vmatprep.subr.mxu1 %v13194_v0  ;;  %v13226_v45 = vand.u32 4294901760, %v13225_v40  ;;  %v13227_v59 = vld [vmem:[#allocation34_spill] sm:$0xff]  ;;  %v9452_v0 = vand.u32 4294901760, %v322_v30  ;;  %13246 = vst [vmem:[#allocation25_spill] sm:$0xff] %v9493_v27  ;;  %v13252_v40 = vld [vmem:[#allocation48_spill] sm:$0xff] }
  0xcf   : > { %1416 = vmatpush1.msra.mxu0 %v13196_v4  ;;  %1601 = vmatpush1.msra.mxu1 %v13197_v5  ;;  %v316_v4 = vld [vmem:[%s12462_s3 + $0x240] sm:$0xff] }
  0xd0   : > { %1420 = vmatprep.subr.mxu0 %v13199_v10  ;;  %1603 = vmatprep.subr.mxu1 %v13200_v11  ;;  %v13229_v5 = vld [vmem:[#allocation69_spill] sm:$0xff]  ;;  %v13231_v10 = vld [vmem:[#allocation36_spill] sm:$0xff]  ;;  %v13232_v11 = vld [vmem:[#allocation71_spill] sm:$0xff] }
  0xd1   : > { %1424 = vmatpush2.msra.mxu0 %v13202_v16  ;;  %1605 = vmatpush1.msra.mxu1 %v13203_v17  ;;  %v13230_v9 = vand.u32 4294901760, %v13229_v5  ;;  %v13233_v15 = vand.u32 4294901760, %v13232_v11  ;;  %v13234_v16 = vld [vmem:[#allocation38_spill] sm:$0xff]  ;;  %v9465_v17 = vand.u32 4294901760, %v317_v35  ;;  %v302_v5 = vld [vmem:[%s12462_s3 + $0x1d0] sm:$0xff]  ;;  %v12677_v11 = vand.u32 4294901760, %v9482_v6 }
  0xd2   : > { %1428 = vmatprep.subr.mxu0 %v13205_v22  ;;  %1607 = vmatprep.subr.mxu1 %v13206_v55  ;;  %v311_v22 = vld [vmem:[%s12462_s3 + $0x218] sm:$0xff]  ;;  %v13236_v55 = vld [vmem:[#allocation73_spill] sm:$0xff] }
  0xd3   : > { %1432 = vmatpush2.msra.mxu0 %v13208_v24  ;;  %1609 = vmatpush1.msra.mxu1 %v13209_v8  ;;  %13235 = vst [vmem:[#allocation23_spill] sm:$0xff] %v9465_v17  ;;  %v13237_v60 = vand.u32 4294901760, %v13236_v55  ;;  %v13238_v24 = vld [vmem:[#allocation40_spill] sm:$0xff]  ;;  %v9476_v8 = vand.u32 4294901760, %v316_v4 }
  0xd4   : > { %1436 = vmatprep.subr.mxu0 %v13211_v48  ;;  %1611 = vmatprep.subr.mxu1 %v13212_v21  ;;  %v13241_v48 = vand.u32 4294901760, %v13240_v42  ;;  %v13242_v21 = vld [vmem:[#allocation42_spill] sm:$0xff] }
  0xd5   : > { %1440 = vmatpush2.msra.mxu0 %v13214_v28  ;;  %1613 = vmatpush1.msra.mxu1 %v13215_v46  ;;  %13239 = vst [vmem:[#allocation7_spill] sm:$0xff] %v9476_v8  ;;  %v307_v28 = vld [vmem:[%s12462_s3 + $0x1f8] sm:$0xff]  ;;  %v9488_v46 = vsub.f32 %v322_v30, %v9452_v0  ;;  %v9504_v30 = vsub.f32 %v317_v35, %v9465_v17  ;;  %v13254_v35 = vand.u32 4294901760, %v13123_v32  ;;  %v296_v32 = vld [vmem:[%s12462_s3 + $0x1a0] sm:$0xff]  ;;  %v13261_v42 = vld [vmem:[#allocation54_spill] sm:$0xff] }
  0xd6   : > { %1444 = vmatprep.subr.mxu0 %v13217_v38  ;;  %1615 = vmatprep.subr.mxu1 %v13218_v36  ;;  %v13244_v38 = vand.u32 4294901760, %v13243_v44  ;;  %v13245_v36 = vld [vmem:[#allocation44_spill] sm:$0xff]  ;;  %v13264_v44 = vand.u32 4294901760, %v13129_v18 }
  0xd7   : > { %1448 = vmatpush2.msra.mxu0 %v13220_v47  ;;  %1617 = vmatpush1.msra.mxu1 %v13221_v62  ;;  %v9495_v47 = vand.u32 4294901760, %v311_v22  ;;  %v13248_v62 = vld [vmem:[#allocation79_spill] sm:$0xff] }
  0xd8   : > { %1452 = vmatprep.subr.mxu0 %v13223_v25  ;;  %1619 = vmatprep.subr.mxu1 %v13224_v31  ;;  %v13249_v23 = vand.u32 4294901760, %v13248_v62  ;;  %v13250_v25 = vld [vmem:[#allocation46_spill] sm:$0xff]  ;;  %v13251_v31 = vand.u32 4294901760, %v13121_v63 }
  0xd9   : > { %1456 = vmatpush2.msra.mxu0 %v13226_v45  ;;  %1621 = vmatpush2.msra.mxu1 %v13227_v59  ;;  %13247 = vst [vmem:[#allocation27_spill] sm:$0xff] %v9495_v47  ;;  %v9510_v45 = vsub.f32 %v316_v4, %v9476_v8  ;;  %v9512_v59 = vand.u32 4294901760, %v307_v28  ;;  %v13255_v63 = vld [vmem:[#allocation50_spill] sm:$0xff]  ;;  %v12678_v4 = vand.u32 4294901760, %v9488_v46  ;;  %v9531_v55 = vsub.f32 %v311_v22, %v9495_v47 }
  0xda   : > { %1460 = vmatprep.subr.mxu0 %v13230_v9  ;;  %1623 = vmatprep.subr.mxu1 %v13231_v10  ;;  %v301_v9 = vld [vmem:[%s12462_s3 + $0x1c8] sm:$0xff]  ;;  %v9523_v10 = vand.u32 4294901760, %v306_v56 }
  0xdb   : > { %1464 = vmatpush2.msra.mxu0 %v13233_v15  ;;  %1625 = vmatpush2.msra.mxu1 %v13234_v16  ;;  %13253 = vst [vmem:[#allocation81_spill] sm:$0xff] %v9512_v59  ;;  %v13257_v15 = vand.u32 4294901760, %v13125_v1  ;;  %v13258_v16 = vld [vmem:[#allocation52_spill] sm:$0xff]  ;;  %13259 = vst [vmem:[#allocation83_spill] sm:$0xff] %v9531_v55  ;;  %v9544_v1 = vand.u32 4294901760, %v301_v9  ;;  %v297_v22 = vld [vmem:[%s12462_s3 + $0x1a8] sm:$0xff]  ;;  %v9566_v18 = vsub.f32 %v9488_v46, %v12678_v4 }
  0xdc   : > { %1468 = vmatprep.subr.mxu0 %v13237_v60  ;;  %1627 = vmatprep.subr.mxu1 %v13238_v24  ;;  %13256 = vst [vmem:[#allocation82_spill] sm:$0xff] %v9523_v10  ;;  %v9537_v60 = vsub.f32 %v312_v34, %v9493_v27  ;;  %v13260_v24 = vand.u32 4294901760, %v13127_v20  ;;  %v13265_v34 = vld [vmem:[#allocation56_spill] sm:$0xff]  ;;  %v12673_v20 = vand.u32 4294901760, %v9510_v45  ;;  %v13268_v62 = vld [vmem:[#allocation58_spill] sm:$0xff] }
  0xdd   : > { %1472 = vmatpush2.msra.mxu0 %v13241_v48  ;;  %1629 = vmatpush2.msra.mxu1 %v13242_v21  ;;  %v9542_v48 = vand.u32 4294901760, %v302_v5  ;;  %13263 = vst [vmem:[#allocation87_spill] sm:$0xff] %v9544_v1  ;;  %v12676_v21 = vand.u32 4294901760, %v9504_v30 }
  0xde   : > { %1476 = vmatprep.subr.mxu0 %v13244_v38  ;;  %1631 = vmatprep.subr.mxu1 %v13245_v36  ;;  %v9555_v38 = vsub.f32 %v307_v28, %v9512_v59  ;;  %v13267_v36 = vand.u32 4294901760, %v9055_v19  ;;  %v9573_v28 = vand.u32 4294901760, %v296_v32  ;;  %v292_v19 = vld [vmem:[%s12462_s3 + $0x180] sm:$0xff] }
  0xdf   : > { %1480 = vmatpush2.msra.mxu0 %v13249_v23  ;;  %1633 = vmatpush2.msra.mxu1 %v13250_v25  ;;  %13262 = vst [vmem:[#allocation85_spill] sm:$0xff] %v9542_v48  ;;  %v9561_v23 = vsub.f32 %v306_v56, %v9523_v10  ;;  %v9571_v25 = vsub.f32 %v9482_v6, %v12677_v11  ;;  %v291_v56 = vld [vmem:[%s12462_s3 + $0x178] sm:$0xff] }
  0xe0   : > { %1484 = vmatprep.subr.mxu0 %v13251_v31  ;;  %1635 = vmatprep.subr.mxu1 %v13252_v40  ;;  %13266 = vst [vmem:[#allocation66_spill] sm:$0xff] %v9555_v38  ;;  %13270 = vst [vmem:[#allocation5_spill] sm:$0xff] %v9573_v28  ;;  %v13271_v31 = vand.u32 4294901760, %v9076_v26  ;;  %v13272_v40 = vld [vmem:[#allocation60_spill] sm:$0xff]  ;;  %v9597_v26 = vsub.f32 %v9504_v30, %v12676_v21 }
  0xe1   : > { %1488 = vmatpush2.msra.mxu0 %v13254_v35  ;;  %1637 = vmatpush2.msra.mxu1 %v13255_v63  ;;  %13269 = vst [vmem:[#allocation68_spill] sm:$0xff] %v9561_v23  ;;  %v9584_v35 = vand.u32 4294901760, %v297_v22  ;;  %v12674_v63 = vand.u32 4294901760, %v9537_v60 }
  0xe2   : > { %1492 = vmatprep.subr.mxu0 %v13257_v15  ;;  %1639 = vmatprep.subr.mxu1 %v13258_v16  ;;  %v12675_v15 = vand.u32 4294901760, %v9531_v55  ;;  %v13274_v16 = vand.u32 4294901760, %v9087_v14  ;;  %v13278_v14 = vand.u32 4294901760, %v9099_v52  ;;  %v13282_v52 = vand.u32 4294901760, %v9109_v29 }
  0xe3   : > { %1496 = vmatpush2.msra.mxu0 %v13260_v24  ;;  %1641 = vmatpush2.msra.mxu1 %v13261_v42  ;;  %13273 = vst [vmem:[#allocation84_spill] sm:$0xff] %v9584_v35  ;;  %v13275_v24 = vld [vmem:[#allocation62_spill] sm:$0xff]  ;;  %v9592_v42 = vsub.f32 %v301_v9, %v9544_v1  ;;  %v9611_v9 = vsub.f32 %v9510_v45, %v12673_v20  ;;  %v13284_v20 = vand.u32 4294901760, %v9120_v13 }
  0xe4   : > { %1500 = vmatprep.subr.mxu0 %v13264_v44  ;;  %1643 = vmatprep.subr.mxu1 %v13265_v34  ;;  %v286_v44 = vld [vmem:[%s12462_s3 + $0x150] sm:$0xff]  ;;  %v9603_v34 = vsub.f32 %v302_v5, %v9542_v48  ;;  %v12679_v5 = vand.u32 4294901760, %v9555_v38  ;;  %v9636_v29 = vsub.f32 %v9537_v60, %v12674_v63  ;;  %v281_v13 = vld [vmem:[%s12462_s3 + $0x128] sm:$0xff] }
  0xe5   : > { %1504 = vmatpush2.msra.mxu0 %v13267_v36  ;;  %1645 = vmatpush2.msra.mxu1 %v13268_v62  ;;  %13276 = vst [vmem:[#allocation86_spill] sm:$0xff] %v9592_v42  ;;  %v13279_v36 = vld [vmem:[#allocation64_spill] sm:$0xff]  ;;  %v9613_v62 = vand.u32 4294901760, %v292_v19  ;;  %v13288_v63 = vld [vmem:[#allocation70_spill] sm:$0xff] }
  0xe6   : > { %1508 = vmatprep.subr.mxu0 %v13271_v31  ;;  %1647 = vmatprep.subr.mxu1 %v13272_v40  ;;  %13277 = vst [vmem:[#allocation88_spill] sm:$0xff] %v9603_v34  ;;  %v9615_v31 = vand.u32 4294901760, %v291_v56  ;;  %v287_v40 = vld [vmem:[%s12462_s3 + $0x158] sm:$0xff] }
  0xe7   : > { %1512 = vmatpush2.msra.mxu0 %v13274_v16  ;;  %1649 = vmatpush2.msra.mxu1 %v13275_v24  ;;  %13280 = vst [vmem:[#allocation8_spill] sm:$0xff] %v9613_v62  ;;  %v9658_v21 = vand.u32 4294901760, %v287_v40  ;;  %v13290_v24 = vand.u32 4294901760, %v9147_v41  ;;  %v13291_v16 = vld [vmem:[#allocation72_spill] sm:$0xff]  ;;  %v13294_v41 = vand.u32 4294901760, %v9156_v61  ;;  %v13298_v61 = vand.u32 4294901760, %v9169_v7 }
  0xe8   : > { %1516 = vmatprep.subr.mxu0 %v13278_v14  ;;  %1651 = vmatprep.subr.mxu1 %v13279_v36  ;;  %13281 = vst [vmem:[#allocation29_spill] sm:$0xff] %v9615_v31  ;;  %v9627_v14 = vsub.f32 %v296_v32, %v9573_v28  ;;  %v12680_v36 = vand.u32 4294901760, %v9561_v23  ;;  %v282_v32 = vld [vmem:[%s12462_s3 + $0x130] sm:$0xff] }
  0xe9   : > { %1520 = vmatpush2.msra.mxu0 %v13282_v52  ;;  %1653 = vmatpush2.msra.mxu1 %v13134_v53  ;;  %v9641_v53 = vsub.f32 %v9531_v55, %v12675_v15  ;;  %v9643_v52 = vand.u32 4294901760, %v286_v44  ;;  %13289 = vst [vmem:[#allocation33_spill] sm:$0xff] %v9658_v21  ;;  %v9678_v15 = vsub.f32 %v292_v19, %v9613_v62  ;;  %v13304_v19 = vand.u32 4294901760, %v9603_v34 }
  0xea   : > { %13283 = vst [vmem:[#allocation9_spill] sm:$0xff] %v9627_v14  ;;  %1524 = vmatprep.subr.mxu0 %v13284_v20  ;;  %1655 = vmatprep.subr.mxu1 %v13135_v49  ;;  %v9652_v49 = vsub.f32 %v297_v22, %v9584_v35  ;;  %v13287_v20 = vand.u32 4294901760, %v9128_v12  ;;  %v9667_v12 = vsub.f32 %v291_v56, %v9615_v31  ;;  %v277_v22 = vld [vmem:[%s12462_s3 + $0x108] sm:$0xff] }
  0xeb   : > { %13285 = vst [vmem:[#allocation31_spill] sm:$0xff] %v9643_v52  ;;  %1657 = vmatpush2.msra.mxu1 %v13288_v63  ;;  %v9672_v63 = vsub.f32 %v9555_v38, %v12679_v5  ;;  %13293 = vst [vmem:[#allocation35_spill] sm:$0xff] %v9678_v15  ;;  %v9686_v56 = vsub.f32 %v9561_v23, %v12680_v36  ;;  %v9690_v5 = vand.u32 4294901760, %v281_v13  ;;  %1546 = vmatprep.mubr.f32.mxu0 %v13303_v37  ;;  %v13311_v23 = vld [vmem:[#allocation80_spill] sm:$0xff] }
  0xec   : > { %13286 = vst [vmem:[#allocation10_spill] sm:$0xff] %v9652_v49  ;;  %1528 = vmatpush2.msra.mxu0 %v13287_v20  ;;  %1659 = vmatprep.subr.mxu1 %v13291_v16  ;;  %13292 = vst [vmem:[#allocation11_spill] sm:$0xff] %v9667_v12  ;;  %v276_v20 = vld [vmem:[%s12462_s3 + $0x100] sm:$0xff]  ;;  %v13295_v16 = vld [vmem:[#allocation74_spill] sm:$0xff]  ;;  %v9702_v4 = vsub.f32 %v286_v44, %v9643_v52  ;;  %v9711_v7 = vsub.f32 %v9603_v34, %v13304_v19  ;;  %v9732_v11 = vand.u32 4294901760, %v277_v22 }
  0xed   : > { %1532 = vmatprep.subr.mxu0 %v13290_v24  ;;  %1661 = vmatpush2.msra.mxu1 %v13295_v16  ;;  %v9688_v24 = vand.u32 4294901760, %v282_v32  ;;  %13297 = vst [vmem:[#allocation37_spill] sm:$0xff] %v9690_v5  ;;  %v9718_v36 = vand.u32 4294901760, %v276_v20  ;;  %v272_v44 = vld [vmem:[%s12462_s3 + $0xe0] sm:$0xff]  ;;  %v9727_v33 = vsub.f32 %v287_v40, %v9658_v21  ;;  %v13308_v19 = vld [vmem:[#allocation78_spill] sm:$0xff]  ;;  %v9740_v40 = vsub.f32 %v281_v13, %v9690_v5 }
  0xee   : > { %1536 = vmatpush2.msra.mxu0 %v13294_v41  ;;  %v13299_v41 = vld [vmem:[#allocation76_spill] sm:$0xff]  ;;  %13300 = vst [vmem:[#allocation13_spill] sm:$0xff] %v9702_v4  ;;  %v13309_v16 = vld [vmem:[#allocation89_spill] sm:$0xff]  ;;  %13310 = vst [vmem:[#allocation41_spill] sm:$0xff] %v9732_v11  ;;  %v9760_v38 = vand.u32 4294901760, %v272_v44  ;;  %1683 = vmatprep.mubr.f32.mxu1 %v13303_v37 }
  0xef   : > { %13296 = vst [vmem:[#allocation12_spill] sm:$0xff] %v9688_v24  ;;  %1540 = vmatprep.subr.mxu0 %v13298_v61  ;;  %1663 = vmatprep.subr.mxu1 %v13299_v41  ;;  %v13305_v61 = vand.u32 4294901760, %v9592_v42  ;;  %13306 = vst [vmem:[#allocation39_spill] sm:$0xff] %v9718_v36  ;;  %v9751_v34 = vsub.f32 %v282_v32, %v9688_v24 }
  0xf0   : > { %1544 = vmatpush2.msra.mxu0 %v13302_v51  ;;  %v271_v51 = vld [vmem:[%s12462_s3 + $0xd8] sm:$0xff]  ;;  %13307 = vst [vmem:[#allocation14_spill] sm:$0xff] %v9727_v33  ;;  %1665 = vmatpush2.msra.mxu1 %v13308_v19  ;;  %13312 = vst [vmem:[#allocation15_spill] sm:$0xff] %v9740_v40  ;;  %v13313_v19 = vand.u32 4294901760, %v9627_v14 }
  0xf1   : > { %v9716_v41 = vsub.f32 %v9592_v42, %v13305_v61  ;;  %1548 = vmatmul.mubr.f32.vlgmr.msra.gmra.mxu0 %v13309_v16  ;;  %1667 = vmatprep.subr.mxu1 %v13311_v23  ;;  %v266_v61 = vld [vmem:[%s12462_s3 + $0xb0] sm:$0xff]  ;;  %13314 = vst [vmem:[#allocation43_spill] sm:$0xff] %v9751_v34  ;;  %v13315_v23 = vand.u32 4294901760, %v9652_v49  ;;  %13316 = vst [vmem:[#allocation16_spill] sm:$0xff] %v9760_v38  ;;  %v267_v42 = vld [vmem:[%s12462_s3 + $0xb8] sm:$0xff] }
  0xf2   : > { %1692 = vmatprep.subr.mxu0 %v9452_v0  ;;  %v9745_v55 = vsub.f32 %v9627_v14, %v13313_v19  ;;  %1669 = vmatpush2.msra.mxu1 %v8983_v54  ;;  %v9762_v19 = vand.u32 4294901760, %v271_v51  ;;  %v9788_v14 = vand.u32 4294901760, %v266_v61 }
  0xf3   : > { %1694 = vmatpush1.msra.mxu0 %v9454_v3  ;;  %v9758_v13 = vsub.f32 %v9652_v49, %v13315_v23  ;;  %1671 = vmatprep.subr.mxu1 %v9000_v50  ;;  %v9773_v23 = vsub.f32 %v276_v20, %v9718_v36  ;;  %v13319_v3 = vand.u32 4294901760, %v9678_v15  ;;  %v13320_v50 = vand.u32 4294901760, %v9667_v12  ;;  %v262_v20 = vld [vmem:[%s12462_s3 + $0x90] sm:$0xff] }
  0xf4   : > { %13317 = vst [vmem:[#allocation45_spill] sm:$0xff] %v9762_v19  ;;  %1696 = vmatprep.subr.mxu0 %v9465_v17  ;;  %1673 = vmatpush2.msra.mxu1 %v13144_v43  ;;  %13321 = vst [vmem:[#allocation47_spill] sm:$0xff] %v9788_v14  ;;  %v261_v43 = vld [vmem:[%s12462_s3 + $0x88] sm:$0xff]  ;;  %v9797_v49 = vsub.f32 %v277_v22, %v9732_v11  ;;  %v9810_v22 = vsub.f32 %v271_v51, %v9762_v19  ;;  %v13337_v17 = vand.u32 4294901760, %v9571_v25 }
  0xf5   : > { %13318 = vst [vmem:[#allocation17_spill] sm:$0xff] %v9773_v23  ;;  %1698 = vmatpush1.msra.mxu0 %v9476_v8  ;;  %v9781_v32 = vsub.f32 %v9678_v15, %v13319_v3  ;;  %v9786_v54 = vsub.f32 %v9667_v12, %v13320_v50  ;;  %1675 = vmatprep.subr.mxu1 %v13146_v2  ;;  %v9802_v50 = vand.u32 4294901760, %v267_v42  ;;  %v13325_v2 = vand.u32 4294901760, %v9702_v4  ;;  %v256_v3 = vld [vmem:[%s12462_s3 + $0x60] sm:$0xff]  ;;  %v257_v12 = vld [vmem:[%s12462_s3 + $0x68] sm:$0xff] }
  0xf6   : > { %13322 = vst [vmem:[#allocation18_spill] sm:$0xff] %v9797_v49  ;;  %1700 = vmatprep.subr.mxu0 %v9493_v27  ;;  %1677 = vmatpush2.msra.mxu1 %v13148_v58  ;;  %13324 = vst [vmem:[#allocation19_spill] sm:$0xff] %v9810_v22  ;;  %v9821_v15 = vsub.f32 %v272_v44, %v9760_v38  ;;  %v13327_v58 = vand.u32 4294901760, %v9727_v33  ;;  %v9830_v8 = vand.u32 4294901760, %v262_v20  ;;  %v13342_v25 = vand.u32 4294901760, %v9797_v49 }
  0xf7   : > { %13323 = vst [vmem:[#allocation49_spill] sm:$0xff] %v9802_v50  ;;  %1702 = vmatpush1.msra.mxu0 %v9495_v47  ;;  %v9815_v27 = vsub.f32 %v9702_v4, %v13325_v2  ;;  %1679 = vmatprep.subr.mxu1 %v9067_v39  ;;  %v9832_v2 = vand.u32 4294901760, %v261_v43  ;;  %v9858_v4 = vand.u32 4294901760, %v256_v3 }
  0xf8   : > { %13326 = vst [vmem:[#allocation51_spill] sm:$0xff] %v9821_v15  ;;  %1704 = vmatprep.subr.mxu0 %v9512_v59  ;;  %v9828_v51 = vsub.f32 %v9727_v33, %v13327_v58  ;;  %13328 = vst [vmem:[#allocation20_spill] sm:$0xff] %v9830_v8  ;;  %1681 = vmatpush2.msra.mxu1 %v9083_v57  ;;  %v9843_v58 = vsub.f32 %v266_v61, %v9788_v14  ;;  %v13331_v33 = vand.u32 4294901760, %v9751_v34  ;;  %v252_v61 = vld [vmem:[%s12462_s3 + $0x40] sm:$0xff]  ;;  %v251_v59 = vld [vmem:[%s12462_s3 + $0x38] sm:$0xff] }
  0xf9   : > { %13329 = vst [vmem:[#allocation53_spill] sm:$0xff] %v9832_v2  ;;  %1706 = vmatpush1.msra.mxu0 %v9523_v10  ;;  %1685 = vmatmul.mubr.f32.vlgmr.msra.gmra.mxu1 %v13309_v16  ;;  %v13332_v57 = vand.u32 4294901760, %v9740_v40  ;;  %13333 = vst [vmem:[#allocation55_spill] sm:$0xff] %v9858_v4  ;;  %v9867_v10 = vsub.f32 %v267_v42, %v9802_v50  ;;  %v9893_v47 = vsub.f32 %v262_v20, %v9830_v8 }
  0xfa   : > { %13330 = vst [vmem:[#allocation21_spill] sm:$0xff] %v9843_v58  ;;  %v9851_v44 = vsub.f32 %v9751_v34, %v13331_v33  ;;  %1708 = vmatprep.subr.mxu0 %v9542_v48  ;;  %v13335_v33 = vand.u32 4294901760, %v9566_v18  ;;  %v9882_v48 = vsub.f32 %v261_v43, %v9832_v2  ;;  %v13339_v18 = vand.u32 4294901760, %v9773_v23  ;;  %v247_v34 = vld [vmem:[%s12462_s3 + $0x18] sm:$0xff]  ;;  %2221 = vmatprep.mubr.f32.mxu1 %v13303_v37  ;;  %v13492_v37 = vld [vmem:[#allocation82_spill] sm:$0xff] }
  0xfb   : > { %v9856_v39 = vsub.f32 %v9740_v40, %v13332_v57  ;;  %13334 = vst [vmem:[#allocation22_spill] sm:$0xff] %v9867_v10  ;;  %v9873_v40 = vand.u32 4294901760, %v257_v12  ;;  %1710 = vmatpush1.msra.mxu0 %v9544_v1  ;;  %v246_v57 = vld [vmem:[%s12462_s3 + $0x10] sm:$0xff]  ;;  %13340 = vst [vmem:[#allocation59_spill] sm:$0xff] %v9893_v47  ;;  %v9901_v43 = vsub.f32 %v9797_v49, %v13342_v25  ;;  %v9903_v42 = vand.u32 4294901760, %v252_v61 }
  0xfc   : > { %1841 = vmatprep.subr.mxu1 %v13335_v33  ;;  %13338 = vst [vmem:[#allocation24_spill] sm:$0xff] %v9882_v48  ;;  %v9887_v33 = vsub.f32 %v9773_v23, %v13339_v18  ;;  %1712 = vmatprep.subr.mxu0 %v9584_v35  ;;  %v9905_v18 = vand.u32 4294901760, %v251_v59  ;;  %v9917_v23 = vsub.f32 %v256_v3, %v9858_v4  ;;  %v13347_v49 = vand.u32 4294901760, %v9636_v29  ;;  %v402_v3 = vld [vmem:[%s12462_s3 + $0x4f0] sm:$0xff]  ;;  %v401_v29 = vld [vmem:[%s12462_s3 + $0x4e8] sm:$0xff] }
  0xfd   : > { %13336 = vst [vmem:[#allocation57_spill] sm:$0xff] %v9873_v40  ;;  %1847 = vmatpush1.msra.mxu1 %v13337_v17  ;;  %v13341_v17 = vand.u32 4294901760, %v9597_v26  ;;  %13343 = vst [vmem:[#allocation26_spill] sm:$0xff] %v9903_v42  ;;  %1714 = vmatpush1.msra.mxu0 %v9573_v28  ;;  %v13345_v26 = vand.u32 4294901760, %v9611_v9  ;;  %v13348_v20 = vand.u32 4294901760, %v9821_v15  ;;  %v13349_v9 = vand.u32 4294901760, %v9810_v22 }
  0xfe   : > { %13344 = vst [vmem:[#allocation61_spill] sm:$0xff] %v9905_v18  ;;  %13346 = vst [vmem:[#allocation28_spill] sm:$0xff] %v9917_v23  ;;  %1716 = vmatprep.subr.mxu0 %v9613_v62  ;;  %v9933_v25 = vand.u32 4294901760, %v246_v57  ;;  %v13354_v62 = vand.u32 4294901760, %v9672_v63  ;;  %v13359_v63 = vand.u32 4294901760, %v9867_v10  ;;  %v9983_v35 = vand.u32 4294901760, %v401_v29 }
  0xff   : > { %1853 = vmatprep.subr.mxu1 %v13341_v17  ;;  %v9926_v28 = vsub.f32 %v9821_v15, %v13348_v20  ;;  %1718 = vmatpush1.msra.mxu0 %v9615_v31  ;;  %v13352_v20 = vand.u32 4294901760, %v9641_v53  ;;  %v9948_v17 = vand.u32 4294901760, %v247_v34  ;;  %v9957_v31 = vsub.f32 %v251_v59, %v9905_v18 }
 0x100   : > { %1859 = vmatpush1.msra.mxu1 %v13345_v26  ;;  %v9931_v26 = vsub.f32 %v9810_v22, %v13349_v9  ;;  %13350 = vst [vmem:[#allocation63_spill] sm:$0xff] %v9933_v25  ;;  %1720 = vmatprep.subr.mxu0 %v9658_v21  ;;  %v13356_v53 = vand.u32 4294901760, %v9843_v58  ;;  %v397_v9 = vld [vmem:[%s12462_s3 + $0x4c8] sm:$0xff]  ;;  %v396_v22 = vld [vmem:[%s12462_s3 + $0x4c0] sm:$0xff]  ;;  %v13358_v59 = vand.u32 4294901760, %v9686_v56  ;;  %13361 = vst [vmem:[#allocation69_spill] sm:$0xff] %v9983_v35 }
 0x101   : > { %1865 = vmatprep.subr.mxu1 %v13347_v49  ;;  %v9942_v49 = vsub.f32 %v257_v12, %v9873_v40  ;;  %13353 = vst [vmem:[#allocation65_spill] sm:$0xff] %v9948_v17  ;;  %13355 = vst [vmem:[#allocation32_spill] sm:$0xff] %v9957_v31  ;;  %1722 = vmatpush1.msra.mxu0 %v9643_v52  ;;  %v9981_v12 = vand.u32 4294901760, %v402_v3  ;;  %v13364_v21 = vand.u32 4294901760, %v9716_v41  ;;  %v10008_v56 = vand.u32 4294901760, %v397_v9  ;;  %v392_v52 = vld [vmem:[%s12462_s3 + $0x4a0] sm:$0xff] }
 0x102   : > { %1871 = vmatpush1.msra.mxu1 %v13352_v20  ;;  %v9962_v20 = vsub.f32 %v9843_v58, %v13356_v53  ;;  %v9979_v53 = vsub.f32 %v9867_v10, %v13359_v63  ;;  %1724 = vmatprep.subr.mxu0 %v9688_v24  ;;  %v13365_v58 = vand.u32 4294901760, %v9893_v47  ;;  %v13369_v41 = vand.u32 4294901760, %v9758_v13 }
 0x103   : > { %13351 = vst [vmem:[#allocation30_spill] sm:$0xff] %v9942_v49  ;;  %1877 = vmatprep.subr.mxu1 %v13354_v62  ;;  %v9971_v62 = vsub.f32 %v252_v61, %v9903_v42  ;;  %13360 = vst [vmem:[#allocation34_spill] sm:$0xff] %v9981_v12  ;;  %v13362_v61 = vand.u32 4294901760, %v9711_v7  ;;  %1726 = vmatpush1.msra.mxu0 %v9690_v5  ;;  %v13366_v7 = vand.u32 4294901760, %v9882_v48  ;;  %v10056_v13 = vand.u32 4294901760, %v392_v52 }
 0x104   : > { %1883 = vmatpush1.msra.mxu1 %v13358_v59  ;;  %v9992_v59 = vsub.f32 %v246_v57, %v9933_v25  ;;  %v10001_v24 = vsub.f32 %v9893_v47, %v13365_v58  ;;  %13367 = vst [vmem:[#allocation71_spill] sm:$0xff] %v10008_v56  ;;  %v10010_v57 = vand.u32 4294901760, %v396_v22  ;;  %1728 = vmatprep.subr.mxu0 %v9732_v11  ;;  %v13371_v11 = vand.u32 4294901760, %v9745_v55 }
 0x105   : > { %13357 = vst [vmem:[#allocation67_spill] sm:$0xff] %v9971_v62  ;;  %1889 = vmatprep.subr.mxu1 %v13362_v61  ;;  %v10006_v61 = vsub.f32 %v9882_v48, %v13366_v7  ;;  %v10025_v5 = vsub.f32 %v247_v34, %v9948_v17  ;;  %v386_v48 = vld [vmem:[%s12462_s3 + $0x470] sm:$0xff]  ;;  %1730 = vmatpush1.msra.mxu0 %v9718_v36  ;;  %v13373_v58 = vand.u32 4294901760, %v9917_v23  ;;  %v387_v34 = vld [vmem:[%s12462_s3 + $0x478] sm:$0xff]  ;;  %v13376_v55 = vand.u32 4294901760, %v9942_v49 }
 0x106   : > { %13363 = vst [vmem:[#allocation36_spill] sm:$0xff] %v9992_v59  ;;  %1895 = vmatpush1.msra.mxu1 %v13364_v21  ;;  %13368 = vst [vmem:[#allocation38_spill] sm:$0xff] %v10010_v57  ;;  %v391_v21 = vld [vmem:[%s12462_s3 + $0x498] sm:$0xff]  ;;  %v10046_v7 = vsub.f32 %v402_v3, %v9981_v12  ;;  %1732 = vmatprep.subr.mxu0 %v9760_v38  ;;  %v13379_v3 = vand.u32 4294901760, %v9786_v54  ;;  %v13383_v36 = vand.u32 4294901760, %v9971_v62  ;;  %v13384_v54 = vand.u32 4294901760, %v9957_v31 }
 0x107   : > { %1901 = vmatprep.subr.mxu1 %v13369_v41  ;;  %13370 = vst [vmem:[#allocation73_spill] sm:$0xff] %v10025_v5  ;;  %v10035_v41 = vsub.f32 %v401_v29, %v9983_v35  ;;  %v10040_v63 = vsub.f32 %v9917_v23, %v13373_v58  ;;  %v10054_v29 = vsub.f32 %v9942_v49, %v13376_v55  ;;  %13377 = vst [vmem:[#allocation42_spill] sm:$0xff] %v10056_v13  ;;  %v382_v38 = vld [vmem:[%s12462_s3 + $0x450] sm:$0xff] }
 0x108   : > { %1907 = vmatpush1.msra.mxu1 %v13371_v11  ;;  %13374 = vst [vmem:[#allocation75_spill] sm:$0xff] %v10046_v7  ;;  %v13375_v11 = vand.u32 4294901760, %v9781_v32  ;;  %v10058_v58 = vand.u32 4294901760, %v391_v21  ;;  %1734 = vmatpush1.msra.mxu0 %v9762_v19  ;;  %v10069_v55 = vand.u32 4294901760, %v386_v48  ;;  %v13382_v23 = vand.u32 4294901760, %v9828_v51 }
 0x109   : > { %13372 = vst [vmem:[#allocation40_spill] sm:$0xff] %v10035_v41  ;;  %1736 = vmatprep.subr.mxu0 %v9802_v50  ;;  %v10077_v19 = vsub.f32 %v9971_v62, %v13383_v36  ;;  %v10084_v32 = vand.u32 4294901760, %v387_v34  ;;  %v13386_v36 = vand.u32 4294901760, %v9815_v27  ;;  %v13390_v51 = vand.u32 4294901760, %v9992_v59 }
 0x10a   : > { %1913 = vmatprep.subr.mxu1 %v13375_v11  ;;  %13378 = vst [vmem:[#allocation77_spill] sm:$0xff] %v10058_v58  ;;  %v10067_v11 = vsub.f32 %v396_v22, %v10010_v57  ;;  %13381 = vst [vmem:[#allocation79_spill] sm:$0xff] %v10069_v55  ;;  %1738 = vmatpush1.msra.mxu0 %v9788_v14  ;;  %v10100_v22 = vsub.f32 %v397_v9, %v10008_v56  ;;  %v13388_v14 = vand.u32 4294901760, %v9851_v44  ;;  %v377_v9 = vld [vmem:[%s12462_s3 + $0x428] sm:$0xff] }
 0x10b   : > { %1919 = vmatpush1.msra.mxu1 %v13379_v3  ;;  %v10082_v3 = vsub.f32 %v9957_v31, %v13384_v54  ;;  %13385 = vst [vmem:[#allocation46_spill] sm:$0xff] %v10084_v32  ;;  %v376_v31 = vld [vmem:[%s12462_s3 + $0x420] sm:$0xff]  ;;  %1740 = vmatprep.subr.mxu0 %v9830_v8  ;;  %v10115_v50 = vsub.f32 %v9992_v59, %v13390_v51  ;;  %v13396_v8 = vand.u32 4294901760, %v9901_v43  ;;  %v371_v51 = vld [vmem:[%s12462_s3 + $0x3f8] sm:$0xff]  ;;  %v13399_v43 = vand.u32 4294901760, %v9887_v33  ;;  %v366_v59 = vld [vmem:[%s12462_s3 + $0x3d0] sm:$0xff] }
 0x10c   : > { %13380 = vst [vmem:[#allocation44_spill] sm:$0xff] %v10067_v11  ;;  %1925 = vmatprep.subr.mxu1 %v13382_v23  ;;  %v381_v23 = vld [vmem:[%s12462_s3 + $0x448] sm:$0xff]  ;;  %13387 = vst [vmem:[#allocation48_spill] sm:$0xff] %v10100_v22  ;;  %v10121_v54 = vsub.f32 %v392_v52, %v10056_v13  ;;  %1742 = vmatpush1.msra.mxu0 %v9832_v2  ;;  %v10127_v44 = vsub.f32 %v386_v48, %v10069_v55  ;;  %v13401_v52 = vand.u32 4294901760, %v10035_v41 }
 0x10d   : > { %1931 = vmatpush1.msra.mxu1 %v13386_v36  ;;  %v10110_v36 = vsub.f32 %v391_v21, %v10058_v58  ;;  %v10129_v21 = vand.u32 4294901760, %v382_v38  ;;  %v10131_v27 = vand.u32 4294901760, %v381_v23  ;;  %1744 = vmatprep.subr.mxu0 %v9873_v40  ;;  %v10162_v40 = vand.u32 4294901760, %v377_v9 }
 0x10e   : > { %1937 = vmatprep.subr.mxu1 %v13388_v14  ;;  %13391 = vst [vmem:[#allocation52_spill] sm:$0xff] %v10121_v54  ;;  %v13392_v14 = vand.u32 4294901760, %v9856_v39  ;;  %13393 = vst [vmem:[#allocation54_spill] sm:$0xff] %v10127_v44  ;;  %v13397_v39 = vand.u32 4294901760, %v10025_v5  ;;  %1746 = vmatpush1.msra.mxu0 %v9858_v4  ;;  %v372_v4 = vld [vmem:[%s12462_s3 + $0x400] sm:$0xff]  ;;  %v13403_v33 = vand.u32 4294901760, %v9926_v28 }
 0x10f   : > { %13389 = vst [vmem:[#allocation50_spill] sm:$0xff] %v10110_v36  ;;  %13394 = vst [vmem:[#allocation56_spill] sm:$0xff] %v10129_v21  ;;  %1748 = vmatprep.subr.mxu0 %v9903_v42  ;;  %v13405_v42 = vand.u32 4294901760, %v9931_v26  ;;  %v10184_v28 = vsub.f32 %v381_v23, %v10131_v27 }
 0x110   : > { %1943 = vmatpush1.msra.mxu1 %v13392_v14  ;;  %13395 = vst [vmem:[#allocation58_spill] sm:$0xff] %v10131_v27  ;;  %v10142_v48 = vsub.f32 %v10025_v5, %v13397_v39  ;;  %v10144_v14 = vand.u32 4294901760, %v376_v31  ;;  %v10160_v39 = vsub.f32 %v10035_v41, %v13401_v52  ;;  %13402 = vst [vmem:[#allocation62_spill] sm:$0xff] %v10162_v40  ;;  %1750 = vmatpush1.msra.mxu0 %v9905_v18 }
 0x111   : > { %1949 = vmatprep.subr.mxu1 %v13396_v8  ;;  %v13400_v8 = vand.u32 4294901760, %v10046_v7  ;;  %v10175_v41 = vsub.f32 %v387_v34, %v10084_v32  ;;  %13406 = vst [vmem:[#allocation70_spill] sm:$0xff] %v10184_v28  ;;  %v10191_v52 = vand.u32 4294901760, %v371_v51  ;;  %v367_v34 = vld [vmem:[%s12462_s3 + $0x3d8] sm:$0xff]  ;;  %1752 = vmatprep.subr.mxu0 %v9948_v17  ;;  %v13418_v17 = vand.u32 4294901760, %v10110_v36 }
 0x112   : > { %13398 = vst [vmem:[#allocation60_spill] sm:$0xff] %v10144_v14  ;;  %1955 = vmatpush1.msra.mxu1 %v13399_v43  ;;  %v2020_v26 = vand.u32 4294901760, %v10142_v48  ;;  %v10204_v23 = vsub.f32 %v376_v31, %v10144_v14  ;;  %1754 = vmatpush1.msra.mxu0 %v9933_v25  ;;  %v10219_v31 = vand.u32 4294901760, %v366_v59  ;;  %v10237_v18 = vand.u32 4294901760, %v367_v34  ;;  %v356_v25 = vld [vmem:[%s12462_s3 + $0x380] sm:$0xff] }
 0x113   : > { %v10155_v2 = vsub.f32 %v10046_v7, %v13400_v8  ;;  %1961 = vmatprep.subr.mxu1 %v13403_v33  ;;  %13404 = vst [vmem:[#allocation64_spill] sm:$0xff] %v10175_v41  ;;  %v13407_v33 = vand.u32 4294901760, %v10067_v11  ;;  %13408 = vst [vmem:[#allocation72_spill] sm:$0xff] %v10191_v52  ;;  %v10197_v8 = vsub.f32 %v382_v38, %v10129_v21  ;;  %1756 = vmatprep.subr.mxu0 %v9981_v12  ;;  %v362_v12 = vld [vmem:[%s12462_s3 + $0x3b0] sm:$0xff] }
 0x114   : > { %1967 = vmatpush1.msra.mxu1 %v13405_v42  ;;  %v13410_v42 = vand.u32 4294901760, %v9979_v53  ;;  %13411 = vst [vmem:[#allocation76_spill] sm:$0xff] %v10204_v23  ;;  %v13414_v53 = vand.u32 4294901760, %v10100_v22  ;;  %13415 = vst [vmem:[#allocation78_spill] sm:$0xff] %v10219_v31  ;;  %1758 = vmatpush2.msra.mxu0 %v9983_v35  ;;  %v13423_v35 = vand.u32 4294901760, %v10054_v29 }
 0x115   : > { %v10189_v43 = vsub.f32 %v10067_v11, %v13407_v33  ;;  %13409 = vst [vmem:[#allocation74_spill] sm:$0xff] %v10197_v8  ;;  %v10206_v33 = vand.u32 4294901760, %v372_v4  ;;  %v13413_v11 = vand.u32 4294901760, %v9962_v20  ;;  %v2032_v38 = vand.u32 4294901760, %v10155_v2  ;;  %13419 = vst [vmem:[#allocation80_spill] sm:$0xff] %v10237_v18  ;;  %1760 = vmatprep.subr.mxu0 %v10008_v56 }
 0x116   : > { %1973 = vmatprep.subr.mxu1 %v13410_v42  ;;  %v10217_v48 = vsub.f32 %v10100_v22, %v13414_v53  ;;  %v361_v42 = vld [vmem:[%s12462_s3 + $0x3a8] sm:$0xff]  ;;  %v13416_v20 = vand.u32 4294901760, %v10001_v24  ;;  %v13417_v2 = vand.u32 4294901760, %v10121_v54  ;;  %v10235_v53 = vsub.f32 %v10110_v36, %v13418_v17  ;;  %1762 = vmatpush2.msra.mxu0 %v10010_v57 }
 0x117   : > { %13412 = vst [vmem:[#allocation97_spill] sm:$0xff] %v10206_v33  ;;  %1979 = vmatpush1.msra.mxu1 %v13413_v11  ;;  %v13420_v24 = vand.u32 4294901760, %v10006_v61  ;;  %v10252_v36 = vsub.f32 %v377_v9, %v10162_v40  ;;  %v13424_v61 = vand.u32 4294901760, %v10127_v44  ;;  %v357_v9 = vld [vmem:[%s12462_s3 + $0x388] sm:$0xff]  ;;  %v10272_v17 = vsub.f32 %v372_v4, %v10206_v33  ;;  %1764 = vmatprep.subr.mxu0 %v10056_v13 }
 0x118   : > { %1985 = vmatprep.subr.mxu1 %v13416_v20  ;;  %v10230_v11 = vsub.f32 %v10121_v54, %v13417_v2  ;;  %v10248_v2 = vsub.f32 %v371_v51, %v10191_v52  ;;  %v10265_v51 = vand.u32 4294901760, %v361_v42  ;;  %v2044_v29 = vand.u32 4294901760, %v10217_v48  ;;  %1766 = vmatpush2.msra.mxu0 %v10058_v58  ;;  %v352_v20 = vld [vmem:[%s12462_s3 + $0x360] sm:$0xff] }
 0x119   : > { %1991 = vmatpush1.msra.mxu1 %v13420_v24  ;;  %13422 = vst [vmem:[#allocation99_spill] sm:$0xff] %v10252_v36  ;;  %v10263_v24 = vsub.f32 %v10127_v44, %v13424_v61  ;;  %13426 = vst [vmem:[#allocation101_spill] sm:$0xff] %v10272_v17  ;;  %v10279_v61 = vsub.f32 %v366_v59, %v10219_v31  ;;  %v10281_v56 = vand.u32 4294901760, %v362_v12  ;;  %v13430_v44 = vand.u32 4294901760, %v10077_v19 }
 0x11a   : > { %13421 = vst [vmem:[#allocation98_spill] sm:$0xff] %v10248_v2  ;;  %1997 = vmatprep.subr.mxu1 %v13423_v35  ;;  %13425 = vst [vmem:[#allocation100_spill] sm:$0xff] %v10265_v51  ;;  %v13427_v35 = vand.u32 4294901760, %v10040_v63  ;;  %v2056_v4 = vand.u32 4294901760, %v10230_v11  ;;  %v2062_v57 = vand.u32 4294901760, %v10235_v53  ;;  %v13431_v63 = vand.u32 4294901760, %v10175_v41  ;;  %1768 = vmatprep.subr.mxu0 %v10084_v32 }
 0x11b   : > { %13428 = vst [vmem:[#allocation102_spill] sm:$0xff] %v10279_v61  ;;  %13429 = vst [vmem:[#allocation103_spill] sm:$0xff] %v10281_v56  ;;  %v10294_v59 = vand.u32 4294901760, %v356_v25  ;;  %v13433_v19 = vand.u32 4294901760, %v10082_v3  ;;  %v10307_v53 = vand.u32 4294901760, %v357_v9  ;;  %v10314_v13 = vsub.f32 %v367_v34, %v10237_v18  ;;  %v346_v34 = vld [vmem:[%s12462_s3 + $0x330] sm:$0xff]  ;;  %1770 = vmatpush2.msra.mxu0 %v10069_v55 }
 0x11c   : > { %2003 = vmatpush1.msra.mxu1 %v13427_v35  ;;  %v10292_v48 = vsub.f32 %v10175_v41, %v13431_v63  ;;  %v351_v35 = vld [vmem:[%s12462_s3 + $0x358] sm:$0xff]  ;;  %v2074_v3 = vand.u32 4294901760, %v10263_v24  ;;  %v13440_v24 = vand.u32 4294901760, %v10204_v23  ;;  %1772 = vmatprep.subr.mxu0 %v10129_v21  ;;  %v10353_v55 = vsub.f32 %v362_v12, %v10281_v56  ;;  %v342_v12 = vld [vmem:[%s12462_s3 + $0x310] sm:$0xff] }
 0x11d   : > { %2009 = vmatprep.subr.mxu1 %v13430_v44  ;;  %13432 = vst [vmem:[#allocation104_spill] sm:$0xff] %v10294_v59  ;;  %v13434_v44 = vand.u32 4294901760, %v10197_v8  ;;  %13435 = vst [vmem:[#allocation105_spill] sm:$0xff] %v10307_v53  ;;  %v10338_v32 = vand.u32 4294901760, %v351_v35  ;;  %v347_v63 = vld [vmem:[%s12462_s3 + $0x338] sm:$0xff]  ;;  %1774 = vmatpush2.msra.mxu0 %v10131_v27  ;;  %v13446_v21 = vand.u32 4294901760, %v10252_v36 }
 0x11e   : > { %2015 = vmatpush1.msra.mxu1 %v13433_v19  ;;  %13436 = vst [vmem:[#allocation106_spill] sm:$0xff] %v10314_v13  ;;  %v10319_v19 = vsub.f32 %v361_v42, %v10265_v51  ;;  %v10336_v42 = vsub.f32 %v10204_v23, %v13440_v24  ;;  %v10350_v24 = vand.u32 4294901760, %v352_v20  ;;  %13444 = vst [vmem:[#allocation111_spill] sm:$0xff] %v10353_v55  ;;  %v341_v27 = vld [vmem:[%s12462_s3 + $0x308] sm:$0xff]  ;;  %1776 = vmatprep.subr.mxu0 %v10162_v40 }
 0x11f   : > { %v10305_v11 = vsub.f32 %v10197_v8, %v13434_v44  ;;  %2021 = vmatprep.subr.mxu1 %v2020_v26  ;;  %v13438_v44 = vand.u32 4294901760, %v10184_v28  ;;  %v13439_v26 = vand.u32 4294901760, %v10115_v50  ;;  %13441 = vst [vmem:[#allocation108_spill] sm:$0xff] %v10338_v32  ;;  %v2068_v50 = vand.u32 4294901760, %v10292_v48  ;;  %1778 = vmatpush2.msra.mxu0 %v10144_v14 }
 0x120   : > { %13437 = vst [vmem:[#allocation107_spill] sm:$0xff] %v10319_v19  ;;  %13443 = vst [vmem:[#allocation110_spill] sm:$0xff] %v10350_v24  ;;  %v10381_v48 = vsub.f32 %v357_v9, %v10307_v53  ;;  %v13449_v23 = vand.u32 4294901760, %v10189_v43  ;;  %v2098_v40 = vand.u32 4294901760, %v10336_v42  ;;  %v336_v43 = vld [vmem:[%s12462_s3 + $0x2e0] sm:$0xff]  ;;  %1780 = vmatprep.subr.mxu0 %v10206_v33  ;;  %v10407_v42 = vand.u32 4294901760, %v341_v27 }
 0x121   : > { %v10324_v58 = vsub.f32 %v10184_v28, %v13438_v44  ;;  %2027 = vmatpush1.msra.mxu1 %v13439_v26  ;;  %v10348_v26 = vsub.f32 %v356_v25, %v10294_v59  ;;  %v13445_v44 = vand.u32 4294901760, %v10160_v39  ;;  %v2080_v28 = vand.u32 4294901760, %v10305_v11  ;;  %1782 = vmatpush2.msra.mxu0 %v10191_v52 }
 0x122   : > { %2033 = vmatprep.subr.mxu1 %v2032_v38  ;;  %v2091_v38 = vsub.f32 %v10252_v36, %v13446_v21  ;;  %v10363_v25 = vand.u32 4294901760, %v346_v34  ;;  %v13447_v11 = vand.u32 4294901760, %v10272_v17  ;;  %13448 = vst [vmem:[#allocation112_spill] sm:$0xff] %v10381_v48  ;;  %v13454_v33 = vand.u32 4294901760, %v10314_v13  ;;  %1784 = vmatprep.subr.mxu0 %v10237_v18 }
 0x123   : > { %13442 = vst [vmem:[#allocation109_spill] sm:$0xff] %v10348_v26  ;;  %2039 = vmatpush2.msra.mxu1 %v13445_v44  ;;  %v2086_v39 = vand.u32 4294901760, %v10324_v58  ;;  %v10378_v44 = vand.u32 4294901760, %v347_v63  ;;  %v13451_v58 = vand.u32 4294901760, %v10248_v2  ;;  %v10426_v36 = vand.u32 4294901760, %v336_v43  ;;  %1786 = vmatpush2.msra.mxu0 %v10219_v31 }
 0x124   : > { %2045 = vmatprep.subr.mxu1 %v2044_v29  ;;  %v10376_v21 = vsub.f32 %v10272_v17, %v13447_v11  ;;  %v10388_v29 = vsub.f32 %v351_v35, %v10338_v32  ;;  %v13452_v17 = vand.u32 4294901760, %v10279_v61  ;;  %v2092_v14 = vand.u32 4294901760, %v2091_v38  ;;  %1788 = vmatprep.subr.mxu0 %v10281_v56 }
 0x125   : > { %2051 = vmatpush2.msra.mxu1 %v13449_v23  ;;  %v10393_v11 = vsub.f32 %v10248_v2, %v13451_v58  ;;  %v10404_v23 = vand.u32 4294901760, %v342_v12  ;;  %v337_v58 = vld [vmem:[%s12462_s3 + $0x2e8] sm:$0xff]  ;;  %1790 = vmatpush2.msra.mxu0 %v10265_v51  ;;  %v13458_v56 = vand.u32 4294901760, %v10319_v19 }
 0x126   : > { %13450 = vst [vmem:[#allocation113_spill] sm:$0xff] %v10388_v29  ;;  %v10398_v9 = vsub.f32 %v10279_v61, %v13452_v17  ;;  %2057 = vmatprep.subr.mxu1 %v2056_v4  ;;  %v10413_v17 = vsub.f32 %v352_v20, %v10350_v24  ;;  %v2115_v4 = vsub.f32 %v10314_v13, %v13454_v33  ;;  %v2104_v2 = vand.u32 4294901760, %v10376_v21  ;;  %v331_v20 = vld [vmem:[%s12462_s3 + $0x2b8] sm:$0xff] }
 0x127   : > { %2063 = vmatpush2.msra.mxu1 %v2062_v57  ;;  %v10420_v61 = vsub.f32 %v346_v34, %v10363_v25  ;;  %v332_v57 = vld [vmem:[%s12462_s3 + $0x2c0] sm:$0xff]  ;;  %v10432_v33 = vsub.f32 %v347_v63, %v10378_v44  ;;  %v2110_v34 = vand.u32 4294901760, %v10393_v11  ;;  %v10437_v38 = vand.u32 4294901760, %v337_v58  ;;  %v326_v11 = vld [vmem:[%s12462_s3 + $0x290] sm:$0xff]  ;;  %1792 = vmatprep.subr.mxu0 %v10307_v53 }
 0x128   : > { %13453 = vst [vmem:[#allocation114_spill] sm:$0xff] %v10413_v17  ;;  %2069 = vmatprep.subr.mxu1 %v2068_v50  ;;  %v2122_v50 = vand.u32 4294901760, %v10398_v9  ;;  %v13457_v63 = vand.u32 4294901760, %v10353_v55  ;;  %v327_v9 = vld [vmem:[%s12462_s3 + $0x298] sm:$0xff]  ;;  %v10455_v21 = vsub.f32 %v342_v12, %v10404_v23  ;;  %v10461_v31 = vand.u32 4294901760, %v332_v57  ;;  %1794 = vmatpush2.msra.mxu0 %v10294_v59 }
 0x129   : > { %13455 = vst [vmem:[#allocation115_spill] sm:$0xff] %v10420_v61  ;;  %13456 = vst [vmem:[#allocation116_spill] sm:$0xff] %v10432_v33  ;;  %2075 = vmatpush2.msra.mxu1 %v2074_v3  ;;  %v10448_v3 = vsub.f32 %v341_v27, %v10407_v42  ;;  %v13459_v12 = vand.u32 4294901760, %v10381_v48  ;;  %v10474_v51 = vand.u32 4294901760, %v331_v20  ;;  %v13461_v27 = vand.u32 4294901760, %v10348_v26  ;;  %1796 = vmatprep.subr.mxu0 %v10350_v24 }
 0x12a   : > { %2081 = vmatprep.subr.mxu1 %v2080_v28  ;;  %v2127_v35 = vsub.f32 %v10353_v55, %v13457_v63  ;;  %v2116_v28 = vand.u32 4294901760, %v2115_v4  ;;  %v2133_v63 = vsub.f32 %v10319_v19, %v13458_v56  ;;  %v10472_v4 = vsub.f32 %v336_v43, %v10426_v36  ;;  %1798 = vmatpush2.msra.mxu0 %v10338_v32 }
 0x12b   : > { %2087 = vmatpush2.msra.mxu1 %v2086_v39  ;;  %v2139_v39 = vsub.f32 %v10381_v48, %v13459_v12  ;;  %v2145_v18 = vsub.f32 %v10348_v26, %v13461_v27  ;;  %v10481_v53 = vand.u32 4294901760, %v327_v9  ;;  %v10485_v12 = vsub.f32 %v337_v58, %v10437_v38  ;;  %1800 = vmatprep.subr.mxu0 %v10378_v44 }
 0x12c   : > { %2093 = vmatprep.subr.mxu1 %v2092_v14  ;;  %13460 = vst [vmem:[#allocation117_spill] sm:$0xff] %v10472_v4  ;;  %v2128_v43 = vand.u32 4294901760, %v2127_v35  ;;  %v13463_v56 = vand.u32 4294901760, %v10413_v17  ;;  %v2134_v27 = vand.u32 4294901760, %v2133_v63  ;;  %v13464_v14 = vand.u32 4294901760, %v10388_v29  ;;  %1802 = vmatpush2.msra.mxu0 %v10363_v25 }
 0x12d   : > { %2099 = vmatpush2.msra.mxu1 %v2098_v40  ;;  %13462 = vst [vmem:[#allocation118_spill] sm:$0xff] %v10485_v12  ;;  %v10491_v40 = vand.u32 4294901760, %v326_v11  ;;  %v10499_v24 = vsub.f32 %v332_v57, %v10461_v31  ;;  %v10503_v35 = vsub.f32 %v331_v20, %v10474_v51  ;;  %v2146_v63 = vand.u32 4294901760, %v2145_v18  ;;  %1804 = vmatprep.subr.mxu0 %v10404_v23 }
 0x12e   : > { %2105 = vmatprep.subr.mxu1 %v2104_v2  ;;  %v2151_v59 = vsub.f32 %v10413_v17, %v13463_v56  ;;  %v2157_v58 = vsub.f32 %v10388_v29, %v13464_v14  ;;  %v2140_v2 = vand.u32 4294901760, %v2139_v39  ;;  %v13465_v56 = vand.u32 4294901760, %v10432_v33  ;;  %1806 = vmatpush2.msra.mxu0 %v10407_v42 }
 0x12f   : > { %2111 = vmatpush2.msra.mxu1 %v2110_v34  ;;  %v13466_v57 = vand.u32 4294901760, %v10420_v61  ;;  %v10515_v39 = vsub.f32 %v327_v9, %v10481_v53  ;;  %v13468_v34 = vand.u32 4294901760, %v10455_v21  ;;  %v12849_v9 = vand.u32 4294901760, %v10499_v24  ;;  %1808 = vmatprep.subr.mxu0 %v10437_v38 }
 0x130   : > { %2117 = vmatprep.subr.mxu1 %v2116_v28  ;;  %v2163_v52 = vsub.f32 %v10432_v33, %v13465_v56  ;;  %v2152_v20 = vand.u32 4294901760, %v2151_v59  ;;  %v10519_v56 = vsub.f32 %v326_v11, %v10491_v40  ;;  %v13469_v59 = vand.u32 4294901760, %v10448_v3  ;;  %1810 = vmatpush2.msra.mxu0 %v10426_v36 }
 0x131   : > { %2123 = vmatpush2.msra.mxu1 %v2122_v50  ;;  %v2169_v14 = vsub.f32 %v10420_v61, %v13466_v57  ;;  %v2175_v18 = vsub.f32 %v10455_v21, %v13468_v34  ;;  %v2158_v57 = vand.u32 4294901760, %v2157_v58  ;;  %v13470_v50 = vand.u32 4294901760, %v10485_v12  ;;  %1812 = vmatprep.subr.mxu0 %v10461_v31 }
 0x132   : > { %2129 = vmatprep.subr.mxu1 %v2128_v43  ;;  %13467 = vst [vmem:[#allocation119_spill] sm:$0xff] %v10519_v56  ;;  %v2164_v43 = vand.u32 4294901760, %v2163_v52  ;;  %v2181_v11 = vsub.f32 %v10448_v3, %v13469_v59  ;;  %v12851_v58 = vand.u32 4294901760, %v10515_v39  ;;  %v12850_v28 = vand.u32 4294901760, %v10519_v56  ;;  %1814 = vmatpush2.msra.mxu0 %v10474_v51 }
 0x133   : > { %2135 = vmatpush2.msra.mxu1 %v2134_v27  ;;  %v2170_v34 = vand.u32 4294901760, %v2169_v14  ;;  %v2187_v27 = vsub.f32 %v10485_v12, %v13470_v50  ;;  %v2176_v52 = vand.u32 4294901760, %v2175_v18  ;;  %1816 = vmatprep.subr.mxu0 %v10481_v53 }
 0x134   : > { %2141 = vmatprep.subr.mxu1 %v2140_v2  ;;  %v13471_v2 = vand.u32 4294901760, %v10472_v4  ;;  %v2182_v14 = vand.u32 4294901760, %v2181_v11  ;;  %1818 = vmatpush2.msra.mxu0 %v10491_v40  ;;  %v13474_v11 = vld [vmem:[#allocation95_spill] sm:$0xff] }
 0x135   : > { %2147 = vmatpush2.msra.mxu1 %v2146_v63  ;;  %v2199_v63 = vsub.f32 %v10499_v24, %v12849_v9  ;;  %v2188_v50 = vand.u32 4294901760, %v2187_v27  ;;  %2231 = vmatprep.subr.mxu0 %v9488_v46 }
 0x136   : > { %2153 = vmatprep.subr.mxu1 %v2152_v20  ;;  %v2193_v59 = vsub.f32 %v10472_v4, %v13471_v2  ;;  %v13472_v20 = vand.u32 4294901760, %v10503_v35  ;;  %v13473_v2 = vld [vmem:[#allocation96_spill] sm:$0xff] }
 0x137   : > { %2159 = vmatpush2.msra.mxu1 %v2158_v57  ;;  %v2211_v57 = vsub.f32 %v10515_v39, %v12851_v58  ;;  %1824 = vmatprep.mubr.f32.mxu0 %v13473_v2  ;;  %v13488_v58 = vld [vmem:[#allocation27_spill] sm:$0xff]  ;;  %v13490_v2 = vld [vmem:[#allocation81_spill] sm:$0xff] }
 0x138   : > { %2165 = vmatprep.subr.mxu1 %v2164_v43  ;;  %v2205_v18 = vsub.f32 %v10503_v35, %v13472_v20  ;;  %v2194_v9 = vand.u32 4294901760, %v2193_v59  ;;  %v2217_v43 = vsub.f32 %v10519_v56, %v12850_v28  ;;  %1830 = vmatmul.mubr.f32.vlgmr.msra.gmra.mxu0 %v13474_v11  ;;  %v2200_v20 = vand.u32 4294901760, %v2199_v63  ;;  %v13475_v59 = vld [vmem:[#allocation83_spill] sm:$0xff]  ;;  %v13476_v63 = vld [vmem:[#allocation66_spill] sm:$0xff] }
 0x139   : > { %2171 = vmatpush2.msra.mxu1 %v2170_v34  ;;  %2234 = vmatpush1.msra.mxu0 %v9482_v6  ;;  %v2212_v27 = vand.u32 4294901760, %v2211_v57  ;;  %v13481_v57 = vld [vmem:[#allocation10_spill] sm:$0xff]  ;;  %v13487_v28 = vld [vmem:[#allocation11_spill] sm:$0xff] }
 0x13a   : > { %2177 = vmatprep.subr.mxu1 %v2176_v52  ;;  %v2206_v34 = vand.u32 4294901760, %v2205_v18  ;;  %2237 = vmatprep.subr.mxu0 %v9504_v30  ;;  %v2218_v52 = vand.u32 4294901760, %v2217_v43  ;;  %v13479_v18 = vld [vmem:[#allocation86_spill] sm:$0xff]  ;;  %v13482_v43 = vld [vmem:[#allocation23_spill] sm:$0xff] }
 0x13b   : > { %2183 = vmatpush2.msra.mxu1 %v2182_v14  ;;  %2240 = vmatpush1.msra.mxu0 %v9510_v45  ;;  %v13477_v14 = vld [vmem:[#allocation68_spill] sm:$0xff]  ;;  %v13489_v11 = vld [vmem:[#allocation14_spill] sm:$0xff] }
 0x13c   : > { %2189 = vmatprep.subr.mxu1 %v2188_v50  ;;  %2243 = vmatprep.subr.mxu0 %v9537_v60  ;;  %v13480_v50 = vld [vmem:[#allocation6_spill] sm:$0xff] }
 0x13d   : > { %2195 = vmatpush2.msra.mxu1 %v2194_v9  ;;  %2246 = vmatpush1.msra.mxu0 %v13475_v59  ;;  %v13478_v9 = vld [vmem:[#allocation88_spill] sm:$0xff] }
 0x13e   : > { %2201 = vmatprep.subr.mxu1 %v2200_v20  ;;  %2249 = vmatprep.subr.mxu0 %v13476_v63  ;;  %v13483_v20 = vld [vmem:[#allocation9_spill] sm:$0xff] }
 0x13f   : > { %2207 = vmatpush2.msra.mxu1 %v2206_v34  ;;  %2252 = vmatpush1.msra.mxu0 %v13477_v14  ;;  %v13484_v34 = vld [vmem:[#allocation7_spill] sm:$0xff] }
 0x140   : > { %2213 = vmatprep.subr.mxu1 %v2212_v27  ;;  %2255 = vmatprep.subr.mxu0 %v13478_v9  ;;  %v13485_v27 = vld [vmem:[#allocation35_spill] sm:$0xff] }
 0x141   : > { %2219 = vmatpush2.msra.mxu1 %v2218_v52  ;;  %2258 = vmatpush1.msra.mxu0 %v13479_v18  ;;  %v13486_v52 = vld [vmem:[#allocation25_spill] sm:$0xff] }
 0x142   : > { %2223 = vmatmul.mubr.f32.vlgmr.msra.gmra.mxu1 %v13309_v16  ;;  %2433 = vmatprep.subr.mxu1 %v9452_v0  ;;  %v13491_v16 = vld [vmem:[#allocation13_spill] sm:$0xff] }
 0x143   : > { %2435 = vmatpush1.msra.mxu1 %v13480_v50  ;;  %2261 = vmatprep.subr.mxu0 %v13481_v57 }
 0x144   : > { %2437 = vmatprep.subr.mxu1 %v13482_v43  ;;  %2264 = vmatpush1.msra.mxu0 %v13483_v20  ;;  %v13493_v43 = vld [vmem:[#allocation43_spill] sm:$0xff]  ;;  %v13494_v20 = vld [vmem:[#allocation85_spill] sm:$0xff] }
 0x145   : > { %2439 = vmatpush1.msra.mxu1 %v13484_v34  ;;  %2267 = vmatprep.subr.mxu0 %v13485_v27  ;;  %v13495_v34 = vld [vmem:[#allocation15_spill] sm:$0xff] }
 0x146   : > { %2441 = vmatprep.subr.mxu1 %v13486_v52  ;;  %2270 = vmatpush1.msra.mxu0 %v13487_v28  ;;  %v13496_v52 = vld [vmem:[#allocation18_spill] sm:$0xff]  ;;  %v13497_v28 = vld [vmem:[#allocation84_spill] sm:$0xff] }
 0x147   : > { %2443 = vmatpush1.msra.mxu1 %v13488_v58  ;;  %2273 = vmatprep.subr.mxu0 %v13489_v11  ;;  %v13498_v58 = vld [vmem:[#allocation17_spill] sm:$0xff] }
 0x148   : > { %2445 = vmatprep.subr.mxu1 %v13490_v2  ;;  %2276 = vmatpush1.msra.mxu0 %v13491_v16  ;;  %v13499_v11 = vld [vmem:[#allocation5_spill] sm:$0xff]  ;;  %v13500_v16 = vld [vmem:[#allocation8_spill] sm:$0xff] }
 0x149   : > { %2447 = vmatpush1.msra.mxu1 %v13492_v37  ;;  %2279 = vmatprep.subr.mxu0 %v13493_v43  ;;  %v13501_v37 = vld [vmem:[#allocation19_spill] sm:$0xff]  ;;  %v13502_v43 = vld [vmem:[#allocation29_spill] sm:$0xff] }
 0x14a   : > { %2449 = vmatprep.subr.mxu1 %v13494_v20  ;;  %2282 = vmatpush1.msra.mxu0 %v13495_v34  ;;  %v13503_v34 = vld [vmem:[#allocation33_spill] sm:$0xff] }
 0x14b   : > { %2451 = vmatpush1.msra.mxu1 %v9544_v1  ;;  %2285 = vmatprep.subr.mxu0 %v13496_v52  ;;  %v13504_v1 = vld [vmem:[#allocation21_spill] sm:$0xff]  ;;  %v13505_v52 = vld [vmem:[#allocation31_spill] sm:$0xff] }
 0x14c   : > { %2453 = vmatprep.subr.mxu1 %v13497_v28  ;;  %2288 = vmatpush1.msra.mxu0 %v13498_v58  ;;  %v13506_v58 = vld [vmem:[#allocation12_spill] sm:$0xff] }
 0x14d   : > { %2455 = vmatpush1.msra.mxu1 %v13499_v11  ;;  %2291 = vmatprep.subr.mxu0 %v9821_v15  ;;  %v13507_v11 = vld [vmem:[#allocation24_spill] sm:$0xff]  ;;  %v13508_v15 = vld [vmem:[#allocation37_spill] sm:$0xff] }
 0x14e   : > { %2457 = vmatprep.subr.mxu1 %v13500_v16  ;;  %2294 = vmatpush1.msra.mxu0 %v13501_v37  ;;  %v13509_v37 = vld [vmem:[#allocation41_spill] sm:$0xff] }
 0x14f   : > { %2459 = vmatpush1.msra.mxu1 %v13502_v43  ;;  %2297 = vmatprep.subr.mxu0 %v9867_v10  ;;  %v13510_v43 = vld [vmem:[#allocation28_spill] sm:$0xff]  ;;  %v13511_v10 = vld [vmem:[#allocation39_spill] sm:$0xff] }
 0x150   : > { %2461 = vmatprep.subr.mxu1 %v13503_v34  ;;  %2300 = vmatpush1.msra.mxu0 %v13504_v1  ;;  %v13512_v1 = vld [vmem:[#allocation16_spill] sm:$0xff] }
 0x151   : > { %2463 = vmatpush1.msra.mxu1 %v13505_v52  ;;  %2303 = vmatprep.subr.mxu0 %v9893_v47  ;;  %v13513_v52 = vld [vmem:[#allocation32_spill] sm:$0xff]  ;;  %v13514_v47 = vld [vmem:[#allocation45_spill] sm:$0xff] }
 0x152   : > { %2465 = vmatprep.subr.mxu1 %v13506_v58  ;;  %2306 = vmatpush1.msra.mxu0 %v13507_v11  ;;  %v13515_v11 = vld [vmem:[#allocation49_spill] sm:$0xff] }
 0x153   : > { %2467 = vmatpush1.msra.mxu1 %v13508_v15  ;;  %2309 = vmatprep.subr.mxu0 %v9942_v49  ;;  %v13516_v15 = vld [vmem:[#allocation36_spill] sm:$0xff]  ;;  %v13517_v49 = vld [vmem:[#allocation47_spill] sm:$0xff] }
 0x154   : > { %2469 = vmatprep.subr.mxu1 %v13509_v37  ;;  %2312 = vmatpush1.msra.mxu0 %v13510_v43  ;;  %v13518_v43 = vld [vmem:[#allocation20_spill] sm:$0xff] }
 0x155   : > { %2471 = vmatpush1.msra.mxu1 %v13511_v10  ;;  %2315 = vmatprep.subr.mxu0 %v9971_v62  ;;  %v13519_v10 = vld [vmem:[#allocation40_spill] sm:$0xff]  ;;  %v13520_v62 = vld [vmem:[#allocation53_spill] sm:$0xff] }
 0x156   : > { %2473 = vmatprep.subr.mxu1 %v13512_v1  ;;  %2318 = vmatpush1.msra.mxu0 %v13513_v52  ;;  %v13521_v52 = vld [vmem:[#allocation57_spill] sm:$0xff] }
 0x157   : > { %2475 = vmatpush1.msra.mxu1 %v13514_v47  ;;  %2321 = vmatprep.subr.mxu0 %v10025_v5  ;;  %v13522_v47 = vld [vmem:[#allocation44_spill] sm:$0xff]  ;;  %v13523_v5 = vld [vmem:[#allocation55_spill] sm:$0xff] }
 0x158   : > { %2477 = vmatprep.subr.mxu1 %v13515_v11  ;;  %2324 = vmatpush1.msra.mxu0 %v13516_v15  ;;  %v13524_v15 = vld [vmem:[#allocation26_spill] sm:$0xff] }
 0x159   : > { %2479 = vmatpush1.msra.mxu1 %v13517_v49  ;;  %2327 = vmatprep.subr.mxu0 %v10046_v7  ;;  %v13525_v49 = vld [vmem:[#allocation50_spill] sm:$0xff]  ;;  %v13526_v7 = vld [vmem:[#allocation61_spill] sm:$0xff] }
 0x15a   : > { %2481 = vmatprep.subr.mxu1 %v13518_v43  ;;  %2330 = vmatpush2.msra.mxu0 %v13519_v10  ;;  %v13527_v10 = vld [vmem:[#allocation65_spill] sm:$0xff] }
 0x15b   : > { %2483 = vmatpush1.msra.mxu1 %v13520_v62  ;;  %2333 = vmatprep.subr.mxu0 %v10100_v22  ;;  %v13528_v62 = vld [vmem:[#allocation54_spill] sm:$0xff]  ;;  %v13529_v22 = vld [vmem:[#allocation63_spill] sm:$0xff] }
 0x15c   : > { %2485 = vmatprep.subr.mxu1 %v13521_v52  ;;  %2336 = vmatpush2.msra.mxu0 %v13522_v47  ;;  %v13530_v47 = vld [vmem:[#allocation34_spill] sm:$0xff] }
 0x15d   : > { %2487 = vmatpush1.msra.mxu1 %v13523_v5  ;;  %2339 = vmatprep.subr.mxu0 %v10121_v54  ;;  %v13531_v5 = vld [vmem:[#allocation70_spill] sm:$0xff]  ;;  %v13532_v54 = vld [vmem:[#allocation69_spill] sm:$0xff] }
 0x15e   : > { %2489 = vmatprep.subr.mxu1 %v13524_v15  ;;  %2342 = vmatpush2.msra.mxu0 %v13525_v49  ;;  %v13533_v15 = vld [vmem:[#allocation99_spill] sm:$0xff] }
 0x15f   : > { %2491 = vmatpush1.msra.mxu1 %v13526_v7  ;;  %2345 = vmatprep.subr.mxu0 %v10175_v41  ;;  %v13534_v49 = vld [vmem:[#allocation71_spill] sm:$0xff]  ;;  %v13535_v7 = vld [vmem:[#allocation76_spill] sm:$0xff]  ;;  %v13536_v41 = vld [vmem:[#allocation38_spill] sm:$0xff] }
 0x160   : > { %2493 = vmatprep.subr.mxu1 %v13527_v10  ;;  %2348 = vmatpush2.msra.mxu0 %v13528_v62  ;;  %v13537_v10 = vld [vmem:[#allocation101_spill] sm:$0xff]  ;;  %v13538_v62 = vld [vmem:[#allocation42_spill] sm:$0xff] }
 0x161   : > { %2495 = vmatpush1.msra.mxu1 %v13529_v22  ;;  %2351 = vmatprep.subr.mxu0 %v10197_v8  ;;  %v13539_v22 = vld [vmem:[#allocation98_spill] sm:$0xff]  ;;  %v13540_v8 = vld [vmem:[#allocation77_spill] sm:$0xff] }
 0x162   : > { %2497 = vmatprep.subr.mxu1 %v13530_v47  ;;  %2354 = vmatpush2.msra.mxu0 %v13531_v5  ;;  %v13541_v5 = vld [vmem:[#allocation46_spill] sm:$0xff] }
 0x163   : > { %2499 = vmatpush2.msra.mxu1 %v13532_v54  ;;  %2357 = vmatprep.subr.mxu0 %v13533_v15  ;;  %v13542_v54 = vld [vmem:[#allocation102_spill] sm:$0xff]  ;;  %v13543_v15 = vld [vmem:[#allocation79_spill] sm:$0xff] }
 0x164   : > { %2501 = vmatprep.subr.mxu1 %v13534_v49  ;;  %2360 = vmatpush2.msra.mxu0 %v13535_v7  ;;  %v13544_v7 = vld [vmem:[#allocation56_spill] sm:$0xff] }
 0x165   : > { %2503 = vmatpush2.msra.mxu1 %v13536_v41  ;;  %2363 = vmatprep.subr.mxu0 %v13537_v10  ;;  %v13545_v10 = vld [vmem:[#allocation58_spill] sm:$0xff] }
 0x166   : > { %2505 = vmatprep.subr.mxu1 %v13538_v62  ;;  %2366 = vmatpush2.msra.mxu0 %v13539_v22  ;;  %v13546_v22 = vld [vmem:[#allocation62_spill] sm:$0xff] }
 0x167   : > { %2507 = vmatpush2.msra.mxu1 %v13540_v8  ;;  %2369 = vmatprep.subr.mxu0 %v10314_v13  ;;  %v13547_v13 = vld [vmem:[#allocation60_spill] sm:$0xff] }
 0x168   : > { %2509 = vmatprep.subr.mxu1 %v13541_v5  ;;  %2372 = vmatpush2.msra.mxu0 %v13542_v54  ;;  %v13548_v54 = vld [vmem:[#allocation97_spill] sm:$0xff] }
 0x169   : > { %2511 = vmatpush2.msra.mxu1 %v13543_v15  ;;  %2375 = vmatprep.subr.mxu0 %v10353_v55  ;;  %v13549_v55 = vld [vmem:[#allocation72_spill] sm:$0xff] }
 0x16a   : > { %2513 = vmatprep.subr.mxu1 %v13544_v7  ;;  %2378 = vmatpush2.msra.mxu0 %v10319_v19  ;;  %v13550_v19 = vld [vmem:[#allocation80_spill] sm:$0xff] }
 0x16b   : > { %2515 = vmatpush2.msra.mxu1 %v13545_v10  ;;  %2381 = vmatprep.subr.mxu0 %v10381_v48  ;;  %v13551_v48 = vld [vmem:[#allocation78_spill] sm:$0xff] }
 0x16c   : > { %2517 = vmatprep.subr.mxu1 %v13546_v22  ;;  %2384 = vmatpush2.msra.mxu0 %v10348_v26  ;;  %v13552_v26 = vld [vmem:[#allocation103_spill] sm:$0xff] }
 0x16d   : > { %2519 = vmatpush2.msra.mxu1 %v13547_v13  ;;  %2387 = vmatprep.subr.mxu0 %v10413_v17  ;;  %v13553_v17 = vld [vmem:[#allocation100_spill] sm:$0xff] }
 0x16e   : > { %2521 = vmatprep.subr.mxu1 %v13548_v54  ;;  %2390 = vmatpush2.msra.mxu0 %v10388_v29  ;;  %v13554_v29 = vld [vmem:[#allocation105_spill] sm:$0xff] }
 0x16f   : > { %2523 = vmatpush2.msra.mxu1 %v13549_v55  ;;  %2393 = vmatprep.subr.mxu0 %v10432_v33  ;;  %v13555_v33 = vld [vmem:[#allocation104_spill] sm:$0xff] }
 0x170   : > { %2525 = vmatprep.subr.mxu1 %v13550_v19  ;;  %2396 = vmatpush2.msra.mxu0 %v10420_v61  ;;  %v13556_v61 = vld [vmem:[#allocation110_spill] sm:$0xff] }
 0x171   : > { %2527 = vmatpush2.msra.mxu1 %v13551_v48  ;;  %2399 = vmatprep.subr.mxu0 %v10455_v21 }
 0x172   : > { %2529 = vmatprep.subr.mxu1 %v13552_v26  ;;  %2402 = vmatpush2.msra.mxu0 %v10448_v3 }
 0x173   : > { %2531 = vmatpush2.msra.mxu1 %v13553_v17  ;;  %2405 = vmatprep.subr.mxu0 %v10485_v12  ;;  %v13557_v12 = vld [vmem:[#allocation92_spill] sm:$0xff] }
 0x174   : > { %2533 = vmatprep.subr.mxu1 %v13554_v29  ;;  %2408 = vmatpush2.msra.mxu0 %v10472_v4  ;;  %v13558_v4 = vld [vmem:[#allocation91_spill] sm:$0xff] }
 0x175   : > { %2535 = vmatpush2.msra.mxu1 %v13555_v33  ;;  %2411 = vmatprep.subr.mxu0 %v10499_v24 }
 0x176   : > { %2537 = vmatprep.subr.mxu1 %v13556_v61  ;;  %2414 = vmatpush2.msra.mxu0 %v10503_v35  ;;  %v13559_v61 = vand.u32 4294901760, %v9488_v46  ;;  %v13563_v46 = vand.u32 4294901760, %v9537_v60  ;;  %v13569_v60 = vand.u32 4294901760, %v13478_v9  ;;  %v13576_v9 = vand.u32 4294901760, %v13485_v27 }
 0x177   : > { %2539 = vmatpush2.msra.mxu1 %v10338_v32  ;;  %2417 = vmatprep.subr.mxu0 %v10515_v39  ;;  %v13560_v32 = vand.u32 4294901760, %v9482_v6  ;;  %v13564_v6 = vand.u32 4294901760, %v13475_v59  ;;  %v13572_v59 = vld [vmem:[#allocation23_spill] sm:$0xff] }
 0x178   : > { %2541 = vmatprep.subr.mxu1 %v10378_v44  ;;  %2420 = vmatpush2.msra.mxu0 %v10519_v56  ;;  %v13561_v56 = vand.u32 4294901760, %v9504_v30  ;;  %v13565_v30 = vand.u32 4294901760, %v13476_v63  ;;  %v13573_v63 = vld [vmem:[#allocation9_spill] sm:$0xff] }
 0x179   : > { %2423 = vmatprep.mubr.f32.mxu0 %v13557_v12  ;;  %2543 = vmatpush2.msra.mxu1 %v10363_v25  ;;  %v13562_v12 = vand.u32 4294901760, %v9510_v45  ;;  %v13567_v45 = vand.u32 4294901760, %v13477_v14  ;;  %v13574_v14 = vand.u32 4294901760, %v13573_v63 }
 0x17a   : > { %2426 = vmatmul.mubr.f32.vlgmr.msra.gmra.mxu0 %v13558_v4  ;;  %2545 = vmatprep.subr.mxu1 %v10404_v23 }
 0x17b   : > { %2576 = vmatprep.subr.mxu0 %v13559_v61  ;;  %2547 = vmatpush2.msra.mxu1 %v10407_v42  ;;  %v13568_v61 = vld [vmem:[#allocation93_spill] sm:$0xff] }
 0x17c   : > { %2580 = vmatpush1.msra.mxu0 %v13560_v32  ;;  %2549 = vmatprep.subr.mxu1 %v10437_v38  ;;  %v13566_v32 = vld [vmem:[#allocation94_spill] sm:$0xff] }
 0x17d   : > { %2584 = vmatprep.subr.mxu0 %v13561_v56  ;;  %2551 = vmatpush2.msra.mxu1 %v10426_v36  ;;  %v13571_v56 = vand.u32 4294901760, %v13481_v57 }
 0x17e   : > { %2588 = vmatpush1.msra.mxu0 %v13562_v12  ;;  %2553 = vmatprep.subr.mxu1 %v10461_v31  ;;  %v13570_v12 = vand.u32 4294901760, %v13479_v18 }
 0x17f   : > { %2592 = vmatprep.subr.mxu0 %v13563_v46  ;;  %2555 = vmatpush2.msra.mxu1 %v10474_v51  ;;  %v13575_v46 = vld [vmem:[#allocation7_spill] sm:$0xff] }
 0x180   : > { %2596 = vmatpush1.msra.mxu0 %v13564_v6  ;;  %2557 = vmatprep.subr.mxu1 %v10481_v53  ;;  %v13577_v6 = vld [vmem:[#allocation25_spill] sm:$0xff] }
 0x181   : > { %2600 = vmatprep.subr.mxu0 %v13565_v30  ;;  %2559 = vmatpush2.msra.mxu1 %v10491_v40  ;;  %v13580_v30 = vld [vmem:[#allocation27_spill] sm:$0xff] }
 0x182   : > { %2563 = vmatprep.mubr.f32.mxu1 %v13566_v32  ;;  %2604 = vmatpush1.msra.mxu0 %v13567_v45  ;;  %v13583_v45 = vld [vmem:[#allocation13_spill] sm:$0xff] }
 0x183   : > { %2567 = vmatmul.mubr.f32.vlgmr.msra.gmra.mxu1 %v13568_v61  ;;  %2608 = vmatprep.subr.mxu0 %v13569_v60  ;;  %v13584_v60 = vand.u32 4294901760, %v13583_v45  ;;  %v13601_v45 = vld [vmem:[#allocation22_spill] sm:$0xff] }
 0x184   : > { %2839 = vmatprep.subr.mxu1 %v9452_v0  ;;  %2612 = vmatpush1.msra.mxu0 %v13570_v12  ;;  %v13578_v0 = vld [vmem:[#allocation11_spill] sm:$0xff]  ;;  %v13585_v12 = vld [vmem:[#allocation82_spill] sm:$0xff] }
 0x185   : > { %2841 = vmatpush1.msra.mxu1 %v13480_v50  ;;  %2616 = vmatprep.subr.mxu0 %v13571_v56  ;;  %v13579_v18 = vand.u32 4294901760, %v13578_v0  ;;  %v13581_v50 = vld [vmem:[#allocation14_spill] sm:$0xff]  ;;  %v13586_v56 = vld [vmem:[#allocation43_spill] sm:$0xff]  ;;  %v13595_v0 = vld [vmem:[#allocation5_spill] sm:$0xff] }
 0x186   : > { %2843 = vmatprep.subr.mxu1 %v13572_v59  ;;  %2620 = vmatpush1.msra.mxu0 %v13574_v14  ;;  %v13582_v57 = vand.u32 4294901760, %v13581_v50  ;;  %v13587_v27 = vand.u32 4294901760, %v13586_v56  ;;  %v13588_v59 = vld [vmem:[#allocation15_spill] sm:$0xff] }
 0x187   : > { %2845 = vmatpush1.msra.mxu1 %v13575_v46  ;;  %2624 = vmatprep.subr.mxu0 %v13576_v9  ;;  %v13589_v63 = vand.u32 4294901760, %v13588_v59  ;;  %v13590_v14 = vld [vmem:[#allocation87_spill] sm:$0xff]  ;;  %v13591_v46 = vld [vmem:[#allocation18_spill] sm:$0xff] }
 0x188   : > { %2847 = vmatprep.subr.mxu1 %v13577_v6  ;;  %2628 = vmatpush1.msra.mxu0 %v13579_v18  ;;  %v13592_v9 = vand.u32 4294901760, %v13591_v46  ;;  %v13596_v18 = vld [vmem:[#allocation51_spill] sm:$0xff]  ;;  %v13611_v46 = vld [vmem:[#allocation30_spill] sm:$0xff] }
 0x189   : > { %2849 = vmatpush1.msra.mxu1 %v13580_v30  ;;  %2632 = vmatprep.subr.mxu0 %v13582_v57  ;;  %v13597_v30 = vand.u32 4294901760, %v13596_v18  ;;  %v13600_v57 = vld [vmem:[#allocation29_spill] sm:$0xff]  ;;  %v13605_v56 = vld [vmem:[#allocation31_spill] sm:$0xff] }
 0x18a   : > { %2851 = vmatprep.subr.mxu1 %v13490_v2  ;;  %2636 = vmatpush1.msra.mxu0 %v13584_v60  ;;  %v13593_v2 = vld [vmem:[#allocation17_spill] sm:$0xff]  ;;  %v13602_v60 = vand.u32 4294901760, %v13601_v45 }
 0x18b   : > { %2853 = vmatpush1.msra.mxu1 %v13585_v12  ;;  %2640 = vmatprep.subr.mxu0 %v13587_v27  ;;  %v13594_v6 = vand.u32 4294901760, %v13593_v2  ;;  %v13606_v27 = vld [vmem:[#allocation59_spill] sm:$0xff] }
 0x18c   : > { %2855 = vmatprep.subr.mxu1 %v13494_v20  ;;  %2644 = vmatpush1.msra.mxu0 %v13589_v63  ;;  %v13598_v20 = vld [vmem:[#allocation19_spill] sm:$0xff]  ;;  %v13607_v59 = vand.u32 4294901760, %v13606_v27  ;;  %v13630_v27 = vld [vmem:[#allocation53_spill] sm:$0xff] }
 0x18d   : > { %2857 = vmatpush1.msra.mxu1 %v13590_v14  ;;  %2648 = vmatprep.subr.mxu0 %v13592_v9  ;;  %v13599_v50 = vand.u32 4294901760, %v13598_v20  ;;  %v13610_v14 = vld [vmem:[#allocation37_spill] sm:$0xff]  ;;  %v13612_v9 = vand.u32 4294901760, %v13611_v46  ;;  %v13636_v46 = vld [vmem:[#allocation52_spill] sm:$0xff] }
 0x18e   : > { %2859 = vmatprep.subr.mxu1 %v13497_v28  ;;  %2652 = vmatpush1.msra.mxu0 %v13594_v6  ;;  %v13603_v28 = vld [vmem:[#allocation21_spill] sm:$0xff]  ;;  %v13615_v6 = vld [vmem:[#allocation39_spill] sm:$0xff] }
 0x18f   : > { %2861 = vmatpush1.msra.mxu1 %v13595_v0  ;;  %2656 = vmatprep.subr.mxu0 %v13597_v30  ;;  %v13604_v12 = vand.u32 4294901760, %v13603_v28  ;;  %v13616_v0 = vld [vmem:[#allocation67_spill] sm:$0xff]  ;;  %v13620_v20 = vld [vmem:[#allocation45_spill] sm:$0xff] }
 0x190   : > { %2863 = vmatprep.subr.mxu1 %v13500_v16  ;;  %2660 = vmatpush1.msra.mxu0 %v13599_v50  ;;  %v13608_v16 = vld [vmem:[#allocation24_spill] sm:$0xff]  ;;  %v13617_v18 = vand.u32 4294901760, %v13616_v0  ;;  %v13621_v50 = vld [vmem:[#allocation73_spill] sm:$0xff]  ;;  %v13626_v28 = vld [vmem:[#allocation75_spill] sm:$0xff] }
 0x191   : > { %2865 = vmatpush1.msra.mxu1 %v13600_v57  ;;  %2664 = vmatprep.subr.mxu0 %v13602_v60  ;;  %v13609_v63 = vand.u32 4294901760, %v13608_v16  ;;  %v13622_v57 = vand.u32 4294901760, %v13621_v50  ;;  %v13625_v60 = vld [vmem:[#allocation47_spill] sm:$0xff]  ;;  %v13642_v0 = vld [vmem:[#allocation64_spill] sm:$0xff]  ;;  %v13648_v50 = vld [vmem:[#allocation74_spill] sm:$0xff] }
 0x192   : > { %2867 = vmatprep.subr.mxu1 %v13503_v34  ;;  %2668 = vmatpush1.msra.mxu0 %v13604_v12  ;;  %v13613_v34 = vld [vmem:[#allocation28_spill] sm:$0xff]  ;;  %v13627_v12 = vand.u32 4294901760, %v13626_v28  ;;  %v13653_v28 = vld [vmem:[#allocation99_spill] sm:$0xff] }
 0x193   : > { %2869 = vmatpush1.msra.mxu1 %v13605_v56  ;;  %2672 = vmatprep.subr.mxu0 %v13607_v59  ;;  %v13614_v2 = vand.u32 4294901760, %v13613_v34  ;;  %v13631_v59 = vld [vmem:[#allocation48_spill] sm:$0xff]  ;;  %v13638_v34 = vld [vmem:[#allocation26_spill] sm:$0xff] }
 0x194   : > { %2871 = vmatprep.subr.mxu1 %v13506_v58  ;;  %2676 = vmatpush1.msra.mxu0 %v13609_v63  ;;  %v13618_v58 = vld [vmem:[#allocation32_spill] sm:$0xff]  ;;  %v13632_v16 = vand.u32 4294901760, %v13631_v59 }
 0x195   : > { %2873 = vmatpush1.msra.mxu1 %v13610_v14  ;;  %2680 = vmatprep.subr.mxu0 %v13612_v9  ;;  %v13619_v30 = vand.u32 4294901760, %v13618_v58  ;;  %v13635_v14 = vld [vmem:[#allocation55_spill] sm:$0xff]  ;;  %v13637_v9 = vand.u32 4294901760, %v13636_v46  ;;  %v13644_v58 = vld [vmem:[#allocation65_spill] sm:$0xff] }
 0x196   : > { %2875 = vmatprep.subr.mxu1 %v13509_v37  ;;  %2684 = vmatpush1.msra.mxu0 %v13614_v2  ;;  %v13623_v37 = vld [vmem:[#allocation36_spill] sm:$0xff]  ;;  %v13665_v46 = vld [vmem:[#allocation111_spill] sm:$0xff] }
 0x197   : > { %2877 = vmatpush1.msra.mxu1 %v13615_v6  ;;  %2688 = vmatprep.subr.mxu0 %v13617_v18  ;;  %v13624_v45 = vand.u32 4294901760, %v13623_v37  ;;  %v13641_v6 = vld [vmem:[#allocation61_spill] sm:$0xff]  ;;  %v13643_v18 = vand.u32 4294901760, %v13642_v0  ;;  %v13650_v37 = vld [vmem:[#allocation70_spill] sm:$0xff]  ;;  %v13669_v0 = vld [vmem:[#allocation112_spill] sm:$0xff] }
 0x198   : > { %2879 = vmatprep.subr.mxu1 %v13512_v1  ;;  %2692 = vmatpush1.msra.mxu0 %v13619_v30  ;;  %v13628_v1 = vld [vmem:[#allocation40_spill] sm:$0xff] }
 0x199   : > { %2881 = vmatpush1.msra.mxu1 %v13620_v20  ;;  %2696 = vmatprep.subr.mxu0 %v13622_v57  ;;  %v13629_v56 = vand.u32 4294901760, %v13628_v1  ;;  %v13647_v20 = vld [vmem:[#allocation63_spill] sm:$0xff]  ;;  %v13649_v57 = vand.u32 4294901760, %v13648_v50  ;;  %v13655_v1 = vld [vmem:[#allocation76_spill] sm:$0xff]  ;;  %v13673_v50 = vld [vmem:[#allocation114_spill] sm:$0xff] }
 0x19a   : > { %2883 = vmatprep.subr.mxu1 %v13515_v11  ;;  %2700 = vmatpush1.msra.mxu0 %v13624_v45  ;;  %v13633_v11 = vld [vmem:[#allocation44_spill] sm:$0xff]  ;;  %v13651_v45 = vand.u32 4294901760, %v13650_v37  ;;  %v388_v37 = vld [vmem:[%s12462_s3 + $0x480] sm:$0xff] }
 0x19b   : > { %2885 = vmatpush1.msra.mxu1 %v13625_v60  ;;  %2704 = vmatprep.subr.mxu0 %v13627_v12  ;;  %v13634_v63 = vand.u32 4294901760, %v13633_v11  ;;  %v13652_v60 = vld [vmem:[#allocation69_spill] sm:$0xff]  ;;  %v13654_v12 = vand.u32 4294901760, %v13653_v28  ;;  %v403_v11 = vld [vmem:[%s12462_s3 + $0x4f8] sm:$0xff] }
 0x19c   : > { %2887 = vmatprep.subr.mxu1 %v13518_v43  ;;  %2708 = vmatpush2.msra.mxu0 %v13629_v56  ;;  %v13639_v43 = vld [vmem:[#allocation50_spill] sm:$0xff]  ;;  %v13656_v56 = vand.u32 4294901760, %v13655_v1  ;;  %v13679_v1 = vld [vmem:[#allocation116_spill] sm:$0xff] }
 0x19d   : > { %2889 = vmatpush1.msra.mxu1 %v13630_v27  ;;  %2712 = vmatprep.subr.mxu0 %v13632_v16  ;;  %v13640_v2 = vand.u32 4294901760, %v13639_v43  ;;  %v13657_v27 = vld [vmem:[#allocation101_spill] sm:$0xff]  ;;  %v13667_v43 = vld [vmem:[#allocation107_spill] sm:$0xff] }
 0x19e   : > { %2891 = vmatprep.subr.mxu1 %v13521_v52  ;;  %2716 = vmatpush2.msra.mxu0 %v13634_v63  ;;  %v13645_v52 = vld [vmem:[#allocation54_spill] sm:$0xff]  ;;  %v13658_v59 = vand.u32 4294901760, %v13657_v27 }
 0x19f   : > { %2893 = vmatpush1.msra.mxu1 %v13635_v14  ;;  %2720 = vmatprep.subr.mxu0 %v13637_v9  ;;  %v13646_v30 = vand.u32 4294901760, %v13645_v52  ;;  %v13663_v14 = vld [vmem:[#allocation102_spill] sm:$0xff]  ;;  %v13666_v9 = vand.u32 4294901760, %v13665_v46  ;;  %v13671_v52 = vld [vmem:[#allocation109_spill] sm:$0xff]  ;;  %v13687_v46 = vand.u32 4294901760, %v10448_v3 }
 0x1a0   : > { %2895 = vmatprep.subr.mxu1 %v13638_v34  ;;  %2724 = vmatpush2.msra.mxu0 %v13640_v2  ;;  %v10841_v34 = vand.u32 4294901760, %v403_v11  ;;  %v13668_v2 = vand.u32 4294901760, %v13667_v43 }
 0x1a1   : > { %2897 = vmatpush1.msra.mxu1 %v13641_v6  ;;  %2728 = vmatprep.subr.mxu0 %v13643_v18  ;;  %v393_v6 = vld [vmem:[%s12462_s3 + $0x4a8] sm:$0xff]  ;;  %v13670_v18 = vand.u32 4294901760, %v13669_v0 }
 0x1a2   : > { %2899 = vmatprep.subr.mxu1 %v13644_v58  ;;  %2732 = vmatpush2.msra.mxu0 %v13646_v30  ;;  %v313_v58 = vld [vmem:[%s12462_s3 + $0x228] sm:$0xff]  ;;  %v13672_v30 = vand.u32 4294901760, %v13671_v52 }
 0x1a3   : > { %2901 = vmatpush1.msra.mxu1 %v13647_v20  ;;  %2736 = vmatprep.subr.mxu0 %v13649_v57  ;;  %v308_v20 = vld [vmem:[%s12462_s3 + $0x200] sm:$0xff]  ;;  %v13674_v57 = vand.u32 4294901760, %v13673_v50 }
 0x1a4   : > { %2903 = vmatprep.subr.mxu1 %v13530_v47  ;;  %2740 = vmatpush2.msra.mxu0 %v13651_v45  ;;  %v13659_v47 = vld [vmem:[#allocation98_spill] sm:$0xff]  ;;  %v10879_v45 = vsub.f32 %v403_v11, %v10841_v34  ;;  %v10895_v27 = vand.u32 4294901760, %v308_v20 }
 0x1a5   : > { %2905 = vmatpush2.msra.mxu1 %v13652_v60  ;;  %2744 = vmatprep.subr.mxu0 %v13654_v12  ;;  %v13660_v16 = vand.u32 4294901760, %v13659_v47  ;;  %v10887_v12 = vand.u32 4294901760, %v313_v58  ;;  %v13682_v47 = vld [vmem:[#allocation115_spill] sm:$0xff] }
 0x1a6   : > { %2907 = vmatprep.subr.mxu1 %v13534_v49  ;;  %2748 = vmatpush2.msra.mxu0 %v13656_v56  ;;  %v13661_v49 = vld [vmem:[#allocation106_spill] sm:$0xff]  ;;  %v13680_v56 = vand.u32 4294901760, %v13679_v1  ;;  %13681 = vst [vmem:[#allocation68_spill] sm:$0xff] %v10895_v27 }
 0x1a7   : > { %2909 = vmatpush2.msra.mxu1 %v13536_v41  ;;  %2752 = vmatprep.subr.mxu0 %v13658_v59  ;;  %v13662_v63 = vand.u32 4294901760, %v13661_v49  ;;  %v323_v41 = vld [vmem:[%s12462_s3 + $0x278] sm:$0xff]  ;;  %13678 = vst [vmem:[#allocation66_spill] sm:$0xff] %v10887_v12  ;;  %v10909_v49 = vand.u32 4294901760, %v388_v37 }
 0x1a8   : > { %2911 = vmatprep.subr.mxu1 %v13538_v62  ;;  %2756 = vmatpush2.msra.mxu0 %v13660_v16  ;;  %v13664_v62 = vand.u32 4294901760, %v13663_v14  ;;  %v13683_v16 = vand.u32 4294901760, %v13682_v47  ;;  %v12884_v14 = vand.u32 4294901760, %v10879_v45 }
 0x1a9   : > { %2913 = vmatpush2.msra.mxu1 %v13540_v8  ;;  %2760 = vmatprep.subr.mxu0 %v13662_v63  ;;  %v398_v8 = vld [vmem:[%s12462_s3 + $0x4d0] sm:$0xff]  ;;  %13684 = vst [vmem:[#allocation88_spill] sm:$0xff] %v10909_v49  ;;  %v13685_v63 = vand.u32 4294901760, %v10455_v21  ;;  %v10927_v21 = vsub.f32 %v313_v58, %v10887_v12 }
 0x1aa   : > { %2915 = vmatprep.subr.mxu1 %v13541_v5  ;;  %2764 = vmatpush2.msra.mxu0 %v13664_v62  ;;  %v318_v5 = vld [vmem:[%s12462_s3 + $0x250] sm:$0xff] }
 0x1ab   : > { %2917 = vmatpush2.msra.mxu1 %v13543_v15  ;;  %2768 = vmatprep.subr.mxu0 %v13666_v9  ;;  %v10849_v15 = vand.u32 4294901760, %v323_v41  ;;  %v378_v62 = vld [vmem:[%s12462_s3 + $0x430] sm:$0xff] }
 0x1ac   : > { %2919 = vmatprep.subr.mxu1 %v13544_v7  ;;  %2772 = vmatpush2.msra.mxu0 %v13668_v2  ;;  %v10857_v7 = vand.u32 4294901760, %v398_v8  ;;  %v10936_v2 = vsub.f32 %v308_v20, %v10895_v27  ;;  %v13695_v20 = vld [vmem:[#allocation110_spill] sm:$0xff] }
 0x1ad   : > { %2921 = vmatpush2.msra.mxu1 %v13545_v10  ;;  %2776 = vmatprep.subr.mxu0 %v13670_v18  ;;  %v10865_v10 = vand.u32 4294901760, %v318_v5  ;;  %v10885_v28 = vsub.f32 %v323_v41, %v10849_v15  ;;  %v298_v18 = vld [vmem:[%s12462_s3 + $0x1b0] sm:$0xff] }
 0x1ae   : > { %2923 = vmatprep.subr.mxu1 %v13546_v22  ;;  %2780 = vmatpush2.msra.mxu0 %v13672_v30  ;;  %v10873_v22 = vand.u32 4294901760, %v393_v6  ;;  %v10901_v59 = vsub.f32 %v398_v8, %v10857_v7  ;;  %v547_v8 = vpop.f32.mrf.mxu0  ;;  %v13694_v30 = vand.u32 4294901760, %v10499_v24 }
 0x1af   : > { %2925 = vmatpush2.msra.mxu1 %v13547_v13  ;;  %2784 = vmatprep.subr.mxu0 %v13674_v57  ;;  %v13676_v13 = vld [vmem:[#allocation113_spill] sm:$0xff]  ;;  %v10907_v11 = vsub.f32 %v318_v5, %v10865_v10  ;;  %v12882_v9 = vand.u32 4294901760, %v10885_v28  ;;  %v13689_v5 = vld [vmem:[#allocation118_spill] sm:$0xff] }
 0x1b0   : > { %2927 = vmatprep.subr.mxu1 %v13548_v54  ;;  %13675 = vst [vmem:[#allocation83_spill] sm:$0xff] %v10873_v22  ;;  %v13677_v60 = vand.u32 4294901760, %v13676_v13  ;;  %v383_v54 = vld [vmem:[%s12462_s3 + $0x458] sm:$0xff]  ;;  %v13690_v43 = vand.u32 4294901760, %v13689_v5  ;;  %v12881_v3 = vand.u32 4294901760, %v10901_v59  ;;  %v549_v13 = vpop.f32.mrf.mxu0 }
 0x1b1   : > { %2929 = vmatpush2.msra.mxu1 %v13549_v55  ;;  %v303_v55 = vld [vmem:[%s12462_s3 + $0x1d8] sm:$0xff]  ;;  %v10914_v41 = vand.u32 4294901760, %v383_v54  ;;  %v12880_v58 = vand.u32 4294901760, %v10907_v11  ;;  %v10972_v1 = vsub.f32 %v10885_v28, %v12882_v9 }
 0x1b2   : > { %2788 = vmatpush2.msra.mxu0 %v13677_v60  ;;  %2931 = vmatprep.subr.mxu1 %v13550_v19  ;;  %v940_v19 = vpop.f32.mrf.mxu1  ;;  %v13697_v60 = vld [vmem:[#allocation108_spill] sm:$0xff] }
 0x1b3   : > { %2792 = vmatprep.subr.mxu0 %v13680_v56  ;;  %2933 = vmatpush2.msra.mxu1 %v13551_v48  ;;  %13686 = vst [vmem:[#allocation86_spill] sm:$0xff] %v10914_v41  ;;  %v10921_v48 = vsub.f32 %v393_v6, %v10873_v22  ;;  %v13691_v6 = vld [vmem:[#allocation117_spill] sm:$0xff]  ;;  %v10961_v57 = vsub.f32 %v383_v54, %v10914_v41  ;;  %v373_v56 = vld [vmem:[%s12462_s3 + $0x408] sm:$0xff]  ;;  %v12883_v54 = vand.u32 4294901760, %v10927_v21 }
 0x1b4   : > { %2796 = vmatpush2.msra.mxu0 %v13683_v16  ;;  %2935 = vmatprep.subr.mxu1 %v13552_v26  ;;  %v10929_v26 = vand.u32 4294901760, %v303_v55  ;;  %v13692_v0 = vand.u32 4294901760, %v13691_v6  ;;  %v942_v52 = vpop.f32.mrf.mxu1  ;;  %v941_v47 = vadd.f32 %v940_v19, %v547_v8  ;;  %v10986_v16 = vand.u32 4294901760, %v298_v18  ;;  %v1143_v19 = vpop.f32.mrf.mxu0 }
 0x1b5   : > { %2800 = vmatprep.subr.mxu0 %v13685_v63  ;;  %2937 = vmatpush2.msra.mxu1 %v13553_v17  ;;  %v10942_v17 = vand.u32 4294901760, %v378_v62  ;;  %v12879_v50 = vand.u32 4294901760, %v10921_v48  ;;  %v293_v63 = vld [vmem:[%s12462_s3 + $0x188] sm:$0xff]  ;;  %v10992_v5 = vadd.f32 %v942_v52, %v549_v13  ;;  %v11012_v13 = vand.u32 4294901760, %v373_v56 }
 0x1b6   : > { %2804 = vmatpush2.msra.mxu0 %v13687_v46  ;;  %13688 = vst [vmem:[#allocation6_spill] sm:$0xff] %v10929_v26  ;;  %2939 = vmatprep.subr.mxu1 %v13554_v29  ;;  %v10949_v29 = vsub.f32 %v388_v37, %v10909_v49  ;;  %v13696_v37 = vand.u32 4294901760, %v10503_v35  ;;  %v10967_v24 = vsub.f32 %v303_v55, %v10929_v26  ;;  %v13698_v35 = vand.u32 4294901760, %v10515_v39  ;;  %v13700_v39 = vld [vmem:[#allocation119_spill] sm:$0xff] }
 0x1b7   : > { %2808 = vmatprep.subr.mxu0 %v13690_v43  ;;  %2941 = vmatpush2.msra.mxu1 %v13555_v33  ;;  %13693 = vst [vmem:[#allocation10_spill] sm:$0xff] %v10942_v17  ;;  %v10957_v33 = vsub.f32 %v10879_v45, %v12884_v14  ;;  %v10984_v55 = vsub.f32 %v10901_v59, %v12881_v3  ;;  %13699 = vst [vmem:[#allocation35_spill] sm:$0xff] %v10986_v16  ;;  %v12885_v46 = vand.u32 4294901760, %v10936_v2  ;;  %v1145_v14 = vpop.f32.mrf.mxu0 }
 0x1b8   : > { %2812 = vmatpush2.msra.mxu0 %v13692_v0  ;;  %2943 = vmatprep.subr.mxu1 %v13695_v20  ;;  %v13701_v8 = vand.u32 4294901760, %v13700_v39  ;;  %v11000_v43 = vsub.f32 %v10907_v11, %v12880_v58  ;;  %v12886_v6 = vand.u32 4294901760, %v10949_v29  ;;  %v288_v0 = vld [vmem:[%s12462_s3 + $0x160] sm:$0xff]  ;;  %v11007_v52 = vsub.f32 %v378_v62, %v10942_v17  ;;  %13704 = vst [vmem:[#allocation81_spill] sm:$0xff] %v11012_v13  ;;  %v283_v20 = vld [vmem:[%s12462_s3 + $0x138] sm:$0xff] }
 0x1b9   : > { %2816 = vmatprep.subr.mxu0 %v13694_v30  ;;  %2945 = vmatpush2.msra.mxu1 %v13697_v60  ;;  %v13703_v30 = vld [vmem:[#allocation89_spill] sm:$0xff]  ;;  %v12887_v62 = vand.u32 4294901760, %v10961_v57  ;;  %v11026_v39 = vand.u32 4294901760, %v293_v63  ;;  %v11040_v3 = vand.u32 4294901760, %v288_v0  ;;  %v11045_v9 = vsub.f32 %v10936_v2, %v12885_v46 }
 0x1ba   : > { %2820 = vmatpush2.msra.mxu0 %v13696_v37  ;;  %2947 = vmatprep.subr.mxu1 %v10378_v44  ;;  %v13702_v44 = vld [vmem:[#allocation90_spill] sm:$0xff]  ;;  %v11017_v37 = vsub.f32 %v10921_v48, %v12879_v50  ;;  %v368_v60 = vld [vmem:[%s12462_s3 + $0x3e0] sm:$0xff]  ;;  %v12888_v50 = vand.u32 4294901760, %v10967_v24  ;;  %v11058_v58 = vsub.f32 %v10949_v29, %v12886_v6  ;;  %v11073_v6 = vsub.f32 %v373_v56, %v11012_v13  ;;  %v278_v56 = vld [vmem:[%s12462_s3 + $0x110] sm:$0xff] }
 0x1bb   : > { %2824 = vmatprep.subr.mxu0 %v13698_v35  ;;  %2830 = vmatprep.mubr.f32.mxu0 %v13702_v44  ;;  %v1284_v35 = vpop.f32.mrf.mxu1  ;;  %13705 = vst [vmem:[#allocation85_spill] sm:$0xff] %v11026_v39  ;;  %13706 = vst [vmem:[#allocation84_spill] sm:$0xff] %v11040_v3 }
 0x1bc   : > { %2828 = vmatpush2.msra.mxu0 %v13701_v8  ;;  %2949 = vmatpush2.msra.mxu1 %v10363_v25  ;;  %v11031_v8 = vsub.f32 %v10927_v21, %v12883_v54  ;;  %v363_v54 = vld [vmem:[%s12462_s3 + $0x3b8] sm:$0xff]  ;;  %v1144_v25 = vadd.f32 %v1143_v19, %v941_v47  ;;  %v1549_v47 = vpop.f32.mrf.mxu0  ;;  %v358_v19 = vld [vmem:[%s12462_s3 + $0x390] sm:$0xff] }
 0x1bd   : > { %2832 = vmatmul.mubr.f32.vlgmr.msra.gmra.mxu0 %v13703_v30  ;;  %2951 = vmatprep.subr.mxu1 %v10404_v23  ;;  %v11038_v23 = vsub.f32 %v298_v18, %v10986_v16  ;;  %v11053_v18 = vand.u32 4294901760, %v368_v60  ;;  %v1286_v46 = vpop.f32.mrf.mxu1 }
 0x1be   : > { %7433 = vmatprep.subr.mxu0 %v10841_v34  ;;  %2953 = vmatpush2.msra.mxu1 %v10407_v42  ;;  %v11067_v42 = vsub.f32 %v10961_v57, %v12887_v62  ;;  %v11081_v62 = vand.u32 4294901760, %v363_v54  ;;  %v1285_v61 = vadd.f32 %v1284_v35, %v1144_v25  ;;  %v11104_v25 = vand.u32 4294901760, %v283_v20 }
 0x1bf   : > { %7434 = vmatpush3.msra.mxu0 %v10849_v15  ;;  %2955 = vmatprep.subr.mxu1 %v10437_v38  ;;  %13707 = vst [vmem:[#allocation8_spill] sm:$0xff] %v11053_v18  ;;  %v11086_v38 = vsub.f32 %v10967_v24, %v12888_v50  ;;  %v1686_v35 = vpop.f32.mrf.mxu1  ;;  %v11117_v50 = vand.u32 4294901760, %v278_v56 }
 0x1c0   : > { %7435 = vmatprep.subr.mxu0 %v10857_v7  ;;  %2957 = vmatpush2.msra.mxu1 %v10426_v36  ;;  %v11078_v36 = vsub.f32 %v293_v63, %v11026_v39  ;;  %13708 = vst [vmem:[#allocation33_spill] sm:$0xff] %v11081_v62  ;;  %13710 = vst [vmem:[#allocation41_spill] sm:$0xff] %v11104_v25  ;;  %v11112_v63 = vsub.f32 %v368_v60, %v11053_v18  ;;  %v273_v60 = vld [vmem:[%s12462_s3 + $0xe8] sm:$0xff] }
 0x1c1   : > { %7436 = vmatpush3.msra.mxu0 %v10865_v10  ;;  %2959 = vmatprep.subr.mxu1 %v10461_v31  ;;  %v11094_v31 = vsub.f32 %v288_v0, %v11040_v3  ;;  %v13711_v0 = vand.u32 4294901760, %v11007_v52  ;;  %v1550_v4 = vadd.f32 %v1549_v47, %v1285_v61  ;;  %13712 = vst [vmem:[#allocation16_spill] sm:$0xff] %v11117_v50  ;;  %v11129_v61 = vand.u32 4294901760, %v358_v19  ;;  %v1551_v47 = vpop.f32.mrf.mxu0 }
 0x1c2   : > { %7437 = vmatprep.subr.mxu0 %v10873_v22  ;;  %2961 = vmatpush2.msra.mxu1 %v10474_v51  ;;  %v353_v51 = vld [vmem:[%s12462_s3 + $0x368] sm:$0xff] }
 0x1c3   : > { %7438 = vmatpush3.msra.mxu0 %v10887_v12  ;;  %13709 = vst [vmem:[#allocation12_spill] sm:$0xff] %v11094_v31  ;;  %2963 = vmatprep.subr.mxu1 %v10481_v53  ;;  %v11109_v32 = vsub.f32 %v11007_v52, %v13711_v0  ;;  %v11133_v0 = vsub.f32 %v363_v54, %v11081_v62  ;;  %v13713_v12 = vand.u32 4294901760, %v10957_v33  ;;  %v11156_v33 = vand.u32 4294901760, %v273_v60 }
 0x1c4   : > { %7439 = vmatprep.subr.mxu0 %v10909_v49  ;;  %2965 = vmatpush2.msra.mxu1 %v10491_v40  ;;  %v1146_v53 = vadd.f32 %v1145_v14, %v10992_v5  ;;  %v1687_v49 = vadd.f32 %v1686_v35, %v1550_v4  ;;  %v348_v40 = vld [vmem:[%s12462_s3 + $0x340] sm:$0xff]  ;;  %v13715_v4 = vand.u32 4294901760, %v10972_v1  ;;  %v11152_v14 = vsub.f32 %v283_v20, %v11104_v25 }
 0x1c5   : > { %2967 = vmatprep.mubr.f32.mxu1 %v13702_v44  ;;  %7440 = vmatpush3.msra.mxu0 %v10895_v27  ;;  %v13714_v27 = vand.u32 4294901760, %v11038_v23  ;;  %13717 = vst [vmem:[#allocation20_spill] sm:$0xff] %v11156_v33  ;;  %v268_v5 = vld [vmem:[%s12462_s3 + $0xc0] sm:$0xff]  ;;  %v13718_v54 = vand.u32 4294901760, %v10984_v55  ;;  %v3239_v1 = vand.u32 4294901760, %v11109_v32  ;;  %v11167_v20 = vsub.f32 %v278_v56, %v11117_v50 }
 0x1c6   : > { %2969 = vmatmul.mubr.f32.vlgmr.msra.gmra.mxu1 %v13703_v30  ;;  %7441 = vmatprep.subr.mxu0 %v10914_v41  ;;  %v1287_v35 = vadd.f32 %v1286_v46, %v1146_v53  ;;  %v1688_v46 = vpop.f32.mrf.mxu1  ;;  %v13720_v55 = vand.u32 4294901760, %v11000_v43  ;;  %v13721_v32 = vand.u32 4294901760, %v11078_v36  ;;  %v11185_v53 = vand.u32 4294901760, %v348_v40 }
 0x1c7   : > { %7468 = vmatprep.subr.mxu1 %v13713_v12  ;;  %v11142_v22 = vsub.f32 %v11038_v23, %v13714_v27  ;;  %7442 = vmatpush3.msra.mxu0 %v10929_v26  ;;  %v11154_v12 = vand.u32 4294901760, %v353_v51  ;;  %v343_v27 = vld [vmem:[%s12462_s3 + $0x318] sm:$0xff]  ;;  %v13723_v41 = vand.u32 4294901760, %v11017_v37  ;;  %v13725_v37 = vand.u32 4294901760, %v11031_v8 }
 0x1c8   : > { %7469 = vmatpush3.msra.mxu1 %v13715_v4  ;;  %7443 = vmatprep.subr.mxu0 %v10942_v17  ;;  %v13719_v4 = vand.u32 4294901760, %v11073_v6  ;;  %v11183_v56 = vsub.f32 %v11078_v36, %v13721_v32  ;;  %v11192_v17 = vsub.f32 %v358_v19, %v11129_v61  ;;  %v13722_v32 = vand.u32 4294901760, %v11094_v31 }
 0x1c9   : > { %13716 = vst [vmem:[#allocation49_spill] sm:$0xff] %v11154_v12  ;;  %7470 = vmatprep.subr.mxu1 %v13718_v54  ;;  %7444 = vmatpush3.msra.mxu0 %v10986_v16  ;;  %v1552_v16 = vadd.f32 %v1551_v47, %v1287_v35  ;;  %v3127_v43 = vand.u32 4294901760, %v11142_v22  ;;  %v11208_v19 = vsub.f32 %v273_v60, %v11156_v33  ;;  %v11215_v22 = vand.u32 4294901760, %v343_v27  ;;  %v338_v35 = vld [vmem:[%s12462_s3 + $0x2f0] sm:$0xff] }
 0x1ca   : > { %v11172_v26 = vsub.f32 %v11073_v6, %v13719_v4  ;;  %7471 = vmatpush3.msra.mxu1 %v13720_v55  ;;  %v263_v4 = vld [vmem:[%s12462_s3 + $0x98] sm:$0xff]  ;;  %3842 = vrot.lane.b32.xlu0 %v1687_v49, %s7976_s15  ;;  %v11197_v55 = vand.u32 4294901760, %v268_v5  ;;  %v11202_v54 = vsub.f32 %v11094_v31, %v13722_v32  ;;  %v13724_v49 = vand.u32 4294901760, %v11112_v63 }
 0x1cb   : > { %7445 = vmatprep.subr.mxu0 %v11012_v13  ;;  %7472 = vmatprep.subr.mxu1 %v13723_v41  ;;  %v11221_v32 = vsub.f32 %v353_v51, %v11154_v12  ;;  %v1689_v41 = vadd.f32 %v1688_v46, %v1552_v16  ;;  %v258_v13 = vld [vmem:[%s12462_s3 + $0x70] sm:$0xff]  ;;  %v13726_v31 = vand.u32 4294901760, %v11058_v58  ;;  %v3134_v16 = vand.u32 4294901760, %v11183_v56  ;;  %v333_v46 = vld [vmem:[%s12462_s3 + $0x2c8] sm:$0xff] }
 0x1cc   : > { %7446 = vmatpush3.msra.mxu0 %v11026_v39  ;;  %v11213_v47 = vsub.f32 %v11112_v63, %v13724_v49  ;;  %7473 = vmatpush3.msra.mxu1 %v13725_v37  ;;  %v3246_v60 = vand.u32 4294901760, %v11172_v26  ;;  %v11227_v39 = vand.u32 4294901760, %v263_v4  ;;  %v13727_v8 = vand.u32 4294901760, %v11133_v0  ;;  %v253_v49 = vld [vmem:[%s12462_s3 + $0x48] sm:$0xff] }
 0x1cd   : > { %7447 = vmatprep.subr.mxu0 %v11053_v18  ;;  %7474 = vmatprep.subr.mxu1 %v13726_v31  ;;  %v11245_v37 = vsub.f32 %v348_v40, %v11185_v53  ;;  %v13728_v58 = vand.u32 4294901760, %v11045_v9  ;;  %v11251_v31 = vsub.f32 %v268_v5, %v11197_v55  ;;  %v3141_v56 = vand.u32 4294901760, %v11202_v54  ;;  %v328_v54 = vld [vmem:[%s12462_s3 + $0x2a0] sm:$0xff] }
 0x1ce   : > { %7448 = vmatpush3.msra.mxu0 %v11040_v3  ;;  %v3259_v51 = vsub.f32 %v11133_v0, %v13727_v8  ;;  %3844 = vrot.lane.b32.xlu0 %v1689_v41, %s7976_s15  ;;  %v11254_v8 = vand.u32 4294901760, %v338_v35  ;;  %v13729_v9 = vand.u32 4294901760, %v11067_v42  ;;  %v3253_v40 = vand.u32 4294901760, %v11213_v47 }
 0x1cf   : > { %7475 = vmatpush3.msra.mxu1 %v13728_v58  ;;  %7449 = vmatprep.subr.mxu0 %v11081_v62  ;;  %v11264_v41 = vand.u32 4294901760, %v258_v13  ;;  %v11271_v58 = vsub.f32 %v343_v27, %v11215_v22  ;;  %v13730_v26 = vand.u32 4294901760, %v11086_v38  ;;  %v11277_v42 = vsub.f32 %v263_v4, %v11227_v39  ;;  %v248_v27 = vld [vmem:[%s12462_s3 + $0x20] sm:$0xff] }
 0x1d0   : > { %7476 = vmatprep.subr.mxu1 %v13729_v9  ;;  %7450 = vmatpush3.msra.mxu0 %v11104_v25  ;;  %v13731_v47 = vand.u32 4294901760, %v11152_v14  ;;  %v11282_v5 = vand.u32 4294901760, %v333_v46  ;;  %v3260_v38 = vand.u32 4294901760, %v3259_v51  ;;  %v11292_v25 = vand.u32 4294901760, %v253_v49 }
 0x1d1   : > { %7477 = vmatpush3.msra.mxu1 %v13730_v26  ;;  %7451 = vmatprep.subr.mxu0 %v11129_v61  ;;  %v13732_v26 = vand.u32 4294901760, %v11192_v17  ;;  %v13733_v62 = vand.u32 4294901760, %v11167_v20  ;;  %v11299_v18 = vand.u32 4294901760, %v328_v54  ;;  %v11303_v51 = vsub.f32 %v338_v35, %v11254_v8 }
 0x1d2   : > { %v3147_v9 = vsub.f32 %v11152_v14, %v13731_v47  ;;  %7478 = vmatprep.subr.mxu1 %v3239_v1  ;;  %7452 = vmatpush3.msra.mxu0 %v11117_v50  ;;  %v13736_v47 = vand.u32 4294901760, %v11221_v32  ;;  %v11312_v50 = vand.u32 4294901760, %v248_v27  ;;  %v13737_v35 = vand.u32 4294901760, %v11208_v19 }
 0x1d3   : > { %v3266_v4 = vsub.f32 %v11192_v17, %v13732_v26  ;;  %7479 = vmatpush3.msra.mxu1 %v3127_v43  ;;  %v3154_v3 = vsub.f32 %v11167_v20, %v13733_v62  ;;  %13734 = vst [vmem:[#allocation57_spill] sm:$0xff] %v11303_v51  ;;  %7453 = vmatprep.subr.mxu0 %v11154_v12  ;;  %v13738_v62 = vand.u32 4294901760, %v11245_v37 }
 0x1d4   : > { %7480 = vmatprep.subr.mxu1 %v3246_v60  ;;  %v11307_v26 = vsub.f32 %v258_v13, %v11264_v41  ;;  %v3273_v43 = vsub.f32 %v11221_v32, %v13736_v47  ;;  %7454 = vmatpush3.msra.mxu0 %v11156_v33  ;;  %v3148_v1 = vand.u32 4294901760, %v3147_v9  ;;  %v3161_v12 = vsub.f32 %v11208_v19, %v13737_v35 }
 0x1d5   : > { %7481 = vmatpush3.msra.mxu1 %v3134_v16  ;;  %v11320_v60 = vsub.f32 %v333_v46, %v11282_v5  ;;  %7455 = vmatprep.subr.mxu0 %v11185_v53  ;;  %v3267_v13 = vand.u32 4294901760, %v3266_v4  ;;  %v11324_v47 = vsub.f32 %v253_v49, %v11292_v25  ;;  %v3280_v33 = vsub.f32 %v11245_v37, %v13738_v62 }
 0x1d6   : > { %13735 = vst [vmem:[#allocation34_spill] sm:$0xff] %v11307_v26  ;;  %7482 = vmatprep.subr.mxu1 %v3253_v40  ;;  %7456 = vmatpush3.msra.mxu0 %v11197_v55  ;;  %v3155_v9 = vand.u32 4294901760, %v3154_v3  ;;  %v13739_v46 = vand.u32 4294901760, %v11251_v31  ;;  %v11336_v4 = vsub.f32 %v328_v54, %v11299_v18  ;;  %v3274_v49 = vand.u32 4294901760, %v3273_v43 }
 0x1d7   : > { %7483 = vmatpush3.msra.mxu1 %v3141_v56  ;;  %7457 = vmatprep.subr.mxu0 %v11215_v22  ;;  %v11340_v62 = vsub.f32 %v248_v27, %v11312_v50  ;;  %v13741_v16 = vand.u32 4294901760, %v11271_v58  ;;  %v12925_v54 = vand.u32 4294901760, %v11320_v60  ;;  %v13742_v43 = vand.u32 4294901760, %v11277_v42 }
 0x1d8   : > { %v3168_v35 = vsub.f32 %v11251_v31, %v13739_v46  ;;  %7484 = vmatprep.subr.mxu1 %v3260_v38  ;;  %7458 = vmatpush3.msra.mxu0 %v11227_v39  ;;  %v3162_v46 = vand.u32 4294901760, %v3161_v12  ;;  %v3281_v38 = vand.u32 4294901760, %v3280_v33  ;;  %v13743_v56 = vand.u32 4294901760, %v11303_v51 }
 0x1d9   : > { %13740 = vst [vmem:[#allocation71_spill] sm:$0xff] %v11340_v62  ;;  %v3287_v3 = vsub.f32 %v11271_v58, %v13741_v16  ;;  %7485 = vmatpush3.msra.mxu1 %v3148_v1  ;;  %7459 = vmatprep.subr.mxu0 %v11254_v8  ;;  %v3175_v27 = vsub.f32 %v11277_v42, %v13742_v43  ;;  %v12927_v1 = vand.u32 4294901760, %v11336_v4  ;;  %v12926_v40 = vand.u32 4294901760, %v11340_v62 }
 0x1da   : > { %7486 = vmatprep.subr.mxu1 %v3267_v13  ;;  %7460 = vmatpush3.msra.mxu0 %v11264_v41  ;;  %v3169_v16 = vand.u32 4294901760, %v3168_v35  ;;  %v3294_v12 = vsub.f32 %v11303_v51, %v13743_v56  ;;  %v13744_v13 = vand.u32 4294901760, %v11307_v26 }
 0x1db   : > { %7487 = vmatpush3.msra.mxu1 %v3155_v9  ;;  %7461 = vmatprep.subr.mxu0 %v11282_v5  ;;  %v3288_v33 = vand.u32 4294901760, %v3287_v3  ;;  %v3301_v9 = vsub.f32 %v11320_v60, %v12925_v54  ;;  %v3176_v35 = vand.u32 4294901760, %v3175_v27  ;;  %v13747_v27 = vld [vmem:[#allocation95_spill] sm:$0xff] }
 0x1dc   : > { %7488 = vmatprep.subr.mxu1 %v3274_v49  ;;  %v3182_v43 = vsub.f32 %v11307_v26, %v13744_v13  ;;  %7462 = vmatpush3.msra.mxu0 %v11292_v25  ;;  %v13745_v49 = vand.u32 4294901760, %v11324_v47  ;;  %v3295_v56 = vand.u32 4294901760, %v3294_v12  ;;  %v13746_v13 = vld [vmem:[#allocation96_spill] sm:$0xff] }
 0x1dd   : > { %7489 = vmatpush3.msra.mxu1 %v3162_v46  ;;  %7463 = vmatprep.subr.mxu0 %v11299_v18  ;;  %v3308_v46 = vsub.f32 %v11336_v4, %v12927_v1  ;;  %v13763_v1 = vld [vmem:[#allocation16_spill] sm:$0xff] }
 0x1de   : > { %7490 = vmatprep.subr.mxu1 %v3281_v38  ;;  %v3189_v3 = vsub.f32 %v11324_v47, %v13745_v49  ;;  %7464 = vmatpush3.msra.mxu0 %v11312_v50  ;;  %v3183_v54 = vand.u32 4294901760, %v3182_v43  ;;  %v3196_v38 = vsub.f32 %v11340_v62, %v12926_v40  ;;  %v3302_v49 = vand.u32 4294901760, %v3301_v9  ;;  %v13749_v43 = vld [vmem:[#allocation66_spill] sm:$0xff]  ;;  %v13750_v9 = vld [vmem:[#allocation88_spill] sm:$0xff]  ;;  %v13762_v40 = vld [vmem:[#allocation41_spill] sm:$0xff] }
 0x1df   : > { %7491 = vmatpush3.msra.mxu1 %v3169_v16  ;;  %3076 = vmatprep.mubr.f32.mxu0 %v13746_v13  ;;  %v3309_v12 = vand.u32 4294901760, %v3308_v46  ;;  %v13754_v46 = vld [vmem:[#allocation6_spill] sm:$0xff] }
 0x1e0   : > { %7492 = vmatprep.subr.mxu1 %v3288_v33  ;;  %7503 = vmatprep.subr.mxu0 %v10879_v45  ;;  %v3190_v16 = vand.u32 4294901760, %v3189_v3  ;;  %v3197_v33 = vand.u32 4294901760, %v3196_v38  ;;  %v13752_v3 = vld [vmem:[#allocation68_spill] sm:$0xff]  ;;  %v13755_v13 = vld [vmem:[#allocation10_spill] sm:$0xff]  ;;  %v13756_v38 = vld [vmem:[#allocation35_spill] sm:$0xff] }
 0x1e1   : > { %3082 = vmatmul.mubr.f32.vlgmr.msra.gmra.mxu0 %v13747_v27  ;;  %7493 = vmatpush3.msra.mxu1 %v3176_v35  ;;  %v13751_v35 = vld [vmem:[#allocation12_spill] sm:$0xff]  ;;  %v13757_v27 = vld [vmem:[#allocation81_spill] sm:$0xff] }
 0x1e2   : > { %7504 = vmatpush3.msra.mxu0 %v10885_v28  ;;  %7494 = vmatprep.subr.mxu1 %v3295_v56  ;;  %v13753_v56 = vld [vmem:[#allocation86_spill] sm:$0xff] }
 0x1e3   : > { %7505 = vmatprep.subr.mxu0 %v10901_v59  ;;  %7495 = vmatpush3.msra.mxu1 %v3183_v54  ;;  %v13748_v54 = vld [vmem:[#allocation83_spill] sm:$0xff] }
 0x1e4   : > { %7506 = vmatpush3.msra.mxu0 %v10907_v11  ;;  %7496 = vmatprep.subr.mxu1 %v3302_v49  ;;  %v13758_v49 = vld [vmem:[#allocation85_spill] sm:$0xff] }
 0x1e5   : > { %7507 = vmatprep.subr.mxu0 %v10921_v48  ;;  %7497 = vmatpush3.msra.mxu1 %v3190_v16  ;;  %v13759_v16 = vld [vmem:[#allocation8_spill] sm:$0xff] }
 0x1e6   : > { %7508 = vmatpush3.msra.mxu0 %v10927_v21  ;;  %7498 = vmatprep.subr.mxu1 %v3309_v12  ;;  %v13760_v12 = vld [vmem:[#allocation84_spill] sm:$0xff] }
 0x1e7   : > { %7509 = vmatprep.subr.mxu0 %v10949_v29  ;;  %7499 = vmatpush3.msra.mxu1 %v3197_v33  ;;  %v13761_v33 = vld [vmem:[#allocation33_spill] sm:$0xff] }
 0x1e8   : > { %3312 = vmatprep.mubr.f32.mxu1 %v13702_v44  ;;  %7510 = vmatpush3.msra.mxu0 %v10936_v2  ;;  %v13765_v44 = vld [vmem:[#allocation20_spill] sm:$0xff] }
 0x1e9   : > { %3314 = vmatmul.mubr.f32.vlgmr.msra.gmra.mxu1 %v13703_v30  ;;  %7511 = vmatprep.subr.mxu0 %v10961_v57  ;;  %v13764_v30 = vld [vmem:[#allocation49_spill] sm:$0xff] }
 0x1ea   : > { %7538 = vmatprep.subr.mxu1 %v10841_v34  ;;  %7512 = vmatpush3.msra.mxu0 %v10967_v24 }
 0x1eb   : > { %7539 = vmatpush3.msra.mxu1 %v10849_v15  ;;  %7513 = vmatprep.subr.mxu0 %v11007_v52 }
 0x1ec   : > { %7540 = vmatprep.subr.mxu1 %v10857_v7  ;;  %7514 = vmatpush3.msra.mxu0 %v11038_v23 }
 0x1ed   : > { %7541 = vmatpush3.msra.mxu1 %v10865_v10  ;;  %7515 = vmatprep.subr.mxu0 %v11073_v6 }
 0x1ee   : > { %7542 = vmatprep.subr.mxu1 %v13748_v54  ;;  %7516 = vmatpush3.msra.mxu0 %v11078_v36 }
 0x1ef   : > { %7543 = vmatpush3.msra.mxu1 %v13749_v43  ;;  %7517 = vmatprep.subr.mxu0 %v11112_v63 }
 0x1f0   : > { %7544 = vmatprep.subr.mxu1 %v13750_v9  ;;  %7518 = vmatpush3.msra.mxu0 %v13751_v35 }
 0x1f1   : > { %7545 = vmatpush3.msra.mxu1 %v13752_v3  ;;  %7519 = vmatprep.subr.mxu0 %v11133_v0 }
 0x1f2   : > { %7546 = vmatprep.subr.mxu1 %v13753_v56  ;;  %7520 = vmatpush3.msra.mxu0 %v11152_v14 }
 0x1f3   : > { %7547 = vmatpush3.msra.mxu1 %v13754_v46  ;;  %7521 = vmatprep.subr.mxu0 %v11192_v17 }
 0x1f4   : > { %7548 = vmatprep.subr.mxu1 %v13755_v13  ;;  %7522 = vmatpush3.msra.mxu0 %v11167_v20 }
 0x1f5   : > { %7549 = vmatpush3.msra.mxu1 %v13756_v38  ;;  %7523 = vmatprep.subr.mxu0 %v11221_v32 }
 0x1f6   : > { %7550 = vmatprep.subr.mxu1 %v13757_v27  ;;  %7524 = vmatpush3.msra.mxu0 %v11208_v19 }
 0x1f7   : > { %7551 = vmatpush3.msra.mxu1 %v13758_v49  ;;  %7525 = vmatprep.subr.mxu0 %v11245_v37 }
 0x1f8   : > { %7552 = vmatprep.subr.mxu1 %v13759_v16  ;;  %7526 = vmatpush3.msra.mxu0 %v11251_v31 }
 0x1f9   : > { %7553 = vmatpush3.msra.mxu1 %v13760_v12  ;;  %7527 = vmatprep.subr.mxu0 %v11271_v58 }
 0x1fa   : > { %7554 = vmatprep.subr.mxu1 %v13761_v33  ;;  %7528 = vmatpush3.msra.mxu0 %v11277_v42 }
 0x1fb   : > { %7555 = vmatpush3.msra.mxu1 %v13762_v40  ;;  %7529 = vmatprep.subr.mxu0 %v11303_v51  ;;  %v13766_v51 = vld [vmem:[#allocation92_spill] sm:$0xff] }
 0x1fc   : > { %7556 = vmatprep.subr.mxu1 %v11129_v61  ;;  %7530 = vmatpush3.msra.mxu0 %v11307_v26  ;;  %v13767_v26 = vld [vmem:[#allocation91_spill] sm:$0xff] }
 0x1fd   : > { %7557 = vmatpush3.msra.mxu1 %v13763_v1  ;;  %7531 = vmatprep.subr.mxu0 %v11320_v60 }
 0x1fe   : > { %7558 = vmatprep.subr.mxu1 %v13764_v30  ;;  %7532 = vmatpush3.msra.mxu0 %v11324_v47  ;;  %v13768_v30 = vand.u32 4294901760, %v10879_v45  ;;  %v13772_v45 = vand.u32 4294901760, %v10921_v48  ;;  %v13778_v48 = vand.u32 4294901760, %v10961_v57  ;;  %v13782_v57 = vand.u32 4294901760, %v11073_v6 }
 0x1ff   : > { %7559 = vmatpush3.msra.mxu1 %v13765_v44  ;;  %7533 = vmatprep.subr.mxu0 %v11336_v4  ;;  %v13769_v44 = vand.u32 4294901760, %v10885_v28  ;;  %v13773_v28 = vand.u32 4294901760, %v10927_v21  ;;  %v13779_v21 = vand.u32 4294901760, %v10967_v24  ;;  %v13787_v24 = vand.u32 4294901760, %v11152_v14 }
 0x200   : > { %7560 = vmatprep.subr.mxu1 %v11185_v53  ;;  %7534 = vmatpush3.msra.mxu0 %v11340_v62  ;;  %v13770_v62 = vand.u32 4294901760, %v10901_v59  ;;  %v13774_v59 = vand.u32 4294901760, %v10949_v29  ;;  %v13780_v29 = vand.u32 4294901760, %v11007_v52  ;;  %v13788_v6 = vand.u32 4294901760, %v11192_v17 }
 0x201   : > { %3449 = vmatprep.mubr.f32.mxu0 %v13766_v51  ;;  %7561 = vmatpush3.msra.mxu1 %v11197_v55  ;;  %v13771_v51 = vand.u32 4294901760, %v10907_v11  ;;  %v13776_v11 = vand.u32 4294901760, %v10936_v2  ;;  %v13781_v2 = vand.u32 4294901760, %v11038_v23  ;;  %v13789_v52 = vand.u32 4294901760, %v11167_v20  ;;  %v13796_v20 = vld [vmem:[#allocation57_spill] sm:$0xff] }
 0x202   : > { %3452 = vmatmul.mubr.f32.vlgmr.msra.gmra.mxu0 %v13767_v26  ;;  %7562 = vmatprep.subr.mxu1 %v11215_v22  ;;  %v13790_v23 = vand.u32 4294901760, %v11221_v32  ;;  %v13792_v17 = vand.u32 4294901760, %v11245_v37  ;;  %v13795_v14 = vand.u32 4294901760, %v11277_v42  ;;  %v13798_v32 = vld [vmem:[#allocation34_spill] sm:$0xff]  ;;  %v13802_v42 = vand.u32 4294901760, %v11324_v47  ;;  %v13803_v26 = vld [vmem:[#allocation20_spill] sm:$0xff] }
 0x203   : > { %7573 = vmatprep.subr.mxu0 %v13768_v30  ;;  %7563 = vmatpush3.msra.mxu1 %v11227_v39  ;;  %v13777_v30 = vld [vmem:[#allocation93_spill] sm:$0xff]  ;;  %v13799_v37 = vand.u32 4294901760, %v13798_v32 }
 0x204   : > { %7574 = vmatpush3.msra.mxu0 %v13769_v44  ;;  %7564 = vmatprep.subr.mxu1 %v11254_v8  ;;  %v13775_v44 = vld [vmem:[#allocation94_spill] sm:$0xff] }
 0x205   : > { %7575 = vmatprep.subr.mxu0 %v13770_v62  ;;  %7565 = vmatpush3.msra.mxu1 %v11264_v41 }
 0x206   : > { %7576 = vmatpush3.msra.mxu0 %v13771_v51  ;;  %7566 = vmatprep.subr.mxu1 %v11282_v5 }
 0x207   : > { %7577 = vmatprep.subr.mxu0 %v13772_v45  ;;  %7567 = vmatpush3.msra.mxu1 %v11292_v25 }
 0x208   : > { %7578 = vmatpush3.msra.mxu0 %v13773_v28  ;;  %7568 = vmatprep.subr.mxu1 %v11299_v18 }
 0x209   : > { %7579 = vmatprep.subr.mxu0 %v13774_v59  ;;  %7569 = vmatpush3.msra.mxu1 %v11312_v50 }
 0x20a   : > { %3556 = vmatprep.mubr.f32.mxu1 %v13775_v44  ;;  %7580 = vmatpush3.msra.mxu0 %v13776_v11 }
 0x20b   : > { %3560 = vmatmul.mubr.f32.vlgmr.msra.gmra.mxu1 %v13777_v30  ;;  %7581 = vmatprep.subr.mxu0 %v13778_v48 }
 0x20c   : > { %7608 = vmatprep.subr.mxu1 %v10841_v34  ;;  %7582 = vmatpush3.msra.mxu0 %v13779_v21  ;;  %v13783_v34 = vand.u32 4294901760, %v11078_v36  ;;  %v13791_v36 = vand.u32 4294901760, %v11208_v19  ;;  %v13797_v19 = vand.u32 4294901760, %v13796_v20 }
 0x20d   : > { %7609 = vmatpush3.msra.mxu1 %v10849_v15  ;;  %7583 = vmatprep.subr.mxu0 %v13780_v29  ;;  %v13784_v15 = vand.u32 4294901760, %v11112_v63  ;;  %v13793_v63 = vand.u32 4294901760, %v11251_v31  ;;  %v13800_v31 = vand.u32 4294901760, %v11320_v60  ;;  %v13808_v60 = vld [vmem:[#allocation89_spill] sm:$0xff] }
 0x20e   : > { %7610 = vmatprep.subr.mxu1 %v10857_v7  ;;  %7584 = vmatpush3.msra.mxu0 %v13781_v2  ;;  %v13785_v7 = vand.u32 4294901760, %v13751_v35 }
 0x20f   : > { %7611 = vmatpush3.msra.mxu1 %v10865_v10  ;;  %7585 = vmatprep.subr.mxu0 %v13782_v57  ;;  %v13786_v10 = vand.u32 4294901760, %v11133_v0  ;;  %v13794_v0 = vand.u32 4294901760, %v11271_v58  ;;  %v13801_v58 = vld [vmem:[#allocation49_spill] sm:$0xff] }
 0x210   : > { %7612 = vmatprep.subr.mxu1 %v13748_v54  ;;  %7586 = vmatpush3.msra.mxu0 %v13783_v34  ;;  %v13807_v54 = vld [vmem:[#allocation90_spill] sm:$0xff] }
 0x211   : > { %7613 = vmatpush3.msra.mxu1 %v13749_v43  ;;  %7587 = vmatprep.subr.mxu0 %v13784_v15 }
 0x212   : > { %7614 = vmatprep.subr.mxu1 %v13750_v9  ;;  %7588 = vmatpush3.msra.mxu0 %v13785_v7 }
 0x213   : > { %7615 = vmatpush3.msra.mxu1 %v13752_v3  ;;  %7589 = vmatprep.subr.mxu0 %v13786_v10 }
 0x214   : > { %7616 = vmatprep.subr.mxu1 %v13753_v56  ;;  %7590 = vmatpush3.msra.mxu0 %v13787_v24 }
 0x215   : > { %7617 = vmatpush3.msra.mxu1 %v13754_v46  ;;  %7591 = vmatprep.subr.mxu0 %v13788_v6 }
 0x216   : > { %7618 = vmatprep.subr.mxu1 %v13755_v13  ;;  %7592 = vmatpush3.msra.mxu0 %v13789_v52 }
 0x217   : > { %7619 = vmatpush3.msra.mxu1 %v13756_v38  ;;  %7593 = vmatprep.subr.mxu0 %v13790_v23 }
 0x218   : > { %7620 = vmatprep.subr.mxu1 %v13757_v27  ;;  %7594 = vmatpush3.msra.mxu0 %v13791_v36 }
 0x219   : > { %7621 = vmatpush3.msra.mxu1 %v13758_v49  ;;  %7595 = vmatprep.subr.mxu0 %v13792_v17 }
 0x21a   : > { %7622 = vmatprep.subr.mxu1 %v13759_v16  ;;  %7596 = vmatpush3.msra.mxu0 %v13793_v63 }
 0x21b   : > { %7623 = vmatpush3.msra.mxu1 %v13760_v12  ;;  %7597 = vmatprep.subr.mxu0 %v13794_v0 }
 0x21c   : > { %7624 = vmatprep.subr.mxu1 %v13761_v33  ;;  %7598 = vmatpush3.msra.mxu0 %v13795_v14 }
 0x21d   : > { %7625 = vmatpush3.msra.mxu1 %v13762_v40  ;;  %7599 = vmatprep.subr.mxu0 %v13797_v19  ;;  %v13804_v40 = vand.u32 4294901760, %v11336_v4 }
 0x21e   : > { %7626 = vmatprep.subr.mxu1 %v11129_v61  ;;  %7600 = vmatpush3.msra.mxu0 %v13799_v37  ;;  %v13805_v61 = vld [vmem:[#allocation71_spill] sm:$0xff]  ;;  %v7982_v37 = vmov 0.0  }
 0x21f   : > { %7627 = vmatpush3.msra.mxu1 %v13763_v1  ;;  %7601 = vmatprep.subr.mxu0 %v13800_v31  ;;  %v13806_v62 = vand.u32 4294901760, %v13805_v61 }
 0x220   : > { %7628 = vmatprep.subr.mxu1 %v13801_v58  ;;  %7602 = vmatpush3.msra.mxu0 %v13802_v42 }
 0x221   : > { %7629 = vmatpush3.msra.mxu1 %v13803_v26  ;;  %7603 = vmatprep.subr.mxu0 %v13804_v40 }
 0x222   : > { %7630 = vmatprep.subr.mxu1 %v11185_v53  ;;  %7604 = vmatpush3.msra.mxu0 %v13806_v62  ;;  %v1831_v53 = vpop.f32.mrf.mxu0 }
 0x223   : > { %3726 = vmatprep.mubr.f32.mxu0 %v13807_v54  ;;  %7631 = vmatpush3.msra.mxu1 %v11197_v55 }
 0x224   : > { %3728 = vmatmul.mubr.f32.vlgmr.msra.gmra.mxu0 %v13808_v60  ;;  %7632 = vmatprep.subr.mxu1 %v11215_v22  ;;  %v1833_v55 = vpop.f32.mrf.mxu0  ;;  %v2224_v22 = vpop.f32.mrf.mxu1 }
 0x225   : > { %3830 = vmatprep.mubr.f32.mxu1 %v13807_v54  ;;  %7633 = vmatpush3.msra.mxu1 %v11227_v39  ;;  %v2225_v39 = vadd.f32 %v2224_v22, %v1831_v53 }
 0x226   : > { %7634 = vmatprep.subr.mxu1 %v11254_v8  ;;  %v2226_v4 = vpop.f32.mrf.mxu1  ;;  %4131 = vmatprep.mubr.f32.mxu0 %v7982_v37 }
 0x227   : > { %7635 = vmatpush3.msra.mxu1 %v11264_v41  ;;  %v2227_v9 = vadd.f32 %v2226_v4, %v1833_v55 }
 0x228   : > { %7636 = vmatprep.subr.mxu1 %v11282_v5 }
 0x229   : > { %7637 = vmatpush3.msra.mxu1 %v11292_v25 }
 0x22a   : > { %7638 = vmatprep.subr.mxu1 %v11299_v18 }
 0x22b   : > { %7639 = vmatpush3.msra.mxu1 %v11312_v50 }
 0x22c   : > { %3832 = vmatmul.mubr.f32.vlgmr.msra.gmra.mxu1 %v13808_v60 }
 0x22d   : > { %4237 = vmatprep.mubr.f32.mxu1 %v7982_v37 }
 0x23a   : > { %v2427_v47 = vpop.f32.mrf.mxu0 }
 0x23b   : > { %v2428_v43 = vadd.f32 %v2427_v47, %v2225_v39 }
 0x23c   : > { %v2429_v1 = vpop.f32.mrf.mxu0  ;;  %v3843_v50 = vpop.permute.xlu0 %3842 }
 0x23d   : > { %v2430_v25 = vadd.f32 %v2429_v1, %v2227_v9  ;;  %v11560_v51 = vsel %vm3852_vm0, 0.0, %v3843_v50  ;;  %v4051_v9 = vld [vmem:[%s12460_s1] sm:$0xf] }
 0x23e   : > { %v11571_v45 = vrot.slane %v11560_v51, 4 }
 0x240   : > { %v3845_v16 = vpop.permute.xlu0 %3844 }
 0x241   : > { %v11553_v12 = vsel %vm3852_vm0, %v3843_v50, %v3845_v16  ;;  %v4059_v50 = vsel %vm4057_vm8, %v4051_v9, 0 }
 0x242   : > { %v3870_v33 = vrot.slane %v11553_v12, 4 }
 0x243   : > { %v2568_v8 = vpop.f32.mrf.mxu1 }
 0x244   : > { %v2569_v5 = vadd.f32 %v2568_v8, %v2428_v43 }
 0x245   : > { %v2570_v35 = vpop.f32.mrf.mxu1 }
 0x246   : > { %v2571_v46 = vadd.f32 %v2570_v35, %v2430_v25 }
 0x27d   : > { %v2833_v41 = vpop.f32.mrf.mxu0 }
 0x27e   : > { %v2834_v3 = vadd.f32 %v2833_v41, %v2569_v5 }
 0x27f   : > { %v2835_v18 = vpop.f32.mrf.mxu0 }
 0x280   : > { %v2836_v27 = vadd.f32 %v2835_v18, %v2571_v46 }
 0x286   : > { %v2970_v56 = vpop.f32.mrf.mxu1 }
 0x287   : > { %v2971_v13 = vadd.f32 %v2970_v56, %v2834_v3 }
 0x288   : > { %v2972_v38 = vpop.f32.mrf.mxu1 }
 0x289   : > { %3846 = vrot.lane.b32.xlu1 %v2971_v13, %s7976_s15  ;;  %v2973_v49 = vadd.f32 %v2972_v38, %v2836_v27  ;;  %v11657_v38 = vand.u32 4294901760, %v4059_v50 }
 0x28d   : > { %3848 = vrot.lane.b32.xlu1 %v2973_v49, %s7976_s15 }
 0x291   : > { %3936 = vrot.lane.b32.xlu1 %v11553_v12, %s7977_s12 }
 0x295   : > { %3956 = vrot.lane.b32.xlu1 %v3870_v33, %s7978_s13 }
 0x299   : > { %3934 = vrot.lane.b32.xlu1 %v11560_v51, %s7977_s12 }
 0x29d   : > { %3896 = vrot.lane.b32.xlu1 %v11553_v12, %s7979_s14 }
 0x2a1   : > { %3916 = vrot.lane.b32.xlu1 %v3870_v33, %s7980_s16  ;;  %v7465_v28 = vpop.f32.mrf.mxu0 }
 0x2a3   : > { %v7466_v59 = vpop.f32.mrf.mxu0 }
 0x2a4   : > { %v7467_v34 = vadd.f32 %v7466_v59, %v7465_v28  ;;  %v11667_v28 = vsub.f32 %v4059_v50, %v11657_v38 }
 0x2a5   : > { %3894 = vrot.lane.b32.xlu1 %v11560_v51, %s7979_s14 }
 0x2a9   : > { %3876 = vrot.lane.b32.xlu1 %v3870_v33, %s7981_s17  ;;  %v7500_v44 = vpop.f32.mrf.mxu1 }
 0x2ab   : > { %v7501_v30 = vpop.f32.mrf.mxu1 }
 0x2ac   : > { %v7502_v2 = vadd.f32 %v7501_v30, %v7500_v44 }
 0x2ad   : > { %3874 = vrot.lane.b32.xlu1 %v11571_v45, %s7981_s17 }
 0x2ae   : > { %v3316_v10 = vadd.f32 %v7502_v2, %v7467_v34  ;;  %v11688_v2 = vand.u32 4294901760, %v11667_v28 }
 0x2c2   : > { %v7535_v11 = vpop.f32.mrf.mxu0 }
 0x2c4   : > { %v7536_v48 = vpop.f32.mrf.mxu0 }
 0x2c5   : > { %v7537_v15 = vadd.f32 %v7536_v48, %v7535_v11 }
 0x2c7   : > { %v3454_v6 = vadd.f32 %v7537_v15, %v3316_v10 }
 0x2cb   : > { %v7570_v21 = vpop.f32.mrf.mxu1 }
 0x2cd   : > { %v7571_v57 = vpop.f32.mrf.mxu1 }
 0x2ce   : > { %v7572_v24 = vadd.f32 %v7571_v57, %v7570_v21 }
 0x2d0   : > { %v3562_v36 = vadd.f32 %v7572_v24, %v3454_v6 }
 0x2e4   : > { %v7605_v29 = vpop.f32.mrf.mxu0 }
 0x2e6   : > { %v7606_v7 = vpop.f32.mrf.mxu0 }
 0x2e7   : > { %v7607_v52 = vadd.f32 %v7606_v7, %v7605_v29 }
 0x2e9   : > { %v3730_v63 = vadd.f32 %v7607_v52, %v3562_v36 }
 0x2ec   : > { %v7640_v23 = vpop.f32.mrf.mxu1 }
 0x2ee   : > { %v7641_v17 = vpop.f32.mrf.mxu1 }
 0x2ef   : > { %v7642_v0 = vadd.f32 %v7641_v17, %v7640_v23  ;;  %v4135_v23 = vsub.f32 %v11667_v28, %v11688_v2 }
 0x2f1   : > { %v3834_v14 = vadd.f32 %v7642_v0, %v3730_v63 }
 0x2f3   : > { %3850 = vrot.lane.b32.xlu0 %v3834_v14, %s7976_s15 }
 0x2f7   : > { %3954 = vrot.lane.b32.xlu0 %v11571_v45, %s7978_s13 }
 0x2fb   : > { %v3847_v20 = vpop.permute.xlu1 %3846  ;;  %3914 = vrot.lane.b32.xlu0 %v11571_v45, %s7980_s16 }
 0x2fc   : > { %v11581_v19 = vsel %vm3852_vm0, %v3845_v16, %v3847_v20 }
 0x2fd   : > { %v11588_v32 = vrot.slane %v11581_v19, 4 }
 0x2ff   : > { %3938 = vrot.lane.b32.xlu0 %v11581_v19, %s7977_s12  ;;  %v3849_v31 = vpop.permute.xlu1 %3848 }
 0x300   : > { %v11599_v58 = vsel %vm3852_vm0, %v3847_v20, %v3849_v31 }
 0x301   : > { %v11606_v42 = vrot.slane %v11599_v58, 4 }
 0x303   : > { %3898 = vrot.lane.b32.xlu0 %v11581_v19, %s7979_s14  ;;  %v3937_v26 = vpop.permute.xlu1 %3936 }
 0x307   : > { %3958 = vrot.lane.b32.xlu0 %v11588_v32, %s7978_s13  ;;  %v3957_v40 = vpop.permute.xlu1 %3956 }
 0x30b   : > { %3918 = vrot.lane.b32.xlu0 %v11588_v32, %s7980_s16  ;;  %v3935_v61 = vpop.permute.xlu1 %3934 }
 0x30c   : > { %v3945_v8 = vsel %vm3944_vm4, %v3935_v61, %v3937_v26 }
 0x30f   : > { %3878 = vrot.lane.b32.xlu0 %v11588_v32, %s7981_s17  ;;  %v3897_v62 = vpop.permute.xlu1 %3896 }
 0x313   : > { %3940 = vrot.lane.b32.xlu0 %v11599_v58, %s7977_s12  ;;  %v3917_v54 = vpop.permute.xlu1 %3916 }
 0x317   : > { %3900 = vrot.lane.b32.xlu0 %v11599_v58, %s7979_s14  ;;  %v3895_v22 = vpop.permute.xlu1 %3894 }
 0x318   : > { %v3905_v5 = vsel %vm3904_vm5, %v3895_v22, %v3897_v62 }
 0x31b   : > { %3960 = vrot.lane.b32.xlu0 %v11606_v42, %s7978_s13  ;;  %v3877_v35 = vpop.permute.xlu1 %3876 }
 0x31f   : > { %3920 = vrot.lane.b32.xlu0 %v11606_v42, %s7980_s16  ;;  %v3875_v27 = vpop.permute.xlu1 %3874 }
 0x323   : > { %3880 = vrot.lane.b32.xlu0 %v11606_v42, %s7981_s17 }
 0x327   : > { %3976 = vrot.lane.b32.xlu0 %v11553_v12, %s7983_s23 }
 0x32b   : > { %3996 = vrot.lane.b32.xlu0 %v3870_v33, %s7984_s24  ;;  %v3885_v33 = vsel %vm3884_vm9, %v3875_v27, %v3877_v35 }
 0x32c   : > { %v4030_v30 = vsel %vm4029_vm7, %v11560_v51, %v3885_v33 }
 0x32d   : > { %v11693_v34 = vand.u32 4294901760, %v4030_v30 }
 0x32f   : > { %3974 = vrot.lane.b32.xlu0 %v11560_v51, %s7983_s23  ;;  %v11718_v14 = vsub.f32 %v4030_v30, %v11693_v34 }
 0x333   : > { %4016 = vrot.lane.b32.xlu0 %v11553_v12, %s7985_s26 }
 0x337   : > { %4014 = vrot.lane.b32.xlu0 %v11560_v51, %s7985_s26 }
 0x365   : > { %v3851_v60 = vpop.permute.xlu0 %3850 }
 0x366   : > { %v3856_v53 = vsel %vm3852_vm0, %v3849_v31, %v3851_v60  ;;  %vm7215_vm0 = vcmask 523264  }
 0x367   : > { %v3864_v55 = vsel %vm3863_vm1, %v3856_v53, 0.0  ;;  %vm7176_vm1 = vcmask 990208  }
 0x368   : > { %v11624_v47 = vsel %vm3865_vm2, %v3864_v55, 0.0  ;;  %v11742_v55 = vand.u32 4294901760, %v4135_v23  ;;  %vm7217_vm2 = vcmask 785408  }
 0x369   : > { %3982 = vrot.lane.b32.xlu0 %v11624_v47, %s7983_s23  ;;  %3942 = vrot.lane.b32.xlu1 %v11624_v47, %s7977_s12  ;;  %v3955_v4 = vpop.permute.xlu0 %3954  ;;  %v3873_v1 = vrot.slane %v11624_v47, 4  ;;  %s7989_s12 = smov 29  }
 0x36a   : > { %v3965_v39 = vsel %vm3964_vm3, %v3955_v4, %v3957_v40  ;;  %v4201_v4 = vand.u32 4294901760, %v11718_v14 }
 0x36b   : > { %v11634_v43 = vsel %vm4029_vm7, %v3945_v8, %v3965_v39 }
 0x36c   : > { %v5585_v18 = vrot.slane %v11634_v43, 4  ;;  %v11660_v49 = vand.u32 4294901760, %v11634_v43 }
 0x36d   : > { %3902 = vrot.lane.b32.xlu1 %v11624_v47, %s7979_s14  ;;  %4002 = vrot.lane.b32.xlu0 %v3873_v1, %s7984_s24  ;;  %v3915_v41 = vpop.permute.xlu0 %3914  ;;  %s7991_s14 = smov 51  }
 0x36e   : > { %v3925_v25 = vsel %vm3924_vm6, %v3915_v41, %v3917_v54  ;;  %v11671_v59 = vsub.f32 %v11634_v43, %v11660_v49 }
 0x36f   : > { %v4035_v3 = vsel %vm4029_vm7, %v3905_v5, %v3925_v25  ;;  %v4202_v25 = vsub.f32 %v11718_v14, %v4201_v4 }
 0x370   : > { %v5584_v56 = vrot.slane %v4035_v3, 4  ;;  %v11673_v44 = vand.u32 4294901760, %v4035_v3  ;;  %v4177_v7 = vand.u32 4294901760, %v11671_v59 }
 0x371   : > { %4022 = vrot.lane.b32.xlu0 %v11624_v47, %s7985_s26  ;;  %3962 = vrot.lane.b32.xlu1 %v3873_v1, %s7978_s13  ;;  %v11650_v46 = vpop.permute.xlu0 %3938  ;;  %v4203_v27 = vand.u32 4294901760, %v4202_v25  ;;  %s7990_s13 = smov 119  }
 0x372   : > { %v11655_v13 = vsel %vm4029_vm7, %v5584_v56, %v5585_v18  ;;  %v3946_v48 = vsel %vm3944_vm4, %v3937_v26, %v11650_v46  ;;  %v11696_v15 = vsub.f32 %v4035_v3, %v11673_v44  ;;  %v4178_v31 = vsub.f32 %v11671_v59, %v4177_v7 }
 0x374   : > { %v4189_v26 = vand.u32 4294901760, %v11696_v15 }
 0x375   : > { %3922 = vrot.lane.b32.xlu1 %v3873_v1, %s7980_s16  ;;  %v11663_v16 = vpop.permute.xlu0 %3898  ;;  %s7992_s16 = smov 81  }
 0x376   : > { %v3906_v10 = vsel %vm3904_vm5, %v3897_v62, %v11663_v16  ;;  %v4190_v8 = vsub.f32 %v11696_v15, %v4189_v26 }
 0x379   : > { %3882 = vrot.lane.b32.xlu1 %v3873_v1, %s7981_s17  ;;  %v11676_v11 = vpop.permute.xlu0 %3958  ;;  %v4179_v1 = vand.u32 4294901760, %v4178_v31 }
 0x37a   : > { %v3966_v21 = vsel %vm3964_vm3, %v3957_v40, %v11676_v11 }
 0x37b   : > { %v11685_v29 = vsel %vm4029_vm7, %v3946_v48, %v3966_v21 }
 0x37c   : > { %v11691_v57 = vand.u32 4294901760, %v11685_v29  ;;  %v5588_v36 = vrot.slane %v11685_v29, 4 }
 0x37d   : > { %3978 = vrot.lane.b32.xlu1 %v11581_v19, %s7983_s23  ;;  %v11700_v51 = vpop.permute.xlu0 %3918 }
 0x37e   : > { %v4170_v24 = vsub.f32 %v11685_v29, %v11691_v57  ;;  %v3926_v6 = vsel %vm3924_vm6, %v3917_v54, %v11700_v51  ;;  %4088 = vmatprep.subr.mxu0 %v11691_v57 }
 0x37f   : > { %v4036_v52 = vsel %vm4029_vm7, %v3906_v10, %v3926_v6  ;;  %4090 = vmatpush1.msra.mxu0 %v11660_v49 }
 0x380   : > { %v11715_v17 = vand.u32 4294901760, %v4036_v52  ;;  %v5587_v63 = vrot.slane %v4036_v52, 4  ;;  %v4171_v0 = vand.u32 4294901760, %v4170_v24 }
 0x381   : > { %3998 = vrot.lane.b32.xlu1 %v11588_v32, %s7984_s24  ;;  %v11722_v20 = vpop.permute.xlu0 %3878 }
 0x382   : > { %v4182_v40 = vsub.f32 %v4036_v52, %v11715_v17  ;;  %v3886_v61 = vsel %vm3884_vm9, %v3877_v35, %v11722_v20  ;;  %4092 = vmatprep.subr.mxu0 %v11715_v17  ;;  %v4172_v62 = vsub.f32 %v4170_v24, %v4171_v0  ;;  %v11735_v32 = vsel %vm4029_vm7, %v5587_v63, %v5588_v36 }
 0x383   : > { %v4031_v54 = vsel %vm4029_vm7, %v11553_v12, %v3886_v61  ;;  %4094 = vmatpush1.msra.mxu0 %v11673_v44  ;;  %v4191_v35 = vand.u32 4294901760, %v4190_v8 }
 0x384   : > { %v11740_v60 = vand.u32 4294901760, %v4031_v54  ;;  %v4173_v53 = vand.u32 4294901760, %v4172_v62  ;;  %v4183_v22 = vand.u32 4294901760, %v4182_v40 }
 0x385   : > { %3994 = vrot.lane.b32.xlu1 %v11571_v45, %s7984_s24  ;;  %v11747_v39 = vpop.permute.xlu0 %3940 }
 0x386   : > { %4096 = vmatprep.subr.mxu0 %v11740_v60  ;;  %4174 = vmatprep.subr.mxu1 %v4173_v53  ;;  %v4184_v12 = vsub.f32 %v4182_v40, %v4183_v22  ;;  %v4194_v41 = vsub.f32 %v4031_v54, %v11740_v60  ;;  %v3947_v33 = vsel %vm3944_vm4, %v11650_v46, %v11747_v39 }
 0x387   : > { %4098 = vmatpush1.msra.mxu0 %v11693_v34  ;;  %4180 = vmatpush1.msra.mxu1 %v4179_v1 }
 0x388   : > { %4273 = vmatprep.subr.mxu0 %v4170_v24  ;;  %4137 = vmatmul.mubr.f32.vlgmr.msra.gmra.mxu0 %v11742_v55  ;;  %v4185_v9 = vand.u32 4294901760, %v4184_v12  ;;  %v4195_v5 = vand.u32 4294901760, %v4194_v41 }
 0x389   : > { %4018 = vrot.lane.b32.xlu1 %v11581_v19, %s7985_s26  ;;  %4276 = vmatpush1.msra.mxu0 %v11671_v59  ;;  %v11757_v45 = vpop.permute.xlu0 %3900 }
 0x38a   : > { %4186 = vmatprep.subr.mxu1 %v4185_v9  ;;  %4279 = vmatprep.subr.mxu0 %v4182_v40  ;;  %v4196_v3 = vsub.f32 %v4194_v41, %v4195_v5 }
 0x38b   : > { %4192 = vmatpush1.msra.mxu1 %v4191_v35  ;;  %4282 = vmatpush1.msra.mxu0 %v11696_v15 }
 0x38c   : > { %4285 = vmatprep.subr.mxu0 %v4194_v41  ;;  %v4197_v56 = vand.u32 4294901760, %v4196_v3  ;;  %4321 = vmatprep.mubr.f32.mxu0 %v7982_v37 }
 0x38d   : > { %3980 = vrot.lane.b32.xlu1 %v11599_v58, %s7983_s23  ;;  %4288 = vmatpush1.msra.mxu0 %v11718_v14  ;;  %v3961_v50 = vpop.permute.xlu0 %3960  ;;  %s7994_s23 = smov 111  }
 0x38e   : > { %v3967_v30 = vsel %vm3964_vm3, %v11676_v11, %v3961_v50  ;;  %4198 = vmatprep.subr.mxu1 %v4197_v56  ;;  %4439 = vmatprep.subr.mxu0 %v4171_v0  ;;  %v3907_v11 = vsel %vm3904_vm5, %v11663_v16, %v11757_v45 }
 0x38f   : > { %v11771_v48 = vsel %vm4029_vm7, %v3947_v33, %v3967_v30  ;;  %4204 = vmatpush1.msra.mxu1 %v4203_v27  ;;  %4324 = vmatmul.mubr.f32.vlgmr.msra.gmra.mxu0 %v11667_v28 }
 0x390   : > { %4443 = vmatpush1.msra.mxu0 %v4177_v7  ;;  %4357 = vmatprep.subr.mxu1 %v11691_v57  ;;  %v11817_v10 = vand.u32 4294901760, %v11771_v48 }
 0x391   : > { %4000 = vrot.lane.b32.xlu1 %v11606_v42, %s7984_s24  ;;  %4447 = vmatprep.subr.mxu0 %v4183_v22  ;;  %v3921_v46 = vpop.permute.xlu0 %3920  ;;  %v5591_v42 = vrot.slane %v11771_v48, 4 }
 0x392   : > { %4239 = vmatmul.mubr.f32.vlgmr.msra.gmra.mxu1 %v11657_v38  ;;  %4451 = vmatpush1.msra.mxu0 %v4189_v26  ;;  %v3927_v21 = vsel %vm3924_vm6, %v11700_v51, %v3921_v46  ;;  %v4050_v51 = vld [vmem:[%s12463_s4] sm:$0xf]  ;;  %v11823_v6 = vsub.f32 %v11771_v48, %v11817_v10 }
 0x393   : > { %4359 = vmatpush1.msra.mxu1 %v11660_v49  ;;  %v4037_v59 = vsel %vm4029_vm7, %v3907_v11, %v3927_v21  ;;  %4455 = vmatprep.subr.mxu0 %v4195_v5 }
 0x394   : > { %v5590_v15 = vrot.slane %v4037_v59, 4  ;;  %4361 = vmatprep.subr.mxu1 %v11715_v17  ;;  %4459 = vmatpush1.msra.mxu0 %v4201_v4  ;;  %v4694_v40 = vand.u32 4294901760, %v11823_v6 }
 0x395   : > { %4020 = vrot.lane.b32.xlu1 %v11599_v58, %s7985_s26  ;;  %4363 = vmatpush1.msra.mxu1 %v11673_v44  ;;  %v3881_v7 = vpop.permute.xlu0 %3880  ;;  %s7996_s26 = smov 13  }
 0x396   : > { %4365 = vmatprep.subr.mxu1 %v11740_v60  ;;  %4400 = vmatprep.mubr.f32.mxu1 %v7982_v37  ;;  %v11799_v16 = vsel %vm4029_vm7, %v5590_v15, %v5591_v42  ;;  %v3887_v24 = vsel %vm3884_vm9, %v11722_v20, %v3881_v7  ;;  %v4695_v41 = vsub.f32 %v11823_v6, %v4694_v40 }
 0x397   : > { %4367 = vmatpush1.msra.mxu1 %v11693_v34  ;;  %4492 = vmatprep.mubr.f32.mxu0 %v7982_v37  ;;  %v4032_v23 = vsel %vm4029_vm7, %v11581_v19, %v3887_v24 }
 0x398   : > { %4527 = vmatprep.subr.mxu1 %v11691_v57  ;;  %4404 = vmatmul.mubr.f32.vlgmr.msra.gmra.mxu1 %v11688_v2  ;;  %v7986_v57 = vmov 0   ;;  %v11841_v31 = vand.u32 4294901760, %v4032_v23  ;;  %v4696_v21 = vand.u32 4294901760, %v4695_v41 }
 0x399   : > { %4529 = vmatpush1.msra.mxu1 %v11660_v49  ;;  %4494 = vmatmul.mubr.f32.vlgmr.msra.gmra.mxu0 %v11657_v38  ;;  %v11884_v11 = vpop.permute.xlu0 %3976 }
 0x39a   : > { %4531 = vmatprep.subr.mxu1 %v11715_v17  ;;  %4570 = vmatprep.mubr.f32.mxu1 %v7982_v37  ;;  %v11861_v1 = vsub.f32 %v4032_v23, %v11841_v31 }
 0x39b   : > { %4533 = vmatpush1.msra.mxu1 %v11673_v44  ;;  %4648 = vmatprep.mubr.f32.mxu0 %v7982_v37 }
 0x39c   : > { %4535 = vmatprep.subr.mxu1 %v11740_v60  ;;  %7895 = vset.pattern.permute.xlu1 %v7986_v57 }
 0x39d   : > { %4537 = vmatpush1.msra.mxu1 %v11693_v34  ;;  %4054 = vperm.xlu1 %7895, %v4050_v51   ;;  %v11825_v34 = vand.u32 4294901760, %v4037_v59  ;;  %v3997_v23 = vpop.permute.xlu0 %3996 }
 0x39e   : > { %4572 = vmatmul.mubr.f32.vlgmr.msra.gmra.mxu1 %v11657_v38  ;;  %7896 = vset.pattern.permute.xlu0 %v7986_v57 }
 0x39f   : > { %4754 = vmatprep.mubr.f32.mxu1 %v7982_v37  ;;  %v11839_v20 = vsub.f32 %v4037_v59, %v11825_v34 }
 0x3a1   : > { %v4706_v9 = vand.u32 4294901760, %v11839_v20 }
 0x3a3   : > { %v4707_v59 = vsub.f32 %v11839_v20, %v4706_v9 }
 0x3db   : > { %v3943_v49 = vpop.permute.xlu1 %3942 }
 0x3dc   : > { %v3948_v17 = vsel %vm3944_vm4, %v11747_v39, %v3943_v49  ;;  %vm7202_vm4 = vcmask 662528  }
 0x3df   : > { %v3903_v44 = vpop.permute.xlu1 %3902 }
 0x3e0   : > { %v3908_v19 = vsel %vm3904_vm5, %v11757_v45, %v3903_v44  ;;  %vm7251_vm5 = vcmask 596992  }
 0x3e3   : > { %v3963_v52 = vpop.permute.xlu1 %3962 }
 0x3e4   : > { %v3968_v63 = vsel %vm3964_vm3, %v3961_v50, %v3963_v52  ;;  %v11856_v53 = vsel %vm4029_vm7, %v3943_v49, %v3963_v52  ;;  %vm7210_vm3 = vcmask 924672  }
 0x3e5   : > { %v11833_v0 = vsel %vm4029_vm7, %v3948_v17, %v3968_v63  ;;  %v5597_v3 = vrot.slane %v11856_v53, 4 }
 0x3e6   : > { %v11836_v14 = vand.u32 4294901760, %v11833_v0  ;;  %v5594_v5 = vrot.slane %v11833_v0, 4 }
 0x3e7   : > { %v3923_v26 = vpop.permute.xlu1 %3922 }
 0x3e8   : > { %v4687_v61 = vsub.f32 %v11833_v0, %v11836_v14  ;;  %v3928_v62 = vsel %vm3924_vm6, %v3921_v46, %v3923_v26  ;;  %v11850_v54 = vsel %vm4029_vm7, %v3903_v44, %v3923_v26  ;;  %4605 = vmatprep.subr.mxu0 %v11836_v14  ;;  %v4718_v46 = vand.u32 4294901760, %v11861_v1 }
 0x3e9   : > { %v4038_v60 = vsel %vm4029_vm7, %v3908_v19, %v3928_v62  ;;  %4607 = vmatpush1.msra.mxu0 %v11817_v10  ;;  %v5596_v8 = vrot.slane %v11850_v54, 4  ;;  %v4708_v44 = vand.u32 4294901760, %v4707_v59  ;;  %v11907_v19 = vand.u32 4294901760, %v11856_v53 }
 0x3ea   : > { %v11858_v22 = vand.u32 4294901760, %v4038_v60  ;;  %v5593_v4 = vrot.slane %v4038_v60, 4  ;;  %v4688_v39 = vand.u32 4294901760, %v4687_v61  ;;  %v4719_v24 = vsub.f32 %v11861_v1, %v4718_v46 }
 0x3eb   : > { %v3883_v12 = vpop.permute.xlu1 %3882  ;;  %v11916_v62 = vand.u32 4294901760, %v11850_v54  ;;  %vm7259_vm6 = vcmask 859136  }
 0x3ec   : > { %v4699_v45 = vsub.f32 %v4038_v60, %v11858_v22  ;;  %v3888_v35 = vsel %vm3884_vm9, %v3881_v7, %v3883_v12  ;;  %4609 = vmatprep.subr.mxu0 %v11858_v22  ;;  %v4689_v25 = vsub.f32 %v4687_v61, %v4688_v39  ;;  %v11881_v30 = vsel %vm4029_vm7, %v5593_v4, %v5594_v5 }
 0x3ed   : > { %v4033_v56 = vsel %vm4029_vm7, %v11599_v58, %v3888_v35  ;;  %4611 = vmatpush1.msra.mxu0 %v11825_v34  ;;  %v11890_v58 = vsel %vm4029_vm7, %v5596_v8, %v5597_v3  ;;  %v4720_v63 = vand.u32 4294901760, %v4719_v24 }
 0x3ee   : > { %v11876_v50 = vand.u32 4294901760, %v4033_v56  ;;  %v4690_v27 = vand.u32 4294901760, %v4689_v25  ;;  %v4700_v33 = vand.u32 4294901760, %v4699_v45 }
 0x3ef   : > { %v11895_v57 = vpop.permute.xlu1 %3978 }
 0x3f0   : > { %4613 = vmatprep.subr.mxu0 %v11876_v50  ;;  %4691 = vmatprep.subr.mxu1 %v4690_v27  ;;  %v4701_v15 = vsub.f32 %v4699_v45, %v4700_v33  ;;  %v4711_v51 = vsub.f32 %v4033_v56, %v11876_v50 }
 0x3f1   : > { %4615 = vmatpush1.msra.mxu0 %v11841_v31  ;;  %4697 = vmatpush1.msra.mxu1 %v4696_v21 }
 0x3f2   : > { %4790 = vmatprep.subr.mxu0 %v4687_v61  ;;  %4654 = vmatmul.mubr.f32.vlgmr.msra.gmra.mxu0 %v11742_v55  ;;  %v4702_v49 = vand.u32 4294901760, %v4701_v15  ;;  %v4712_v7 = vand.u32 4294901760, %v4711_v51  ;;  %v4034_v61 = vsel %vm4029_vm7, %v11624_v47, %v3883_v12  ;;  %v11931_v47 = vsub.f32 %v11850_v54, %v11916_v62 }
 0x3f3   : > { %4793 = vmatpush1.msra.mxu0 %v11823_v6  ;;  %4838 = vmatprep.mubr.f32.mxu0 %v7982_v37  ;;  %v11903_v26 = vpop.permute.xlu1 %3998  ;;  %v11922_v6 = vsub.f32 %v11856_v53, %v11907_v19 }
 0x3f4   : > { %4703 = vmatprep.subr.mxu1 %v4702_v49  ;;  %4796 = vmatprep.subr.mxu0 %v4699_v45  ;;  %v4713_v52 = vsub.f32 %v4711_v51, %v4712_v7  ;;  %v5209_v54 = vand.u32 4294901760, %v11931_v47  ;;  %v4006_v41 = vsel %vm4004_vm10, %v3997_v23, %v11903_v26 }
 0x3f5   : > { %4709 = vmatpush1.msra.mxu1 %v4708_v44  ;;  %4799 = vmatpush1.msra.mxu0 %v11839_v20  ;;  %v3975_v20 = vpop.permute.xlu0 %3974 }
 0x3f6   : > { %4802 = vmatprep.subr.mxu0 %v4711_v51  ;;  %v4714_v17 = vand.u32 4294901760, %v4713_v52  ;;  %v5210_v56 = vsub.f32 %v11931_v47, %v5209_v54 }
 0x3f7   : > { %4805 = vmatpush1.msra.mxu0 %v11861_v1  ;;  %v3995_v60 = vpop.permute.xlu1 %3994 }
 0x3f8   : > { %4715 = vmatprep.subr.mxu1 %v4714_v17  ;;  %4956 = vmatprep.subr.mxu0 %v4688_v39  ;;  %v5202_v39 = vand.u32 4294901760, %v11922_v6  ;;  %v4005_v12 = vsel %vm4004_vm10, %v3995_v60, %v3997_v23  ;;  %v5211_v59 = vand.u32 4294901760, %v5210_v56  ;;  %v12051_v60 = vand.u32 4294901760, %v11655_v13 }
 0x3f9   : > { %4721 = vmatpush1.msra.mxu1 %v4720_v63  ;;  %4841 = vmatmul.mubr.f32.vlgmr.msra.gmra.mxu0 %v11667_v28  ;;  %v4017_v4 = vpop.permute.xlu0 %4016 }
 0x3fa   : > { %4960 = vmatpush1.msra.mxu0 %v4694_v40  ;;  %4756 = vmatmul.mubr.f32.vlgmr.msra.gmra.mxu1 %v11657_v38  ;;  %v11924_v40 = vand.u32 4294901760, %v4034_v61 }
 0x3fb   : > { %4874 = vmatprep.subr.mxu1 %v11836_v14  ;;  %4964 = vmatprep.subr.mxu0 %v4700_v33  ;;  %v11946_v8 = vpop.permute.xlu1 %4018 }
 0x3fc   : > { %4876 = vmatpush1.msra.mxu1 %v11817_v10  ;;  %4968 = vmatpush1.msra.mxu0 %v4706_v9  ;;  %v11939_v1 = vsub.f32 %v4034_v61, %v11924_v40  ;;  %v3985_v9 = vsel %vm3984_vm11, %v3975_v20, %v11884_v11  ;;  %v4026_v35 = vsel %vm4024_vm12, %v4017_v4, %v11946_v8 }
 0x3fd   : > { %4878 = vmatprep.subr.mxu1 %v11858_v22  ;;  %4972 = vmatprep.subr.mxu0 %v4712_v7  ;;  %v4015_v45 = vpop.permute.xlu0 %4014  ;;  %v4045_v25 = vsel %vm4029_vm7, %v3985_v9, %v4005_v12 }
 0x3fe   : > { %4880 = vmatpush1.msra.mxu1 %v11825_v34  ;;  %4976 = vmatpush1.msra.mxu0 %v4718_v46  ;;  %v4025_v33 = vsel %vm4024_vm12, %v4015_v45, %v4017_v4  ;;  %v5599_v21 = vrot.slane %v4045_v25, 4 }
 0x3ff   : > { %4882 = vmatprep.subr.mxu1 %v11876_v50  ;;  %5009 = vmatprep.mubr.f32.mxu0 %v7982_v37  ;;  %v5609_v51 = vrot.slane %v4025_v33, 4  ;;  %v12003_v24 = vpop.permute.xlu1 %3980 }
 0x400   : > { %7691 = vmatprep.subr.mxu0 %v7982_v37  ;;  %4884 = vmatpush1.msra.mxu1 %v11841_v31  ;;  %v5600_v63 = vsel %vm4029_vm7, %v5585_v18, %v5599_v21 }
 0x401   : > { %4917 = vmatprep.mubr.f32.mxu1 %v7982_v37  ;;  %5011 = vmatmul.mubr.f32.vlgmr.msra.gmra.mxu0 %v11657_v38  ;;  %v5610_v44 = vsel %vm4029_vm7, %v5599_v21, %v5609_v51  ;;  %v12020_v20 = vpop.permute.xlu0 %3982  ;;  %v12034_v43 = vand.u32 4294901760, %v5600_v63 }
 0x402   : > { %7692 = vmatpush3.msra.mxu0 %v11907_v19  ;;  %4921 = vmatmul.mubr.f32.vlgmr.msra.gmra.mxu1 %v11688_v2  ;;  %v12025_v29 = vand.u32 4294901760, %v5610_v44 }
 0x403   : > { %5044 = vmatprep.subr.mxu1 %v11836_v14  ;;  %7693 = vmatprep.subr.mxu0 %v7982_v37  ;;  %v5216_v14 = vand.u32 4294901760, %v11939_v1 }
 0x404   : > { %5046 = vmatpush1.msra.mxu1 %v11817_v10  ;;  %7694 = vmatpush3.msra.mxu0 %v11916_v62  ;;  %v5203_v10 = vsub.f32 %v11922_v6, %v5202_v39 }
 0x405   : > { %5048 = vmatprep.subr.mxu1 %v11858_v22  ;;  %7695 = vmatprep.subr.mxu0 %v7982_v37  ;;  %v7425_v22 = vld [vmem:[%s12460_s1 + $0x4] sm:$0xf]  ;;  %v5217_v46 = vsub.f32 %v11939_v1, %v5216_v14 }
 0x406   : > { %5050 = vmatpush1.msra.mxu1 %v11825_v34  ;;  %7696 = vmatpush3.msra.mxu0 %v11924_v40  ;;  %v3986_v34 = vsel %vm3984_vm11, %v11884_v11, %v11895_v57  ;;  %v5635_v27 = vsel %vm4057_vm8, %v7425_v22, 0  ;;  %v5611_v11 = vrot.slane %v4026_v35, 4  ;;  %vm7285_vm8 = vcmask 531456  }
 0x407   : > { %5052 = vmatprep.subr.mxu1 %v11876_v50  ;;  %7697 = vmatprep.mubr.msk.f32.mxu0 %vm7987_vm13, %v7982_v37  ;;  %v4046_v50 = vsel %vm4029_vm7, %v3986_v34, %v4006_v41  ;;  %v11993_v15 = vand.u32 4294901760, %v5635_v27  ;;  %v5218_v7 = vand.u32 4294901760, %v5217_v46  ;;  %v3987_v46 = vsel %vm3984_vm11, %v11895_v57, %v12003_v24 }
 0x408   : > { %7709 = vmatprep.subr.mxu0 %v7982_v37  ;;  %5054 = vmatpush1.msra.mxu1 %v11841_v31  ;;  %v5204_v31 = vand.u32 4294901760, %v5203_v10  ;;  %v12084_v10 = vsub.f32 %v11655_v13, %v12051_v60 }
 0x409   : > { %5087 = vmatprep.mubr.f32.mxu1 %v7982_v37  ;;  %7698 = vmatmul.mubr.f32.vlgmr.msra.gmra.mxu0 %v11742_v55  ;;  %v5601_v55 = vrot.slane %v4046_v50, 4  ;;  %v12010_v23 = vsub.f32 %v5635_v27, %v11993_v15  ;;  %v3988_v27 = vsel %vm3984_vm11, %v12003_v24, %v12020_v20 }
 0x40a   : > { %7710 = vmatpush3.msra.mxu0 %v11922_v6  ;;  %5089 = vmatmul.mubr.f32.vlgmr.msra.gmra.mxu1 %v11657_v38  ;;  %v4001_v6 = vpop.permute.xlu1 %4000  ;;  %v5777_v25 = vand.u32 4294901760, %v12084_v10 }
 0x40b   : > { %7700 = vmatprep.subr.mxu1 %v7982_v37  ;;  %7711 = vmatprep.subr.mxu0 %v7982_v37  ;;  %v5612_v49 = vsel %vm4029_vm7, %v5601_v55, %v5611_v11  ;;  %v5602_v52 = vsel %vm4029_vm7, %v5588_v36, %v5601_v55  ;;  %v12037_v18 = vand.u32 4294901760, %v12010_v23  ;;  %v12042_v36 = vand.u32 4294901760, %v11735_v32 }
 0x40c   : > { %7701 = vmatpush3.msra.mxu1 %v5204_v31  ;;  %7712 = vmatpush3.msra.mxu0 %v11931_v47  ;;  %v12015_v17 = vand.u32 4294901760, %v5612_v49  ;;  %v12054_v47 = vsub.f32 %v5610_v44, %v12025_v29  ;;  %v4007_v56 = vsel %vm4004_vm10, %v11903_v26, %v4001_v6 }
 0x40d   : > { %7702 = vmatprep.subr.mxu1 %v7982_v37  ;;  %7713 = vmatprep.subr.mxu0 %v7982_v37  ;;  %v4047_v21 = vsel %vm4029_vm7, %v3987_v46, %v4007_v56 }
 0x40e   : > { %7703 = vmatpush3.msra.mxu1 %v5211_v59  ;;  %7714 = vmatpush3.msra.mxu0 %v11939_v1  ;;  %v12045_v61 = vsub.f32 %v5612_v49, %v12015_v17  ;;  %v5711_v1 = vsub.f32 %v12010_v23, %v12037_v18  ;;  %v5753_v41 = vand.u32 4294901760, %v12054_v47  ;;  %v4021_v9 = vpop.permute.xlu1 %4020  ;;  %v5778_v59 = vsub.f32 %v12084_v10, %v5777_v25 }
 0x40f   : > { %7704 = vmatprep.subr.mxu1 %v7982_v37  ;;  %7715 = vmatprep.mubr.msk.f32.mxu0 %vm7987_vm13, %v7982_v37  ;;  %v4027_v33 = vsel %vm4024_vm12, %v11946_v8, %v4021_v9  ;;  %v5603_v44 = vrot.slane %v4047_v21, 4 }
 0x410   : > { %7727 = vmatprep.subr.mxu0 %v7982_v37  ;;  %7705 = vmatpush3.msra.mxu1 %v5218_v7  ;;  %v5747_v12 = vand.u32 4294901760, %v12045_v61  ;;  %v5754_v34 = vsub.f32 %v12054_v47, %v5753_v41  ;;  %v5613_v51 = vrot.slane %v4027_v33, 4 }
 0x411   : > { %7706 = vmatprep.mubr.msk.f32.mxu1 %vm7987_vm13, %v7982_v37  ;;  %7716 = vmatmul.mubr.f32.vlgmr.msra.gmra.mxu0 %v11667_v28  ;;  %v12029_v28 = vand.u32 4294901760, %v5602_v52 }
 0x412   : > { %7728 = vmatpush3.msra.mxu0 %v5202_v39  ;;  %7707 = vmatmul.mubr.f32.vlgmr.msra.gmra.mxu1 %v11657_v38  ;;  %v12062_v39 = vpop.permute.xlu0 %4002  ;;  %v5748_v13 = vsub.f32 %v12045_v61, %v5747_v12  ;;  %v5755_v57 = vand.u32 4294901760, %v5754_v34 }
 0x413   : > { %7718 = vmatprep.subr.mxu1 %v7982_v37  ;;  %7729 = vmatprep.subr.mxu0 %v7982_v37  ;;  %v12060_v4 = vsub.f32 %v5602_v52, %v12029_v28  ;;  %v5779_v52 = vand.u32 4294901760, %v5778_v59  ;;  %v4049_v34 = vsel %vm4029_vm7, %v12020_v20, %v12062_v39 }
 0x414   : > { %7719 = vmatpush3.msra.mxu1 %v11907_v19  ;;  %7730 = vmatpush3.msra.mxu0 %v5209_v54  ;;  %v12069_v54 = vsub.f32 %v5600_v63, %v12034_v43  ;;  %v5749_v8 = vand.u32 4294901760, %v5748_v13  ;;  %v5614_v63 = vsel %vm4029_vm7, %v5603_v44, %v5613_v51 }
 0x415   : > { %7720 = vmatprep.subr.mxu1 %v7982_v37  ;;  %7731 = vmatprep.subr.mxu0 %v7982_v37  ;;  %v5759_v22 = vand.u32 4294901760, %v12060_v4 }
 0x416   : > { %7721 = vmatpush3.msra.mxu1 %v11916_v62  ;;  %7732 = vmatpush3.msra.mxu0 %v5216_v14  ;;  %v12077_v14 = vsub.f32 %v11735_v32, %v12042_v36  ;;  %v12091_v32 = vand.u32 4294901760, %v5711_v1  ;;  %v12100_v35 = vpop.permute.xlu0 %4022 }
 0x417   : > { %7722 = vmatprep.subr.mxu1 %v7982_v37  ;;  %7733 = vmatprep.mubr.msk.f32.mxu0 %vm7987_vm13, %v7982_v37  ;;  %v4028_v50 = vsel %vm4024_vm12, %v4021_v9, %v12100_v35  ;;  %v5617_v56 = vrot.slane %v12100_v35, 4 }
 0x418   : > { %5664 = vmatprep.subr.mxu0 %v12015_v17  ;;  %7723 = vmatpush3.msra.mxu1 %v11924_v40  ;;  %v5771_v45 = vand.u32 4294901760, %v12077_v14  ;;  %v5615_v55 = vrot.slane %v4028_v50, 4 }
 0x419   : > { %7724 = vmatprep.mubr.msk.f32.mxu1 %vm7987_vm13, %v7982_v37  ;;  %7734 = vmatmul.mubr.f32.vlgmr.msra.gmra.mxu0 %v11657_v38 }
 0x41a   : > { %5666 = vmatpush1.msra.mxu0 %v12025_v29  ;;  %7725 = vmatmul.mubr.f32.vlgmr.msra.gmra.mxu1 %v11688_v2  ;;  %v5765_v2 = vand.u32 4294901760, %v12069_v54  ;;  %v5772_v31 = vsub.f32 %v12077_v14, %v5771_v45 }
 0x41b   : > { %7736 = vmatprep.subr.mxu1 %v7982_v37  ;;  %5668 = vmatprep.subr.mxu0 %v12029_v28 }
 0x41c   : > { %7737 = vmatpush3.msra.mxu1 %v11907_v19  ;;  %5670 = vmatpush1.msra.mxu0 %v12034_v43  ;;  %v4008_v19 = vsel %vm4004_vm10, %v4001_v6, %v12062_v39  ;;  %v5766_v26 = vsub.f32 %v12069_v54, %v5765_v2  ;;  %v5773_v24 = vand.u32 4294901760, %v5772_v31 }
 0x41d   : > { %7738 = vmatprep.subr.mxu1 %v7982_v37  ;;  %5672 = vmatprep.subr.mxu0 %v12042_v36  ;;  %v4048_v11 = vsel %vm4029_vm7, %v3988_v27, %v4008_v19 }
 0x41e   : > { %7739 = vmatpush3.msra.mxu1 %v11916_v62  ;;  %5674 = vmatpush1.msra.mxu0 %v12051_v60  ;;  %v5760_v62 = vsub.f32 %v12060_v4, %v5759_v22  ;;  %v5605_v49 = vrot.slane %v4048_v11, 4  ;;  %v5767_v7 = vand.u32 4294901760, %v5766_v26 }
 0x41f   : > { %5707 = vmatprep.mubr.f32.mxu0 %v7982_v37  ;;  %7740 = vmatprep.subr.mxu1 %v7982_v37 }
 0x420   : > { %5713 = vmatmul.mubr.f32.vlgmr.msra.gmra.mxu0 %v12091_v32  ;;  %5849 = vmatprep.subr.mxu0 %v12045_v61  ;;  %v5606_v6 = vsel %vm4029_vm7, %v5594_v5, %v5605_v49  ;;  %v12165_v61 = vand.u32 4294901760, %v5614_v63 }
 0x421   : > { %7741 = vmatpush3.msra.mxu1 %v11924_v40  ;;  %7742 = vmatprep.mubr.msk.f32.mxu1 %vm7987_vm13, %v7982_v37  ;;  %v5761_v40 = vand.u32 4294901760, %v5760_v62  ;;  %v12170_v0 = vand.u32 4294901760, %v5606_v6  ;;  %v5607_v62 = vrot.slane %v4049_v34, 4 }
 0x422   : > { %5852 = vmatpush1.msra.mxu0 %v12054_v47  ;;  %7743 = vmatmul.mubr.f32.vlgmr.msra.gmra.mxu1 %v11657_v38  ;;  %v5616_v38 = vsel %vm4029_vm7, %v5605_v49, %v5615_v55  ;;  %v12188_v47 = vand.u32 4294901760, %v11799_v16  ;;  %v12294_v55 = vpop.permute.xlu1 %4054 }
 0x423   : > { %5750 = vmatprep.subr.mxu1 %v5749_v8  ;;  %5855 = vmatprep.subr.mxu0 %v12060_v4  ;;  %v12157_v1 = vand.u32 4294901760, %v5616_v38  ;;  %v12191_v4 = vsub.f32 %v5614_v63, %v12165_v61  ;;  %v5618_v27 = vsel %vm4029_vm7, %v5607_v62, %v5617_v56  ;;  %v5608_v35 = vsel %vm4029_vm7, %v5597_v3, %v5607_v62 }
 0x424   : > { %5756 = vmatpush1.msra.mxu1 %v5755_v57  ;;  %5858 = vmatpush1.msra.mxu0 %v12069_v54  ;;  %v12196_v54 = vsub.f32 %v5606_v6, %v12170_v0  ;;  %v12215_v9 = vsub.f32 %v11799_v16, %v12188_v47  ;;  %v12258_v33 = vand.u32 4294901760, %v5618_v27  ;;  %v12263_v26 = vand.u32 4294901760, %v5608_v35 }
 0x425   : > { %5762 = vmatprep.subr.mxu1 %v5761_v40  ;;  %5861 = vmatprep.subr.mxu0 %v12077_v14  ;;  %v12184_v5 = vsub.f32 %v5616_v38, %v12157_v1  ;;  %v12271_v3 = vand.u32 4294901760, %v11890_v58 }
 0x426   : > { %5768 = vmatpush1.msra.mxu1 %v5767_v7  ;;  %5864 = vmatpush1.msra.mxu0 %v12084_v10  ;;  %v5604_v10 = vsel %vm4029_vm7, %v5591_v42, %v5603_v44  ;;  %v12181_v42 = vand.u32 4294901760, %v11881_v30  ;;  %v12267_v53 = vsub.f32 %v5618_v27, %v12258_v33  ;;  %v12278_v46 = vsub.f32 %v5608_v35, %v12263_v26 }
 0x427   : > { %5774 = vmatprep.subr.mxu1 %v5773_v24  ;;  %5897 = vmatprep.mubr.f32.mxu0 %v7982_v37  ;;  %v12175_v48 = vand.u32 4294901760, %v5604_v10  ;;  %v6264_v14 = vand.u32 4294901760, %v12184_v5  ;;  %v12287_v31 = vsub.f32 %v11890_v58, %v12271_v3  ;;  %vm7293_vm7 = vcmask 793600  }
 0x428   : > { %6015 = vmatprep.subr.mxu0 %v5747_v12  ;;  %5780 = vmatpush1.msra.mxu1 %v5779_v52  ;;  %v6778_v8 = vand.u32 4294901760, %v12267_v53  ;;  %v6785_v21 = vand.u32 4294901760, %v12278_v46 }
 0x429   : > { %5813 = vmatprep.mubr.f32.mxu1 %v7982_v37  ;;  %5900 = vmatmul.mubr.f32.vlgmr.msra.gmra.mxu0 %v12010_v23  ;;  %v12201_v12 = vsub.f32 %v5604_v10, %v12175_v48  ;;  %v6265_v13 = vsub.f32 %v12184_v5, %v6264_v14  ;;  %v6792_v59 = vand.u32 4294901760, %v12287_v31 }
 0x42a   : > { %6019 = vmatpush1.msra.mxu0 %v5753_v41  ;;  %5815 = vmatmul.mubr.f32.vlgmr.msra.gmra.mxu1 %v11993_v15  ;;  %v12208_v41 = vsub.f32 %v11881_v30, %v12181_v42  ;;  %v6779_v58 = vsub.f32 %v12267_v53, %v6778_v8  ;;  %v6786_v40 = vsub.f32 %v12278_v46, %v6785_v21 }
 0x42b   : > { %5933 = vmatprep.subr.mxu1 %v12015_v17  ;;  %6023 = vmatprep.subr.mxu0 %v5759_v22  ;;  %v6270_v22 = vand.u32 4294901760, %v12191_v4  ;;  %v6282_v30 = vand.u32 4294901760, %v12201_v12  ;;  %v6793_v24 = vsub.f32 %v12287_v31, %v6792_v59 }
 0x42c   : > { %5935 = vmatpush1.msra.mxu1 %v12025_v29  ;;  %6027 = vmatpush1.msra.mxu0 %v5765_v2  ;;  %v6276_v2 = vand.u32 4294901760, %v12196_v54  ;;  %v6288_v16 = vand.u32 4294901760, %v12208_v41  ;;  %v6780_v44 = vand.u32 4294901760, %v6779_v58  ;;  %v6787_v52 = vand.u32 4294901760, %v6786_v40 }
 0x42d   : > { %5937 = vmatprep.subr.mxu1 %v12029_v28  ;;  %6031 = vmatprep.subr.mxu0 %v5771_v45  ;;  %v6283_v45 = vsub.f32 %v12201_v12, %v6282_v30 }
 0x42e   : > { %5939 = vmatpush1.msra.mxu1 %v12034_v43  ;;  %6035 = vmatpush1.msra.mxu0 %v5777_v25  ;;  %v6289_v19 = vsub.f32 %v12208_v41, %v6288_v16 }
 0x42f   : > { %5941 = vmatprep.subr.mxu1 %v12042_v36  ;;  %6068 = vmatprep.mubr.f32.mxu0 %v7982_v37  ;;  %v6284_v50 = vand.u32 4294901760, %v6283_v45 }
 0x430   : > { %6181 = vmatprep.subr.mxu0 %v12157_v1  ;;  %5943 = vmatpush1.msra.mxu1 %v12051_v60  ;;  %v6290_v20 = vand.u32 4294901760, %v6289_v19 }
 0x431   : > { %5976 = vmatprep.mubr.f32.mxu1 %v7982_v37  ;;  %6070 = vmatmul.mubr.f32.vlgmr.msra.gmra.mxu0 %v11993_v15 }
 0x432   : > { %6183 = vmatpush1.msra.mxu0 %v12165_v61  ;;  %5980 = vmatmul.mubr.f32.vlgmr.msra.gmra.mxu1 %v12037_v18 }
 0x433   : > { %6103 = vmatprep.subr.mxu1 %v12015_v17  ;;  %6185 = vmatprep.subr.mxu0 %v12170_v0  ;;  %v6271_v17 = vsub.f32 %v12191_v4, %v6270_v22 }
 0x434   : > { %6105 = vmatpush1.msra.mxu1 %v12025_v29  ;;  %6187 = vmatpush1.msra.mxu0 %v12175_v48  ;;  %v6294_v29 = vand.u32 4294901760, %v12215_v9 }
 0x435   : > { %6107 = vmatprep.subr.mxu1 %v12029_v28  ;;  %6189 = vmatprep.subr.mxu0 %v12181_v42  ;;  %v6277_v28 = vsub.f32 %v12196_v54, %v6276_v2 }
 0x436   : > { %6109 = vmatpush1.msra.mxu1 %v12034_v43  ;;  %6191 = vmatpush1.msra.mxu0 %v12188_v47  ;;  %v6266_v43 = vand.u32 4294901760, %v6265_v13  ;;  %v6295_v25 = vsub.f32 %v12215_v9, %v6294_v29 }
 0x437   : > { %6224 = vmatprep.mubr.f32.mxu0 %v7982_v37  ;;  %6111 = vmatprep.subr.mxu1 %v12042_v36  ;;  %v6272_v36 = vand.u32 4294901760, %v6271_v17 }
 0x438   : > { %6230 = vmatmul.mubr.f32.vlgmr.msra.gmra.mxu0 %v12091_v32  ;;  %6366 = vmatprep.subr.mxu0 %v12184_v5  ;;  %v6296_v39 = vand.u32 4294901760, %v6295_v25 }
 0x439   : > { %6113 = vmatpush1.msra.mxu1 %v12051_v60  ;;  %6146 = vmatprep.mubr.f32.mxu1 %v7982_v37  ;;  %v6278_v60 = vand.u32 4294901760, %v6277_v28 }
 0x43a   : > { %6369 = vmatpush1.msra.mxu0 %v12191_v4  ;;  %6148 = vmatmul.mubr.f32.vlgmr.msra.gmra.mxu1 %v11993_v15 }
 0x43b   : > { %6267 = vmatprep.subr.mxu1 %v6266_v43  ;;  %6372 = vmatprep.subr.mxu0 %v12196_v54 }
 0x43c   : > { %6273 = vmatpush1.msra.mxu1 %v6272_v36  ;;  %6375 = vmatpush1.msra.mxu0 %v12201_v12 }
 0x43d   : > { %6279 = vmatprep.subr.mxu1 %v6278_v60  ;;  %6378 = vmatprep.subr.mxu0 %v12208_v41 }
 0x43e   : > { %6285 = vmatpush1.msra.mxu1 %v6284_v50  ;;  %6381 = vmatpush1.msra.mxu0 %v12215_v9 }
 0x43f   : > { %6291 = vmatprep.subr.mxu1 %v6290_v20  ;;  %6414 = vmatprep.mubr.f32.mxu0 %v7982_v37 }
 0x440   : > { %6532 = vmatprep.subr.mxu0 %v6264_v14  ;;  %6297 = vmatpush1.msra.mxu1 %v6296_v39 }
 0x441   : > { %6330 = vmatprep.mubr.f32.mxu1 %v7982_v37  ;;  %6417 = vmatmul.mubr.f32.vlgmr.msra.gmra.mxu0 %v12010_v23 }
 0x442   : > { %6536 = vmatpush1.msra.mxu0 %v6270_v22  ;;  %6332 = vmatmul.mubr.f32.vlgmr.msra.gmra.mxu1 %v11993_v15 }
 0x443   : > { %6450 = vmatprep.subr.mxu1 %v12157_v1  ;;  %6540 = vmatprep.subr.mxu0 %v6276_v2 }
 0x444   : > { %6452 = vmatpush1.msra.mxu1 %v12165_v61  ;;  %6544 = vmatpush1.msra.mxu0 %v6282_v30 }
 0x445   : > { %6454 = vmatprep.subr.mxu1 %v12170_v0  ;;  %6548 = vmatprep.subr.mxu0 %v6288_v16 }
 0x446   : > { %6456 = vmatpush1.msra.mxu1 %v12175_v48  ;;  %6552 = vmatpush1.msra.mxu0 %v6294_v29 }
 0x447   : > { %6458 = vmatprep.subr.mxu1 %v12181_v42  ;;  %6585 = vmatprep.mubr.f32.mxu0 %v7982_v37 }
 0x448   : > { %7745 = vmatprep.subr.mxu0 %v7982_v37  ;;  %6460 = vmatpush1.msra.mxu1 %v12188_v47  ;;  %v4138_v11 = vpop.f32.mrf.mxu0 }
 0x449   : > { %6493 = vmatprep.mubr.f32.mxu1 %v7982_v37  ;;  %6587 = vmatmul.mubr.f32.vlgmr.msra.gmra.mxu0 %v11993_v15  ;;  %v4139_v51 = vadd.f32 %v4138_v11, %v12294_v55 }
 0x44a   : > { %7746 = vmatpush3.msra.mxu0 %v12258_v33  ;;  %6497 = vmatmul.mubr.f32.vlgmr.msra.gmra.mxu1 %v12037_v18  ;;  %v4140_v57 = vpop.f32.mrf.mxu0 }
 0x44b   : > { %6620 = vmatprep.subr.mxu1 %v12157_v1  ;;  %7747 = vmatprep.subr.mxu0 %v7982_v37  ;;  %v4141_v49 = vadd.f32 %v4140_v57, %v12294_v55 }
 0x44c   : > { %6622 = vmatpush1.msra.mxu1 %v12165_v61  ;;  %7748 = vmatpush3.msra.mxu0 %v12263_v26  ;;  %v6794_v61 = vand.u32 4294901760, %v6793_v24 }
 0x44d   : > { %6624 = vmatprep.subr.mxu1 %v12170_v0  ;;  %7749 = vmatprep.subr.mxu0 %v7982_v37 }
 0x44e   : > { %6626 = vmatpush1.msra.mxu1 %v12175_v48  ;;  %7750 = vmatpush3.msra.mxu0 %v12271_v3 }
 0x44f   : > { %7751 = vmatprep.mubr.msk.f32.mxu0 %vm7987_vm13, %v7982_v37  ;;  %6628 = vmatprep.subr.mxu1 %v12181_v42  ;;  %v4325_v7 = vpop.f32.mrf.mxu0 }
 0x450   : > { %7752 = vmatmul.mubr.f32.vlgmr.msra.gmra.mxu0 %v12091_v32  ;;  %7763 = vmatprep.subr.mxu0 %v7982_v37 }
 0x451   : > { %6630 = vmatpush1.msra.mxu1 %v12188_v47  ;;  %6663 = vmatprep.mubr.f32.mxu1 %v7982_v37  ;;  %v4327_v10 = vpop.f32.mrf.mxu0 }
 0x452   : > { %7764 = vmatpush3.msra.mxu0 %v12267_v53  ;;  %6665 = vmatmul.mubr.f32.vlgmr.msra.gmra.mxu1 %v11993_v15  ;;  %v4240_v38 = vpop.f32.mrf.mxu1 }
 0x453   : > { %7754 = vmatprep.subr.mxu1 %v7982_v37  ;;  %7765 = vmatprep.subr.mxu0 %v7982_v37  ;;  %v4241_v32 = vadd.f32 %v4240_v38, %v4139_v51 }
 0x454   : > { %7755 = vmatpush3.msra.mxu1 %v6780_v44  ;;  %7766 = vmatpush3.msra.mxu0 %v12278_v46  ;;  %v4242_v63 = vpop.f32.mrf.mxu1 }
 0x455   : > { %7756 = vmatprep.subr.mxu1 %v7982_v37  ;;  %7767 = vmatprep.subr.mxu0 %v7982_v37  ;;  %v4243_v6 = vadd.f32 %v4242_v63, %v4141_v49  ;;  %v4326_v1 = vadd.f32 %v4325_v7, %v4241_v32 }
 0x456   : > { %7757 = vmatpush3.msra.mxu1 %v6787_v52  ;;  %7768 = vmatpush3.msra.mxu0 %v12287_v31 }
 0x457   : > { %7758 = vmatprep.subr.mxu1 %v7982_v37  ;;  %7769 = vmatprep.mubr.msk.f32.mxu0 %vm7987_vm13, %v7982_v37  ;;  %v4328_v0 = vadd.f32 %v4327_v10, %v4243_v6 }
 0x458   : > { %7781 = vmatprep.subr.mxu0 %v7982_v37  ;;  %7759 = vmatpush3.msra.mxu1 %v6794_v61  ;;  %v4405_v48 = vpop.f32.mrf.mxu1 }
 0x459   : > { %7760 = vmatprep.mubr.msk.f32.mxu1 %vm7987_vm13, %v7982_v37  ;;  %7770 = vmatmul.mubr.f32.vlgmr.msra.gmra.mxu0 %v12010_v23  ;;  %v4406_v42 = vadd.f32 %v4405_v48, %v4326_v1  ;;  %v4495_v5 = vpop.f32.mrf.mxu0 }
 0x45a   : > { %7782 = vmatpush3.msra.mxu0 %v6778_v8  ;;  %7761 = vmatmul.mubr.f32.vlgmr.msra.gmra.mxu1 %v11993_v15  ;;  %v4407_v47 = vpop.f32.mrf.mxu1 }
 0x45b   : > { %7772 = vmatprep.subr.mxu1 %v7982_v37  ;;  %7783 = vmatprep.subr.mxu0 %v7982_v37  ;;  %v4408_v4 = vadd.f32 %v4407_v47, %v4328_v0  ;;  %v4496_v54 = vadd.f32 %v4495_v5, %v4406_v42  ;;  %v4497_v12 = vpop.f32.mrf.mxu0 }
 0x45c   : > { %7773 = vmatpush3.msra.mxu1 %v12258_v33  ;;  %7784 = vmatpush3.msra.mxu0 %v6785_v21 }
 0x45d   : > { %7774 = vmatprep.subr.mxu1 %v7982_v37  ;;  %7785 = vmatprep.subr.mxu0 %v7982_v37  ;;  %v4498_v14 = vadd.f32 %v4497_v12, %v4408_v4 }
 0x45e   : > { %7775 = vmatpush3.msra.mxu1 %v12263_v26  ;;  %7786 = vmatpush3.msra.mxu0 %v6792_v59  ;;  %v4573_v23 = vpop.f32.mrf.mxu1 }
 0x45f   : > { %7776 = vmatprep.subr.mxu1 %v7982_v37  ;;  %7778 = vmatprep.mubr.msk.f32.mxu1 %vm7987_vm13, %v7982_v37  ;;  %v4574_v41 = vadd.f32 %v4573_v23, %v4496_v54 }
 0x460   : > { %7777 = vmatpush3.msra.mxu1 %v12271_v3  ;;  %7787 = vmatprep.mubr.msk.f32.mxu0 %vm7987_vm13, %v7982_v37  ;;  %v4575_v22 = vpop.f32.mrf.mxu1 }
 0x461   : > { %7779 = vmatmul.mubr.f32.vlgmr.msra.gmra.mxu1 %v12037_v18  ;;  %7790 = vmatprep.subr.mxu1 %v7982_v37  ;;  %v4576_v9 = vadd.f32 %v4575_v22, %v4498_v14 }
 0x462   : > { %7791 = vmatpush3.msra.mxu1 %v12258_v33  ;;  %7788 = vmatmul.mubr.f32.vlgmr.msra.gmra.mxu0 %v11993_v15 }
 0x463   : > { %7792 = vmatprep.subr.mxu1 %v7982_v37  ;;  %7796 = vmatprep.mubr.msk.f32.mxu1 %vm7987_vm13, %v7982_v37 }
 0x464   : > { %7793 = vmatpush3.msra.mxu1 %v12263_v26  ;;  %7144 = vrot.lane.b32.xlu0 %v4574_v41, %s7981_s17  ;;  %s7993_s17 = smov 21  }
 0x465   : > { %7794 = vmatprep.subr.mxu1 %v7982_v37  ;;  %7166 = vrot.lane.b32.xlu1 %v4576_v9, %s7988_s11 }
 0x466   : > { %7795 = vmatpush3.msra.mxu1 %v12271_v3 }
 0x467   : > { %7797 = vmatmul.mubr.f32.vlgmr.msra.gmra.mxu1 %v11993_v15 }
 0x468   : > { %7151 = vrot.lane.b32.xlu0 %v4574_v41, %s7989_s12  ;;  %s8005_s12 = smov 23  }
 0x46c   : > { %7157 = vrot.lane.b32.xlu0 %v4574_v41, %s7984_s24  ;;  %s7995_s24 = smov 43  }
 0x470   : > { %7164 = vrot.lane.b32.xlu0 %v4574_v41, %s7988_s11  ;;  %s8004_s11 = smov 91  }
 0x474   : > { %7179 = vrot.lane.b32.xlu0 %v4576_v9, %s7990_s13  ;;  %s8006_s13 = smov 83  }
 0x478   : > { %7191 = vrot.lane.b32.xlu0 %v4576_v9, %s7991_s14  ;;  %s8007_s14 = smov 113  }
 0x47c   : > { %7198 = vrot.lane.b32.xlu0 %v4576_v9, %s7992_s16 }
 0x480   : > { %7185 = vrot.lane.b32.xlu0 %v4576_v9, %s7993_s17  ;;  %s8009_s17 = smov 53  }
 0x4b2   : > { %v4655_v37 = vpop.f32.mrf.mxu0 }
 0x4b3   : > { %v4656_v18 = vadd.f32 %v4655_v37, %v12294_v55 }
 0x4b4   : > { %v4657_v2 = vpop.f32.mrf.mxu0 }
 0x4b5   : > { %v4658_v45 = vadd.f32 %v4657_v2, %v12294_v55 }
 0x4b9   : > { %v4842_v15 = vpop.f32.mrf.mxu0 }
 0x4ba   : > { %v4757_v30 = vpop.f32.mrf.mxu1 }
 0x4bb   : > { %v4758_v13 = vadd.f32 %v4757_v30, %v4656_v18  ;;  %v4844_v29 = vpop.f32.mrf.mxu0 }
 0x4bc   : > { %v4759_v16 = vpop.f32.mrf.mxu1 }
 0x4bd   : > { %v4843_v17 = vadd.f32 %v4842_v15, %v4758_v13  ;;  %v4760_v34 = vadd.f32 %v4759_v16, %v4658_v45 }
 0x4bf   : > { %v4845_v62 = vadd.f32 %v4844_v29, %v4760_v34 }
 0x4c1   : > { %v5012_v43 = vpop.f32.mrf.mxu0 }
 0x4c2   : > { %v4922_v28 = vpop.f32.mrf.mxu1 }
 0x4c3   : > { %v4923_v19 = vadd.f32 %v4922_v28, %v4843_v17  ;;  %v5014_v36 = vpop.f32.mrf.mxu0 }
 0x4c4   : > { %v4924_v25 = vpop.f32.mrf.mxu1 }
 0x4c5   : > { %v5013_v56 = vadd.f32 %v5012_v43, %v4923_v19  ;;  %v4925_v27 = vadd.f32 %v4924_v25, %v4845_v62 }
 0x4c7   : > { %v5015_v33 = vadd.f32 %v5014_v36, %v4925_v27 }
 0x4c9   : > { %v5169_v60 = vpop.f32.mrf.mxu0 }
 0x4ca   : > { %v5090_v50 = vpop.f32.mrf.mxu1  ;;  %v5170_v26 = vadd.f32 %v5169_v60, %v12294_v55 }
 0x4cb   : > { %v5091_v20 = vadd.f32 %v5090_v50, %v5013_v56  ;;  %v7699_v39 = vpop.f32.mrf.mxu0 }
 0x4cc   : > { %v5092_v35 = vpop.f32.mrf.mxu1 }
 0x4cd   : > { %7228 = vrot.lane.b32.xlu0 %v5091_v20, %s7994_s23  ;;  %7200 = vrot.lane.b32.xlu1 %v5091_v20, %s7992_s16  ;;  %v5093_v46 = vadd.f32 %v5092_v35, %v5015_v33  ;;  %s8008_s16 = smov 105   ;;  %s8010_s23 = smov 15  }
 0x4d1   : > { %7240 = vrot.lane.b32.xlu0 %v5091_v20, %s7995_s24  ;;  %7234 = vrot.lane.b32.xlu1 %v5091_v20, %s7996_s26  ;;  %v5333_v53 = vpop.f32.mrf.mxu0  ;;  %s8011_s24 = smov 75   ;;  %s8012_s26 = smov 7  }
 0x4d2   : > { %v5255_v3 = vpop.f32.mrf.mxu1 }
 0x4d3   : > { %v7717_v11 = vpop.f32.mrf.mxu0  ;;  %v5256_v31 = vadd.f32 %v5255_v3, %v5170_v26 }
 0x4d4   : > { %v7708_v8 = vpop.f32.mrf.mxu1 }
 0x4d5   : > { %7247 = vrot.lane.b32.xlu0 %v5091_v20, %s7997_s28  ;;  %7249 = vrot.lane.b32.xlu1 %v5093_v46, %s7997_s28  ;;  %v5334_v21 = vadd.f32 %v5333_v53, %v5256_v31  ;;  %s8013_s28 = smov 67  }
 0x4d9   : > { %v5489_v57 = vpop.f32.mrf.mxu0  ;;  %7262 = vrot.lane.b32.xlu0 %v5093_v46, %s7998_s6  ;;  %s8014_s6 = smov 97  }
 0x4da   : > { %v5409_v58 = vpop.f32.mrf.mxu1 }
 0x4db   : > { %v7735_v59 = vpop.f32.mrf.mxu0  ;;  %v5410_v40 = vadd.f32 %v5409_v58, %v5334_v21 }
 0x4dc   : > { %v7726_v51 = vpop.f32.mrf.mxu1 }
 0x4dd   : > { %7274 = vrot.lane.b32.xlu0 %v5093_v46, %s7976_s15  ;;  %v5490_v49 = vadd.f32 %v5489_v57, %v5410_v40  ;;  %s8001_s15 = smov 121  }
 0x4e0   : > { %v5714_v38 = vpop.f32.mrf.mxu0 }
 0x4e1   : > { %7281 = vrot.lane.b32.xlu0 %v5093_v46, %s7999_s7  ;;  %v5715_v6 = vadd.f32 %v5714_v38, %v12294_v55 }
 0x4e2   : > { %v5563_v7 = vpop.f32.mrf.mxu1  ;;  %v5716_v32 = vpop.f32.mrf.mxu0 }
 0x4e3   : > { %v5564_v44 = vadd.f32 %v5563_v7, %v5490_v49  ;;  %v5717_v54 = vadd.f32 %v5716_v32, %v12294_v55 }
 0x4e4   : > { %v7744_v24 = vpop.f32.mrf.mxu1 }
 0x4e5   : > { %7283 = vrot.lane.b32.xlu1 %v5564_v44, %s7999_s7  ;;  %7268 = vrot.lane.b32.xlu0 %v5093_v46, %s8000_s8  ;;  %s8015_s7 = smov 45   ;;  %s8016_s8 = smov 37  }
 0x4e9   : > { %v5901_v52 = vpop.f32.mrf.mxu0 }
 0x4ea   : > { %v5816_v63 = vpop.f32.mrf.mxu1 }
 0x4eb   : > { %v5817_v1 = vadd.f32 %v5816_v63, %v5715_v6  ;;  %v5903_v10 = vpop.f32.mrf.mxu0 }
 0x4ec   : > { %v5818_v61 = vpop.f32.mrf.mxu1 }
 0x4ed   : > { %v5902_v48 = vadd.f32 %v5901_v52, %v5817_v1  ;;  %v5819_v14 = vadd.f32 %v5818_v61, %v5717_v54  ;;  %v7145_v52 = vpop.permute.xlu0 %7144 }
 0x4ef   : > { %v5904_v9 = vadd.f32 %v5903_v10, %v5819_v14 }
 0x4f1   : > { %v6071_v42 = vpop.f32.mrf.mxu0  ;;  %v7152_v63 = vpop.permute.xlu0 %7151 }
 0x4f2   : > { %v5981_v0 = vpop.f32.mrf.mxu1 }
 0x4f3   : > { %v5982_v5 = vadd.f32 %v5981_v0, %v5902_v48  ;;  %v6073_v47 = vpop.f32.mrf.mxu0  ;;  %v7167_v48 = vpop.permute.xlu1 %7166 }
 0x4f4   : > { %v5983_v4 = vpop.f32.mrf.mxu1 }
 0x4f5   : > { %v6072_v12 = vadd.f32 %v6071_v42, %v5982_v5  ;;  %v5984_v18 = vadd.f32 %v5983_v4, %v5904_v9  ;;  %v7158_v6 = vpop.permute.xlu0 %7157 }
 0x4f7   : > { %v6074_v15 = vadd.f32 %v6073_v47, %v5984_v18 }
 0x4f8   : > { %v6231_v41 = vpop.f32.mrf.mxu0 }
 0x4f9   : > { %v6232_v16 = vadd.f32 %v6231_v41, %v12294_v55  ;;  %v7165_v1 = vpop.permute.xlu0 %7164 }
 0x4fa   : > { %v6149_v23 = vpop.f32.mrf.mxu1  ;;  %v6233_v37 = vpop.f32.mrf.mxu0 }
 0x4fb   : > { %v6150_v22 = vadd.f32 %v6149_v23, %v6072_v12  ;;  %v6234_v27 = vadd.f32 %v6233_v37, %v12294_v55 }
 0x4fc   : > { %v6151_v30 = vpop.f32.mrf.mxu1 }
 0x4fd   : > { %7172 = vrot.lane.b32.xlu0 %v6150_v22, %s8001_s15  ;;  %7148 = vrot.lane.b32.xlu1 %v6150_v22, %s8002_s9  ;;  %v6152_v29 = vadd.f32 %v6151_v30, %v6074_v15  ;;  %v7180_v10 = vpop.permute.xlu0 %7179 }
 0x501   : > { %7154 = vrot.lane.b32.xlu1 %v6150_v22, %s8003_s10  ;;  %v6418_v2 = vpop.f32.mrf.mxu0  ;;  %v7192_v61 = vpop.permute.xlu0 %7191 }
 0x502   : > { %v6333_v13 = vpop.f32.mrf.mxu1 }
 0x503   : > { %v6420_v17 = vpop.f32.mrf.mxu0  ;;  %v6334_v28 = vadd.f32 %v6333_v13, %v6232_v16 }
 0x504   : > { %v6335_v45 = vpop.f32.mrf.mxu1 }
 0x505   : > { %7160 = vrot.lane.b32.xlu1 %v6150_v22, %s8004_s11  ;;  %v6419_v34 = vadd.f32 %v6418_v2, %v6334_v28  ;;  %v6336_v35 = vadd.f32 %v6335_v45, %v6234_v27  ;;  %v7199_v0 = vpop.permute.xlu0 %7198  ;;  %s7432_s11 = sshll.u32 %s7966_s21, 9 }
 0x507   : > { %v6421_v46 = vadd.f32 %v6420_v17, %v6336_v35 }
 0x509   : > { %v6588_v43 = vpop.f32.mrf.mxu0  ;;  %7182 = vrot.lane.b32.xlu1 %v6152_v29, %s8005_s12  ;;  %v7186_v42 = vpop.permute.xlu0 %7185 }
 0x50a   : > { %v6498_v19 = vpop.f32.mrf.mxu1 }
 0x50b   : > { %v6590_v36 = vpop.f32.mrf.mxu0  ;;  %v6499_v25 = vadd.f32 %v6498_v19, %v6419_v34 }
 0x50c   : > { %v6500_v56 = vpop.f32.mrf.mxu1 }
 0x50d   : > { %7194 = vrot.lane.b32.xlu1 %v6152_v29, %s8006_s13  ;;  %v6589_v50 = vadd.f32 %v6588_v43, %v6499_v25  ;;  %v6501_v21 = vadd.f32 %v6500_v56, %v6421_v46 }
 0x50f   : > { %v6591_v58 = vadd.f32 %v6590_v36, %v6501_v21 }
 0x510   : > { %v6745_v60 = vpop.f32.mrf.mxu0 }
 0x511   : > { %7174 = vrot.lane.b32.xlu1 %v6152_v29, %s8001_s15  ;;  %v6746_v53 = vadd.f32 %v6745_v60, %v12294_v55  ;;  %s229_s15 = sand.u32 1, %s7958_s19  }
 0x512   : > { %v6666_v62 = vpop.f32.mrf.mxu1  ;;  %v7753_v20 = vpop.f32.mrf.mxu0  ;;  %s7422_s9 = sshll.u32 %s229_s15, 5  ;;  %s7329_s21 = scalar_lea.sflag [#allocation3], %s229_s15 }
 0x513   : > { %v6667_v39 = vadd.f32 %v6666_v62, %v6589_v50  ;;  %s12390_s10 = scalar_lea.vmem [#allocation2], %s7422_s9 }
 0x514   : > { %v6668_v33 = vpop.f32.mrf.mxu1  ;;  %s7345_s12 = sshll.u32 %s12390_s10, 4  ;;  %s7346_s12 = int_to_ptr.vmem [resolvable:$true] %s7345_s12 }
 0x515   : > { %7208 = vrot.lane.b32.xlu0 %v6667_v39, %s8007_s14  ;;  %7206 = vrot.lane.b32.xlu1 %v6152_v29, %s8007_s14  ;;  %v6669_v49 = vadd.f32 %v6668_v33, %v6591_v58 }
 0x519   : > { %7255 = vrot.lane.b32.xlu0 %v6667_v39, %s8008_s16  ;;  %v6909_v26 = vpop.f32.mrf.mxu0  ;;  %7188 = vrot.lane.b32.xlu1 %v6152_v29, %s8009_s17  ;;  %v7169_v29 = vsel %vm7168_vm15, %v7165_v1, %v7167_v48  ;;  %s7898_s17 = scalar_lea.vmem %s7346_s12, 512 }
 0x51a   : > { %v6831_v3 = vpop.f32.mrf.mxu1  ;;  %p7899_p12 = scmp.ne.s32.totalorder %s7346_s12, %s7898_s17 }
 0x51b   : > { %v7771_v11 = vpop.f32.mrf.mxu0  ;;  %v6832_v8 = vadd.f32 %v6831_v3, %v6746_v53 }
 0x51c   : > { %v7762_v31 = vpop.f32.mrf.mxu1  ;;  %p7900_p13 = pnand %p7899_p12, %p8088_p4 }
 0x51d   : > { %7231 = vrot.lane.b32.xlu1 %v6667_v39, %s8010_s23  ;;  %v6910_v57 = vadd.f32 %v6909_v26, %v6832_v8  ;;  %s8017_s23 = smov [#allocation2]  }
 0x51e   : > { %p7901_p0 = pneg %p7900_p13 }
 0x521   : > { %v6985_v59 = vpop.f32.mrf.mxu1  ;;  %7243 = vrot.lane.b32.xlu1 %v6667_v39, %s8011_s24  ;;  %s7902_s24 = sshll.u32 %s8017_s23, 4  ;;  %s7903_s24 = int_to_ptr.vmem [resolvable:$false] %s7902_s24 }
 0x522   : > { %v6986_v51 = vadd.f32 %v6985_v59, %v6910_v57  ;;  %v7065_v40 = vpop.f32.mrf.mxu0  ;;  %p7905_p1 = scmp.lt.s32.totalorder %s7346_s12, %s7903_s24 }
 0x523   : > { %v7780_v7 = vpop.f32.mrf.mxu1 }
 0x524   : > { %v7789_v44 = vpop.f32.mrf.mxu0  ;;  %v7066_v55 = vadd.f32 %v7065_v40, %v6986_v51 }
 0x525   : > { %7265 = vrot.lane.b32.xlu1 %v6669_v49, %s8012_s26  ;;  %s7904_s26 = scalar_lea.vmem %s7903_s24, 1024 }
 0x526   : > { %p7906_p2 = scmp.lt.s32.totalorder %s7904_s26, %s7898_s17 }
 0x527   : > { %v7139_v24 = vpop.f32.mrf.mxu1 }
 0x528   : > { %v7140_v38 = vadd.f32 %v7139_v24, %v7066_v55  ;;  %p7907_p3 = por %p7906_p2, %p7905_p1 }
 0x529   : > { %7277 = vrot.lane.b32.xlu1 %v6669_v49, %s8013_s28  ;;  %v7798_v32 = vpop.f32.mrf.mxu1 }
 0x52a   : > { %7291 = vrot.lane.b32.xlu0 %v7140_v38, %s8014_s6  ;;  %p7908_p5 = pnand %p7907_p3, %p7901_p0 }
 0x52d   : > { %7257 = vrot.lane.b32.xlu1 %v6669_v49, %s8008_s16  ;;  %s7343_s16 = scalar_lea.hbm %s12464_s5, %s7432_s11 }
 0x52e   : > { %7237 = vrot.lane.b32.xlu0 %v6667_v39, %s8015_s7 }
 0x531   : > { %7289 = vrot.lane.b32.xlu1 %v6669_v49, %s8014_s6 }
 0x535   : > { %7271 = vrot.lane.b32.xlu1 %v6669_v49, %s8016_s8 }
 0x53f   : > { %v7201_v5 = vpop.permute.xlu1 %7200  ;;  %v7229_v47 = vpop.permute.xlu0 %7228 }
 0x540   : > { %v7203_v27 = vsel %vm7202_vm4, %v7199_v0, %v7201_v5 }
 0x543   : > { %v12367_v4 = vpop.permute.xlu1 %7234  ;;  %v7241_v54 = vpop.permute.xlu0 %7240 }
 0x547   : > { %v7250_v12 = vpop.permute.xlu1 %7249  ;;  %v7248_v23 = vpop.permute.xlu0 %7247 }
 0x548   : > { %v7252_v40 = vsel %vm7251_vm5, %v7248_v23, %v7250_v12 }
 0x54b   : > { %v12371_v41 = vpop.permute.xlu0 %7262 }
 0x54f   : > { %v12373_v9 = vpop.permute.xlu0 %7274 }
 0x553   : > { %v12375_v2 = vpop.permute.xlu0 %7281 }
 0x557   : > { %v12369_v14 = vpop.permute.xlu1 %7283  ;;  %v12377_v13 = vpop.permute.xlu0 %7268 }
 0x56f   : > { %v7149_v22 = vpop.permute.xlu1 %7148  ;;  %v7173_v28 = vpop.permute.xlu0 %7172 }
 0x570   : > { %v7214_v16 = vsel %vm7213_vm14, %v7145_v52, %v7149_v22 }
 0x571   : > { %v7216_v43 = vsel %vm7215_vm0, %v7214_v16, %v7152_v63 }
 0x573   : > { %v7155_v37 = vpop.permute.xlu1 %7154 }
 0x574   : > { %v7218_v36 = vsel %vm7217_vm2, %v7216_v43, %v7155_v37 }
 0x577   : > { %v7161_v18 = vpop.permute.xlu1 %7160 }
 0x578   : > { %v7219_v17 = vsel %vm7213_vm14, %v7158_v6, %v7161_v18 }
 0x579   : > { %v7220_v19 = vsel %vm7215_vm0, %v7219_v17, %v7169_v29 }
 0x57b   : > { %v7183_v30 = vpop.permute.xlu1 %7182 }
 0x57c   : > { %v7222_v50 = vsel %vm7213_vm14, %v7180_v10, %v7183_v30 }
 0x57d   : > { %v7223_v26 = vsel %vm7215_vm0, %v7222_v50, %v7186_v42 }
 0x57f   : > { %v7195_v15 = vpop.permute.xlu1 %7194 }
 0x580   : > { %v7225_v62 = vsel %vm7213_vm14, %v7192_v61, %v7195_v15  ;;  %v7286_v61 = vsel %vm7285_vm8, %v12375_v2, %v12369_v14 }
 0x581   : > { %v7226_v35 = vsel %vm7215_vm0, %v7225_v62, %v7203_v27 }
 0x583   : > { %v7175_v45 = vpop.permute.xlu1 %7174 }
 0x584   : > { %v7177_v34 = vsel %vm7176_vm1, %v7173_v28, %v7175_v45 }
 0x585   : > { %v7221_v25 = vsel %vm7217_vm2, %v7220_v19, %v7177_v34 }
 0x586   : > { %v7316_v56 = vcombine.low %v7218_v36, %v7221_v25 }
 0x587   : > { %v7207_v60 = vpop.permute.xlu1 %7206  ;;  %v7209_v20 = vpop.permute.xlu0 %7208 }
 0x588   : > { %7324 = vst [vmem:[%s12390_s10] sm:$0xff] %v7316_v56  ;;  %v7211_v39 = vsel %vm7210_vm3, %v7207_v60, %v7209_v20 }
 0x589   : > { %v7227_v3 = vsel %vm7217_vm2, %v7226_v35, %v7211_v39 }
 0x58b   : > { %v7189_v33 = vpop.permute.xlu1 %7188  ;;  %v7256_v21 = vpop.permute.xlu0 %7255 }
 0x58c   : > { %v7224_v53 = vsel %vm7217_vm2, %v7223_v26, %v7189_v33 }
 0x58d   : > { %v7317_v46 = vcombine.low %v7224_v53, %v7227_v3 }
 0x58f   : > { %7325 = vst [vmem:[%s12390_s10 + $0x8] sm:$0xff] %v7317_v46  ;;  %v7232_v11 = vpop.permute.xlu1 %7231 }
 0x590   : > { %v7296_v59 = vsel %vm7213_vm14, %v7229_v47, %v7232_v11 }
 0x591   : > { %v7297_v44 = vsel %vm7215_vm0, %v7296_v59, %v12367_v4 }
 0x593   : > { %v7244_v8 = vpop.permute.xlu1 %7243 }
 0x594   : > { %v7299_v51 = vsel %vm7213_vm14, %v7241_v54, %v7244_v8 }
 0x595   : > { %v7300_v7 = vsel %vm7215_vm0, %v7299_v51, %v7252_v40 }
 0x597   : > { %v7266_v31 = vpop.permute.xlu1 %7265 }
 0x598   : > { %v7302_v6 = vsel %vm7213_vm14, %v12371_v41, %v7266_v31 }
 0x599   : > { %v7303_v42 = vsel %vm7215_vm0, %v7302_v6, %v12377_v13 }
 0x59b   : > { %v7278_v57 = vpop.permute.xlu1 %7277 }
 0x59c   : > { %v7292_v58 = vpop.permute.xlu0 %7291  ;;  %v7305_v1 = vsel %vm7213_vm14, %v12373_v9, %v7278_v57 }
 0x59d   : > { %v7306_v0 = vsel %vm7215_vm0, %v7305_v1, %v7286_v61 }
 0x59f   : > { %v7258_v49 = vpop.permute.xlu1 %7257 }
 0x5a0   : > { %v7238_v55 = vpop.permute.xlu0 %7237  ;;  %v7260_v24 = vsel %vm7259_vm6, %v7256_v21, %v7258_v49 }
 0x5a1   : > { %v7298_v38 = vsel %vm7217_vm2, %v7297_v44, %v7238_v55  ;;  %v7301_v32 = vsel %vm7217_vm2, %v7300_v7, %v7260_v24 }
 0x5a2   : > { %v7318_v52 = vcombine.low %v7298_v38, %v7301_v32 }
 0x5a3   : > { %v7290_v63 = vpop.permute.xlu1 %7289 }
 0x5a4   : > { %7326 = vst [vmem:[%s12390_s10 + $0x10] sm:$0xff] %v7318_v52  ;;  %v7294_v10 = vsel %vm7293_vm7, %v7290_v63, %v7292_v58 }
 0x5a5   : > { %v7307_v47 = vsel %vm7217_vm2, %v7306_v0, %v7294_v10 }
 0x5a7   : > { %v7272_v48 = vpop.permute.xlu1 %7271 }
 0x5a8   : > { %v7304_v5 = vsel %vm7217_vm2, %v7303_v42, %v7272_v48 }
 0x5a9   : > { %v7319_v4 = vcombine.low %v7304_v5, %v7307_v47 }
 0x5ab   : > { %7327 = vst [vmem:[%s12390_s10 + $0x18] sm:$0xff] %v7319_v4 }
 0x5ac   : > { %7911 = shalt.err (!%p7908_p5)
}
 0x5ad   : > { %s7912_s28 = scalar_lea.hbm %s7343_s16, 512  ;;  %s7916_s8 = scalar_lea.hbm %s12464_s5, 1024 }
 0x5ae   : > { %p7913_p6 = scmp.ne.s32.totalorder %s7343_s16, %s7912_s28  ;;  %p7917_p10 = scmp.lt.s32.totalorder %s7343_s16, %s12464_s5 }
 0x5af   : > { %p7918_p11 = scmp.lt.s32.totalorder %s7916_s8, %s7912_s28 }
 0x5b0   : > { %p7914_p7 = pnand %p7913_p6, %p8088_p4 }
 0x5b1   : > { %p7919_p12 = por %p7918_p11, %p7917_p10 }
 0x5b2   : > { %p7915_p9 = pneg %p7914_p7 }
 0x5b4   : > { %p7920_p13 = pnand %p7919_p12, %p7915_p9 }
 0x5b6   : > { %7923 = shalt.err (!%p7920_p13)
}
 0x5b7   : > { %7799 = dma.vmem_to_hbm [thread:$0]  (%p8088_p4), %s7346_s12, 512, %s7343_s16, %s7329_s21  }
 0x5b8 PF: > { %p7805_p0 = scmp.ge.s32.totalorder %s7974_s22, 2  ;;  %s7357_s10 = sand.u32 1, %s7954_s18  }
 0x5b9   : > { %s7358_s11 = scalar_lea.sflag [#allocation3], %s7357_s10 }
 0x5ba   : > { %p7802_p1 = pnand %p7805_p0, %p8095_p8 }
 0x5bc   : > { %p7803_p2 = pneg %p7802_p1 }
 0x5be   : > { %7949 = dma.done.wait (%p7803_p2), %s7358_s11, 512  }
 0x5bf   : > { %7951 = vsyncadd (%p7803_p2), %s7358_s11, 4294966784  ;;  %s18_s22 = sadd.s32 1, %s7974_s22   ;;  %s13809_s18 = smov %s7958_s19 }
 0x5c0   : > { %p15_p3 = scmp.ge.s32.totalorder %s18_s22, 4   ;;  %s13810_s19 = smov %s7962_s20 }
 0x5c1   : > { %s13811_s20 = smov %s8101_s30  ;;  %s13812_s21 = smov %s7970_s2 }
 0x5c2   : > { %s13813_s2 = smov %s13815_s25  ;;  %17 = sbr.rel (!%p15_p3) target bundleno = 4 (0x4), region = 77 }
 0x5c7   :  { %7363 = vsyncpa [#allocation3], 1 }
 0x5c8   :  { %7365 = vsyncpa [#allocation3 + $0x1], 1 }

</bundles_post_ra>
